<compile_context>
chip_gen: v7x
topology: tpu7x:2x2x1
jax: 0.10.0
libtpu: 0.0.40
codegen_flags: <defaults>
</compile_context>

<pallas_src>
import functools
import math

import numpy as np

import jax
import jax.numpy as jnp
from jax import lax
from jax.experimental import pallas as pl
from jax.experimental.pallas import tpu as pltpu


def _round_up(x, m):
    return ((x + m - 1) // m) * m


# ------------------------------ Pallas kernels ------------------------------ #
def _c2_bn_lrelu_kernel(a_ref, w_ref, g_ref, b_ref, o_ref, *, m_valid):
    """(M,256)x(256,128) matmul + training-mode BatchNorm over the m_valid rows
    (== all (B,H,W) positions of the conv output) + LeakyReLU.  bf16 output."""
    acc = jnp.dot(a_ref[...], w_ref[...], preferred_element_type=jnp.float32)
    rows = lax.broadcasted_iota(jnp.int32, acc.shape, 0)
    valid = (rows < m_valid).astype(jnp.float32)
    inv_n = 1.0 / float(m_valid)
    mean = jnp.sum(acc * valid, axis=0, keepdims=True) * inv_n
    cen = acc - mean
    var = jnp.sum((cen * cen) * valid, axis=0, keepdims=True) * inv_n
    y = cen * lax.rsqrt(var + 1e-5) * g_ref[...] + b_ref[...]
    y = jnp.where(y >= 0.0, y, 0.01 * y)                 # LeakyReLU(0.01)
    o_ref[...] = y.astype(o_ref.dtype)


def _t1_bias_lrelu_kernel(a_ref, w_ref, b_ref, o_ref):
    """Polyphase ConvTranspose matmul: (M,1152)x(1152,256) + bias + LeakyReLU."""
    acc = jnp.dot(a_ref[...], w_ref[...], preferred_element_type=jnp.float32)
    acc = acc + b_ref[...]
    acc = jnp.where(acc >= 0.0, acc, 0.01 * acc)
    o_ref[...] = acc.astype(o_ref.dtype)


def _single_block_call(kernel, operands, out_shape):
    """One pallas_call, one grid step, every block == the full (2-D) array."""
    in_specs = [pl.BlockSpec(op.shape, lambda i: (0, 0)) for op in operands]
    out_specs = pl.BlockSpec(out_shape.shape, lambda i: (0, 0))
    return pl.pallas_call(
        kernel,
        out_shape=out_shape,
        grid_spec=pltpu.PrefetchScalarGridSpec(
            num_scalar_prefetch=0,
            grid=(1,),
            in_specs=in_specs,
            out_specs=out_specs),
        compiler_params=pltpu.CompilerParams(
            dimension_semantics=("arbitrary",)),
    )(*operands)


def c2_bn_lrelu(patches, w, gamma, beta):
    """patches: (M,256) bf16, w: (256,128) bf16 -> (M,128) bf16."""
    M, _ = patches.shape
    N = w.shape[1]
    Mp = _round_up(M, 8)
    if Mp != M:
        patches = jnp.pad(patches, ((0, Mp - M), (0, 0)))
    out = _single_block_call(
        functools.partial(_c2_bn_lrelu_kernel, m_valid=M),
        (patches, w, gamma, beta),
        jax.ShapeDtypeStruct((Mp, N), jnp.bfloat16))
    return out[:M]


def t1_polyphase_matmul(patches, w, bias):
    """patches: (M,1152) bf16, w: (1152,256) bf16, bias: (1,256) f32."""
    M, _ = patches.shape
    N = w.shape[1]
    Mp = _round_up(M, 8)
    if Mp != M:
        patches = jnp.pad(patches, ((0, Mp - M), (0, 0)))
    out = _single_block_call(
        _t1_bias_lrelu_kernel,
        (patches, w, bias),
        jax.ShapeDtypeStruct((Mp, N), jnp.bfloat16))
    return out[:M]


# --------------------------- conv layers as matmul --------------------------- #
def _im2col_nhwc(x, kh, kw, stride=1):
    N, H, W, C = x.shape
    Ho = (H - kh) // stride + 1
    Wo = (W - kw) // stride + 1
    cols = []
    for i in range(kh):
        for j in range(kw):
            cols.append(x[:, i:i + stride * Ho:stride,
                          j:j + stride * Wo:stride, :])
    patches = jnp.concatenate(cols, axis=-1)          # (N, Ho, Wo, kh*kw*C)
    return patches.reshape(N * Ho * Wo, kh * kw * C), Ho, Wo


def dense_matmul_bias_act(a, w, b, act):
    out = jnp.dot(a, w, preferred_element_type=jnp.float32)
    if b is not None:
        out = out + b
    if act == "leaky_relu":
        out = jnp.where(out >= 0.0, out, 0.01 * out)
    elif act == "tanh":
        out = jnp.tanh(out)
    return out


def conv2d_xla(x, layer, *, k, padding=0, act="none"):
    """NHWC convolution in XLA; weight already in matmul-ready (K, N) form."""
    if padding:
        x = jnp.pad(x, ((0, 0), (padding, padding), (padding, padding), (0, 0)))
    patches, Ho, Wo = _im2col_nhwc(x, k, k)
    out = dense_matmul_bias_act(patches, layer["w"], layer["b"], act)
    return out.reshape(x.shape[0], Ho, Wo, layer["w"].shape[1])


def conv_transpose2d_xla(x, layer, *, k, stride, padding, act="none"):
    """NHWC ConvTranspose == stride-1 conv of the stride-dilated (possibly
    cropped) input with the flipped kernel (flip/swap folded into the packed
    weight).  pad = k - 1 - padding per side (negative pad -> crop)."""
    xd = x
    if stride > 1:
        xd = lax.pad(xd, jnp.array(0.0, xd.dtype),
                     ((0, 0, 0), (0, 0, stride - 1),
                      (0, 0, stride - 1), (0, 0, 0)))
    pad = k - 1 - padding
    if pad < 0:
        c = -pad
        xd = xd[:, c:xd.shape[1] - c, c:xd.shape[2] - c, :]
        pad = 0
    return conv2d_xla(xd, layer, k=k, padding=pad, act=act)


# -------------------------------- JAX glue ops ------------------------------- #
def batchnorm2d(x, gamma, beta, eps=1e-5):
    # PyTorch BatchNorm2d training mode: batch statistics, biased variance.
    mean = jnp.mean(x, axis=(0, 1, 2), keepdims=True)
    var = jnp.var(x, axis=(0, 1, 2), keepdims=True)
    xh = (x - mean) * lax.rsqrt(var + eps)
    return xh * gamma.reshape(1, 1, 1, -1) + beta.reshape(1, 1, 1, -1)


def leaky_relu(x):
    return jnp.where(x >= 0.0, x, 0.01 * x)


def maxpool2(x):
    N, H, W, C = x.shape
    Ho, Wo = H // 2, W // 2
    x = x[:, :Ho * 2, :Wo * 2, :].reshape(N, Ho, 2, Wo, 2, C)
    return jnp.max(x, axis=(2, 4))


# -------------------------------- G_1 network -------------------------------- #
def transformer_block(p, x, last_k):
    B = x.shape[0]
    # Conv2d(1,64,k=2,p=2) + BN1 + LeakyReLU + MaxPool (K=4 -> XLA; bias dropped,
    # exactly cancelled by training-mode BN).
    h = conv2d_xla(x, p["c1"], k=2, padding=2)                  # (B,32,32,64) f32
    h = leaky_relu(batchnorm2d(h, p["bn1_g"], p["bn1_b"])).astype(jnp.bfloat16)
    h = maxpool2(h)                                             # (B,16,16,64) bf16

    # Conv2d(64,128,k=2,p=2) + BN2 + LeakyReLU fused in one single-block
    # Pallas call (bf16 operands/outputs, f32 accumulate & statistics).
    hp = jnp.pad(h, ((0, 0), (2, 2), (2, 2), (0, 0)))           # (B,20,20,64)
    patches, Ho, Wo = _im2col_nhwc(hp, 2, 2)                    # (B*19*19, 256)
    h = c2_bn_lrelu(patches, p["c2_w"], p["bn2_g"], p["bn2_b"])
    h = h.reshape(B, Ho, Wo, -1)                                # (B,19,19,128) bf16
    # TODO(synk): fuse this 2x2 MaxPool into the c2 kernel epilogue as well.
    h = maxpool2(h)                                             # (B,9,9,128) bf16

    # ConvTranspose2d(128,64,k=5,s=2,p=2) + LeakyReLU as a single polyphase
    # matmul: 3x3 im2col of the un-dilated input x 4 phase sub-kernels.
    hp = jnp.pad(h, ((0, 0), (1, 1), (1, 1), (0, 0)))           # (B,11,11,128)
    patches, Hm, Wm = _im2col_nhwc(hp, 3, 3)                    # (B*81, 1152)
    z = t1_polyphase_matmul(patches, p["t1_w"], p["t1_b"])      # (B*81, 256) bf16
    cout = z.shape[1] // 4
    z = z.reshape(B, Hm, Wm, 2, 2, cout).transpose(0, 1, 3, 2, 4, 5)
    z = z.reshape(B, 2 * Hm, 2 * Wm, cout)[:, :2 * Hm - 1, :2 * Wm - 1, :]
    # -> (B,17,17,64) bf16

    # ConvTranspose2d(64,32,k=2,s=2,p=2) + LeakyReLU, then
    # ConvTranspose2d(32,1,k=last_k,s=1,p=1) + Tanh  (tiny -> XLA).
    z = conv_transpose2d_xla(z, p["t2"], k=2, stride=2, padding=2,
                             act="leaky_relu")
    z = conv_transpose2d_xla(z, p["t3"], k=last_k, stride=1, padding=1,
                             act="tanh")
    return z


def g1_forward(params, x, noise):
    """x: (B, input_size); noise: (B, 1, 29, 29) NCHW (PyTorch layout)."""
    B = x.shape[0]
    h = dense_matmul_bias_act(x, params["fc1"]["w"], params["fc1"]["b"], "none")
    h = dense_matmul_bias_act(h, params["fc2"]["w"], params["fc2"]["b"], "none")
    out = h.reshape(B, 7, 7, 1)                                  # NHWC
    out = conv_transpose2d_xla(out, params["enc1"], k=2, stride=2, padding=2,
                               act="leaky_relu")
    out = conv_transpose2d_xla(out, params["enc2"], k=2, stride=2, padding=2,
                               act="leaky_relu")
    out = conv_transpose2d_xla(out, params["enc3"], k=3, stride=2, padding=2,
                               act="leaky_relu")

    nz = jnp.transpose(noise, (0, 2, 3, 1))                      # NCHW -> NHWC
    nz = transformer_block(params["pre1"], nz, 2)
    nz = transformer_block(params["pre2"], nz, 2)
    nz = transformer_block(params["pre3"], nz, 2)

    out = out + nz
    out = transformer_block(params["trans1"], out, 2)
    out_2 = transformer_block(params["trans2"], out, 2)
    merge_1 = out_2 + nz
    out = transformer_block(params["trans_out"], merge_1, 1)
    return jnp.transpose(out, (0, 3, 1, 2))                      # back to NCHW


# ------------------------- parameters + one-time packing --------------------- #
def _uniform(keys, shape, fan_in):
    b = 1.0 / math.sqrt(fan_in)
    return jax.random.uniform(next(keys), shape, jnp.float32, -b, b)


def _pack_dense(w, b):
    return {"w": w, "b": b}


def _pack_conv_xla(w, b, *, transpose=False, drop_bias=False):
    """Weight -> matmul-ready (K, N) form for the XLA conv path."""
    if transpose:                              # (Cin,Cout,kh,kw) -> conv form
        w = jnp.flip(w, axis=(2, 3)).transpose(1, 0, 2, 3)
    cout, cin, kh, kw = w.shape
    wm = w.transpose(2, 3, 1, 0).reshape(kh * kw * cin, cout)    # (K, N)
    return {"w": wm, "b": (None if drop_bias else b)}


def _pack_c2(w):
    """Conv2d weight (128,64,2,2) -> (256,128) bf16; bias dropped (BN follows)."""
    cout, cin, kh, kw = w.shape
    wm = w.transpose(2, 3, 1, 0).reshape(kh * kw * cin, cout)
    return wm.astype(jnp.bfloat16)


def _pack_t1(w_t, bias):
    """ConvTranspose2d (Cin=128,Cout=64,5,5), stride 2, padding 2 -> polyphase.

    The layer becomes ONE matmul of the 3x3 im2col (pad 1) of the un-dilated
    input against W_all (9*Cin, 4*Cout), where phase p = 2*r + c (r/c = output
    row/col parity) and patch offset (du,dv) maps to kernel tap
      ky = 4 - 2*du            if r == 0  (du in {0,1,2})
      ky = {1:3, 2:1}[du]      if r == 1  (du == 0 unused)
    (same for kx/dv/c).  Interleaving the 4 phase outputs reconstructs the
    17x17 transposed-conv result exactly."""
    cin, cout, kh, kw = w_t.shape
    w_np = np.asarray(jax.device_get(w_t), np.float32)
    w_all = np.zeros((9 * cin, 4 * cout), np.float32)

    def tap(par, d):
        if par == 0:
            return 4 - 2 * d
        return {1: 3, 2: 1}.get(d, None)

    for r in (0, 1):
        for c in (0, 1):
            ph = 2 * r + c
            for du in range(3):
                ky = tap(r, du)
                if ky is None:
                    continue
                for dv in range(3):
                    kx = tap(c, dv)
                    if kx is None:
                        continue
                    w_all[(du * 3 + dv) * cin:(du * 3 + dv + 1) * cin,
                          ph * cout:(ph + 1) * cout] = w_np[:, :, ky, kx]
    b_all = jnp.tile(bias, 4).reshape(1, 4 * cout).astype(jnp.float32)
    return jnp.asarray(w_all, jnp.bfloat16), b_all


def _init_transformer(keys, last_k):
    p = {}
    c1_w = _uniform(keys, (64, 1, 2, 2), 1 * 4)
    _ = _uniform(keys, (64,), 1 * 4)          # c1 bias (cancelled by BN1)
    p["c1"] = _pack_conv_xla(c1_w, None, drop_bias=True)
    p["bn1_g"] = jnp.ones((64,), jnp.float32)
    p["bn1_b"] = jnp.zeros((64,), jnp.float32)

    c2_w = _uniform(keys, (128, 64, 2, 2), 64 * 4)
    _ = _uniform(keys, (128,), 64 * 4)        # c2 bias (cancelled by BN2)
    p["c2_w"] = _pack_c2(c2_w)
    p["bn2_g"] = jnp.ones((1, 128), jnp.float32)
    p["bn2_b"] = jnp.zeros((1, 128), jnp.float32)

    t1_w = _uniform(keys, (128, 64, 5, 5), 64 * 25)
    t1_b = _uniform(keys, (64,), 64 * 25)
    p["t1_w"], p["t1_b"] = _pack_t1(t1_w, t1_b)

    p["t2"] = _pack_conv_xla(_uniform(keys, (64, 32, 2, 2), 32 * 4),
                             _uniform(keys, (32,), 32 * 4), transpose=True)
    p["t3"] = _pack_conv_xla(
        _uniform(keys, (32, 1, last_k, last_k), 1 * last_k * last_k),
        _uniform(keys, (1,), 1 * last_k * last_k), transpose=True)
    return p


def init_params(key, input_size=10):
    keys = iter(jax.random.split(key, 128))
    params = {
        # fc_in: Linear(10,16), Linear(16,49); stored as (in, out)
        "fc1": _pack_dense(_uniform(keys, (input_size, 16), input_size),
                           _uniform(keys, (16,), input_size)),
        "fc2": _pack_dense(_uniform(keys, (16, 49), 16),
                           _uniform(keys, (49,), 16)),
        # encoder ConvTranspose2d weights: PyTorch layout (Cin, Cout, k, k)
        "enc1": _pack_conv_xla(_uniform(keys, (1, 16, 2, 2), 16 * 4),
                               _uniform(keys, (16,), 16 * 4), transpose=True),
        "enc2": _pack_conv_xla(_uniform(keys, (16, 32, 2, 2), 32 * 4),
                               _uniform(keys, (32,), 32 * 4), transpose=True),
        "enc3": _pack_conv_xla(_uniform(keys, (32, 1, 3, 3), 1 * 9),
                               _uniform(keys, (1,), 1 * 9), transpose=True),
        "pre1": _init_transformer(keys, 2),
        "pre2": _init_transformer(keys, 2),
        "pre3": _init_transformer(keys, 2),
        "trans1": _init_transformer(keys, 2),
        "trans2": _init_transformer(keys, 2),
        "trans_out": _init_transformer(keys, 1),   # last ConvT has kernel_size=1
    }
    return params


# ----------------------------------- main ------------------------------------ #
if __name__ == "__main__":
    key = jax.random.PRNGKey(0)
    kp, kx, kn = jax.random.split(key, 3)
    params = init_params(kp)

    B = 2
    x = jax.random.normal(kx, (B, 10), jnp.float32)
    # noise must be 29x29 so the residual adds in forward() are shape-valid
    noise = jax.random.normal(kn, (B, 1, 29, 29), jnp.float32)

    fwd = jax.jit(g1_forward)
    out = jax.block_until_ready(fwd(params, x, noise))

    assert out.shape == (B, 1, 28, 28), out.shape
    assert jnp.all(jnp.isfinite(out))
    print("KERNEL_OK")
</pallas_src>

<mosaic_0001>
module attributes {stable_mosaic.version = 11 : i64} {
  func.func @_c2_bn_lrelu_kernel(%arg0: i32, %arg1: memref<728x256xbf16, #tpu.memory_space<vmem>>, %arg2: memref<256x128xbf16, #tpu.memory_space<vmem>>, %arg3: memref<1x128xf32, #tpu.memory_space<vmem>>, %arg4: memref<1x128xf32, #tpu.memory_space<vmem>>, %arg5: memref<728x128xbf16, #tpu.memory_space<vmem>>) attributes {dimension_semantics = [#tpu.dimension_semantics<arbitrary>], iteration_bounds = array<i64: 1>, scalar_prefetch = 0 : i64, scratch_operands = 0 : i64, tpu.core_type = #tpu.core_type<tc>, window_params = [{pipeline_mode = #tpu.pipeline_mode<synchronous>, transform_indices = @transform_0, window_bounds = array<i64: 728, 256>}, {pipeline_mode = #tpu.pipeline_mode<synchronous>, transform_indices = @transform_1, window_bounds = array<i64: 256, 128>}, {pipeline_mode = #tpu.pipeline_mode<synchronous>, transform_indices = @transform_2, window_bounds = array<i64: 1, 128>}, {pipeline_mode = #tpu.pipeline_mode<synchronous>, transform_indices = @transform_3, window_bounds = array<i64: 1, 128>}, {pipeline_mode = #tpu.pipeline_mode<synchronous>, transform_indices = @transform_4, window_bounds = array<i64: 728, 128>}]} {
    %c0 = arith.constant 0 : index
    %c0_0 = arith.constant 0 : index
    %0 = vector.load %arg1[%c0, %c0_0] : memref<728x256xbf16, #tpu.memory_space<vmem>>, vector<728x256xbf16>
    %c0_1 = arith.constant 0 : index
    %c0_2 = arith.constant 0 : index
    %1 = vector.load %arg2[%c0_1, %c0_2] : memref<256x128xbf16, #tpu.memory_space<vmem>>, vector<256x128xbf16>
    %cst = arith.constant dense<0.000000e+00> : vector<728x128xf32>
    %2 = tpu.matmul %0, %1, %cst {dimension_numbers = #tpu.dot_dimension_numbers<[1], [0], [0], [1], [0, 0, 1, 1], [], []>} : vector<728x256xbf16>, vector<256x128xbf16>, vector<728x128xf32> -> vector<728x128xf32>
    %3 = tpu.iota {dimensions = array<i32: 0>} : vector<728x128xi32>
    %c722_i32 = arith.constant 722 : i32
    %4 = vector.broadcast %c722_i32 : i32 to vector<728x128xi32>
    %5 = arith.cmpi slt, %3, %4 : vector<728x128xi32>
    %6 = arith.extui %5 : vector<728x128xi1> to vector<728x128xi32>
    %7 = arith.sitofp %6 : vector<728x128xi32> to vector<728x128xf32>
    %8 = arith.mulf %2, %7 : vector<728x128xf32>
    %cst_3 = arith.constant dense<0.000000e+00> : vector<128xf32>
    %9 = vector.multi_reduction <add>, %8, %cst_3 [0] : vector<728x128xf32> to vector<128xf32>
    %10 = vector.shape_cast %9 : vector<128xf32> to vector<1x128xf32>
    %cst_4 = arith.constant 0.00138504151 : f32
    %11 = vector.broadcast %cst_4 : f32 to vector<1x128xf32>
    %12 = arith.mulf %10, %11 : vector<1x128xf32>
    %13 = vector.broadcast %12 : vector<1x128xf32> to vector<728x128xf32>
    %14 = arith.subf %2, %13 : vector<728x128xf32>
    %15 = arith.mulf %14, %14 : vector<728x128xf32>
    %16 = arith.mulf %15, %7 : vector<728x128xf32>
    %cst_5 = arith.constant dense<0.000000e+00> : vector<128xf32>
    %17 = vector.multi_reduction <add>, %16, %cst_5 [0] : vector<728x128xf32> to vector<128xf32>
    %18 = vector.shape_cast %17 : vector<128xf32> to vector<1x128xf32>
    %cst_6 = arith.constant 0.00138504151 : f32
    %19 = vector.broadcast %cst_6 : f32 to vector<1x128xf32>
    %20 = arith.mulf %18, %19 : vector<1x128xf32>
    %cst_7 = arith.constant 9.99999974E-6 : f32
    %21 = vector.broadcast %cst_7 : f32 to vector<1x128xf32>
    %22 = arith.addf %20, %21 : vector<1x128xf32>
    %23 = math.rsqrt %22 : vector<1x128xf32>
    %24 = vector.broadcast %23 : vector<1x128xf32> to vector<728x128xf32>
    %25 = arith.mulf %14, %24 : vector<728x128xf32>
    %c0_8 = arith.constant 0 : index
    %c0_9 = arith.constant 0 : index
    %26 = vector.load %arg3[%c0_8, %c0_9] : memref<1x128xf32, #tpu.memory_space<vmem>>, vector<1x128xf32>
    %27 = vector.broadcast %26 : vector<1x128xf32> to vector<728x128xf32>
    %28 = arith.mulf %25, %27 : vector<728x128xf32>
    %c0_10 = arith.constant 0 : index
    %c0_11 = arith.constant 0 : index
    %29 = vector.load %arg4[%c0_10, %c0_11] : memref<1x128xf32, #tpu.memory_space<vmem>>, vector<1x128xf32>
    %30 = vector.broadcast %29 : vector<1x128xf32> to vector<728x128xf32>
    %31 = arith.addf %28, %30 : vector<728x128xf32>
    %cst_12 = arith.constant 0.000000e+00 : f32
    %32 = vector.broadcast %cst_12 : f32 to vector<728x128xf32>
    %33 = arith.cmpf oge, %31, %32 : vector<728x128xf32>
    %cst_13 = arith.constant 0.00999999977 : f32
    %34 = vector.broadcast %cst_13 : f32 to vector<728x128xf32>
    %35 = arith.mulf %34, %31 : vector<728x128xf32>
    %36 = arith.select %33, %31, %35 : vector<728x128xi1>, vector<728x128xf32>
    %37 = arith.truncf %36 : vector<728x128xf32> to vector<728x128xbf16>
    %c0_14 = arith.constant 0 : index
    %c0_15 = arith.constant 0 : index
    %38 = vector.load %arg5[%c0_14, %c0_15] : memref<728x128xbf16, #tpu.memory_space<vmem>>, vector<728x128xbf16>
    tpu.vector_store %arg5[%c0_14, %c0_15], %37 {strides = array<i32>} : memref<728x128xbf16, #tpu.memory_space<vmem>>, vector<728x128xbf16>,
    return
  }
  func.func @transform_0(%arg0: i32) -> (i32, i32) {
    %c0_i32 = arith.constant 0 : i32
    %c0_i32_0 = arith.constant 0 : i32
    %c0_i32_1 = arith.constant 0 : i32
    return %c0_i32, %c0_i32_0 : i32, i32
  }
  func.func @transform_1(%arg0: i32) -> (i32, i32) {
    %c0_i32 = arith.constant 0 : i32
    %c0_i32_0 = arith.constant 0 : i32
    %c0_i32_1 = arith.constant 0 : i32
    return %c0_i32, %c0_i32_0 : i32, i32
  }
  func.func @transform_2(%arg0: i32) -> (i32, i32) {
    %c0_i32 = arith.constant 0 : i32
    %c0_i32_0 = arith.constant 0 : i32
    %c0_i32_1 = arith.constant 0 : i32
    return %c0_i32, %c0_i32_0 : i32, i32
  }
  func.func @transform_3(%arg0: i32) -> (i32, i32) {
    %c0_i32 = arith.constant 0 : i32
    %c0_i32_0 = arith.constant 0 : i32
    %c0_i32_1 = arith.constant 0 : i32
    return %c0_i32, %c0_i32_0 : i32, i32
  }
  func.func @transform_4(%arg0: i32) -> (i32, i32) {
    %c0_i32 = arith.constant 0 : i32
    %c0_i32_0 = arith.constant 0 : i32
    %c0_i32_1 = arith.constant 0 : i32
    return %c0_i32, %c0_i32_0 : i32, i32
  }
}

module attributes {stable_mosaic.version = 11 : i64} {
  func.func @_t1_bias_lrelu_kernel(%arg0: i32, %arg1: memref<168x1152xbf16, #tpu.memory_space<vmem>>, %arg2: memref<1152x256xbf16, #tpu.memory_space<vmem>>, %arg3: memref<1x256xf32, #tpu.memory_space<vmem>>, %arg4: memref<168x256xbf16, #tpu.memory_space<vmem>>) attributes {dimension_semantics = [#tpu.dimension_semantics<arbitrary>], iteration_bounds = array<i64: 1>, scalar_prefetch = 0 : i64, scratch_operands = 0 : i64, tpu.core_type = #tpu.core_type<tc>, window_params = [{pipeline_mode = #tpu.pipeline_mode<synchronous>, transform_indices = @transform_0, window_bounds = array<i64: 168, 1152>}, {pipeline_mode = #tpu.pipeline_mode<synchronous>, transform_indices = @transform_1, window_bounds = array<i64: 1152, 256>}, {pipeline_mode = #tpu.pipeline_mode<synchronous>, transform_indices = @transform_2, window_bounds = array<i64: 1, 256>}, {pipeline_mode = #tpu.pipeline_mode<synchronous>, transform_indices = @transform_3, window_bounds = array<i64: 168, 256>}]} {
    %c0 = arith.constant 0 : index
    %c0_0 = arith.constant 0 : index
    %0 = vector.load %arg1[%c0, %c0_0] : memref<168x1152xbf16, #tpu.memory_space<vmem>>, vector<168x1152xbf16>
    %c0_1 = arith.constant 0 : index
    %c0_2 = arith.constant 0 : index
    %1 = vector.load %arg2[%c0_1, %c0_2] : memref<1152x256xbf16, #tpu.memory_space<vmem>>, vector<1152x256xbf16>
    %cst = arith.constant dense<0.000000e+00> : vector<168x256xf32>
    %2 = tpu.matmul %0, %1, %cst {dimension_numbers = #tpu.dot_dimension_numbers<[1], [0], [0], [1], [0, 0, 1, 1], [], []>} : vector<168x1152xbf16>, vector<1152x256xbf16>, vector<168x256xf32> -> vector<168x256xf32>
    %c0_3 = arith.constant 0 : index
    %c0_4 = arith.constant 0 : index
    %3 = vector.load %arg3[%c0_3, %c0_4] : memref<1x256xf32, #tpu.memory_space<vmem>>, vector<1x256xf32>
    %4 = vector.broadcast %3 : vector<1x256xf32> to vector<168x256xf32>
    %5 = arith.addf %2, %4 : vector<168x256xf32>
    %cst_5 = arith.constant 0.000000e+00 : f32
    %6 = vector.broadcast %cst_5 : f32 to vector<168x256xf32>
    %7 = arith.cmpf oge, %5, %6 : vector<168x256xf32>
    %cst_6 = arith.constant 0.00999999977 : f32
    %8 = vector.broadcast %cst_6 : f32 to vector<168x256xf32>
    %9 = arith.mulf %8, %5 : vector<168x256xf32>
    %10 = arith.select %7, %5, %9 : vector<168x256xi1>, vector<168x256xf32>
    %11 = arith.truncf %10 : vector<168x256xf32> to vector<168x256xbf16>
    %c0_7 = arith.constant 0 : index
    %c0_8 = arith.constant 0 : index
    %12 = vector.load %arg4[%c0_7, %c0_8] : memref<168x256xbf16, #tpu.memory_space<vmem>>, vector<168x256xbf16>
    tpu.vector_store %arg4[%c0_7, %c0_8], %11 {strides = array<i32>} : memref<168x256xbf16, #tpu.memory_space<vmem>>, vector<168x256xbf16>,
    return
  }
  func.func @transform_0(%arg0: i32) -> (i32, i32) {
    %c0_i32 = arith.constant 0 : i32
    %c0_i32_0 = arith.constant 0 : i32
    %c0_i32_1 = arith.constant 0 : i32
    return %c0_i32, %c0_i32_0 : i32, i32
  }
  func.func @transform_1(%arg0: i32) -> (i32, i32) {
    %c0_i32 = arith.constant 0 : i32
    %c0_i32_0 = arith.constant 0 : i32
    %c0_i32_1 = arith.constant 0 : i32
    return %c0_i32, %c0_i32_0 : i32, i32
  }
  func.func @transform_2(%arg0: i32) -> (i32, i32) {
    %c0_i32 = arith.constant 0 : i32
    %c0_i32_0 = arith.constant 0 : i32
    %c0_i32_1 = arith.constant 0 : i32
    return %c0_i32, %c0_i32_0 : i32, i32
  }
  func.func @transform_3(%arg0: i32) -> (i32, i32) {
    %c0_i32 = arith.constant 0 : i32
    %c0_i32_0 = arith.constant 0 : i32
    %c0_i32_1 = arith.constant 0 : i32
    return %c0_i32, %c0_i32_0 : i32, i32
  }
}

</mosaic_0001>

<bundles_post_ra>
// kernel: g1_forward.12
= control target key start
LH: loop header
LB: loop body
LE: loop exit
PB: predicated region body
PF: predicated region fallthrough
CT: control target
= control target key end

     0   :  { %v3790_v0 = vmov 0   ;;  %s7190_s1 = inlined_call_operand.vmem [shape: bf16[256,128], index: 1, kind: input, shape index: {}]   ;;  %s7191_s0 = inlined_call_operand.vmem [shape: bf16[728,256], index: 0, kind: input, shape index: {}]   ;;  %s7192_s2 = inlined_call_operand.vmem [shape: f32[1,128], index: 2, kind: input, shape index: {}]   ;;  %s7193_s3 = inlined_call_operand.vmem [shape: f32[1,128], index: 3, kind: input, shape index: {}]   ;;  %s7194_s4 = inlined_call_operand.vmem [shape: bf16[728,128], index: 4, kind: output, shape index: {}]  }
   0x1   :  { %694 = vmatprep.subr.bf16.mxu0 %v3790_v0  ;;  %v3635_v1 = vld [vmem:[%s7190_s1] sm:$0xff]   ;;  %3601 = vmatprep.subr.bf16.mxu1 %v3790_v0  ;;  %v3636_v2 = vld [vmem:[%s7190_s1 + $0x8] sm:$0xff]   ;;  %v3637_v3 = vld [vmem:[%s7190_s1 + $0x10] sm:$0xff]  }
   0x2   :  { %695 = vmatpush1.bf16.msra.mxu0 %v3635_v1  ;;  %3617 = vmatpush1.bf16.msra.mxu1 %v3635_v1  ;;  %v3638_v4 = vld [vmem:[%s7190_s1 + $0x18] sm:$0xff]   ;;  %v3639_v5 = vld [vmem:[%s7190_s1 + $0x20] sm:$0xff]   ;;  %v3640_v7 = vld [vmem:[%s7190_s1 + $0x28] sm:$0xff]  }
   0x3   :  { %696 = vmatprep.subr.bf16.mxu0 %v3790_v0  ;;  %3602 = vmatprep.subr.bf16.mxu1 %v3790_v0  ;;  %v3653_v6 = vld [vmem:[%s7191_s0 + $0x4] ss:$8 sps:$4 sm:$0xff]   ;;  %v3641_v8 = vld [vmem:[%s7190_s1 + $0x30] sm:$0xff]   ;;  %v3642_v9 = vld [vmem:[%s7190_s1 + $0x38] sm:$0xff]  }
   0x4   :  { %726 = vmatprep.mubr.bf16.mxu0 %v3653_v6  ;;  %v3643_v10 = vld [vmem:[%s7190_s1 + $0x40] sm:$0xff]   ;;  %v3686_v11 = vld [vmem:[%s7191_s0 + $0x174] ss:$8 sps:$4 sm:$0xff]   ;;  %v3644_v12 = vld [vmem:[%s7190_s1 + $0x48] sm:$0xff]  }
   0x5   :  { %910 = vmatprep.mubr.bf16.mxu1 %v3686_v11  ;;  %v3645_v13 = vld [vmem:[%s7190_s1 + $0x50] sm:$0xff]   ;;  %v3646_v14 = vld [vmem:[%s7190_s1 + $0x58] sm:$0xff]   ;;  %v3647_v15 = vld [vmem:[%s7190_s1 + $0x60] sm:$0xff]  }
   0x6   :  { %697 = vmatpush1.bf16.msra.mxu0 %v3636_v2  ;;  %3618 = vmatpush1.bf16.msra.mxu1 %v3636_v2  ;;  %v3648_v16 = vld [vmem:[%s7190_s1 + $0x68] sm:$0xff]   ;;  %v3649_v17 = vld [vmem:[%s7190_s1 + $0x70] sm:$0xff]   ;;  %v3650_v18 = vld [vmem:[%s7190_s1 + $0x78] sm:$0xff]  }
   0x7   :  { %698 = vmatprep.subr.bf16.mxu0 %v3790_v0  ;;  %3603 = vmatprep.subr.bf16.mxu1 %v3790_v0  ;;  %v3651_v19 = vld [vmem:[%s7191_s0] ss:$8 sps:$4 sm:$0xff]   ;;  %v3684_v20 = vld [vmem:[%s7191_s0 + $0x170] ss:$8 sps:$4 sm:$0xff]   ;;  %v3654_v21 = vld [vmem:[%s7191_s0 + $0x14] ss:$8 sps:$4 sm:$0xff]  }
   0x8   :  { %v3690_v22 = vld [vmem:[%s7191_s0 + $0x184] ss:$8 sps:$4 sm:$0xff]   ;;  %v3656_v23 = vld [vmem:[%s7191_s0 + $0x10] ss:$8 sps:$4 sm:$0xff]   ;;  %v3694_v24 = vld [vmem:[%s7191_s0 + $0x180] ss:$8 sps:$4 sm:$0xff]  }
   0x9   :  { %v3657_v25 = vld [vmem:[%s7191_s0 + $0x24] ss:$8 sps:$4 sm:$0xff]   ;;  %v3696_v26 = vld [vmem:[%s7191_s0 + $0x194] ss:$8 sps:$4 sm:$0xff]   ;;  %v3659_v27 = vld [vmem:[%s7191_s0 + $0x20] ss:$8 sps:$4 sm:$0xff]  }
   0xa   :  { %699 = vmatpush1.bf16.msra.mxu0 %v3637_v3  ;;  %3619 = vmatpush1.bf16.msra.mxu1 %v3637_v3  ;;  %v3700_v28 = vld [vmem:[%s7191_s0 + $0x190] ss:$8 sps:$4 sm:$0xff]   ;;  %v3660_v29 = vld [vmem:[%s7191_s0 + $0x34] ss:$8 sps:$4 sm:$0xff]   ;;  %v3702_v30 = vld [vmem:[%s7191_s0 + $0x1a4] ss:$8 sps:$4 sm:$0xff]  }
   0xb   :  { %700 = vmatprep.subr.bf16.mxu0 %v3790_v0  ;;  %3604 = vmatprep.subr.bf16.mxu1 %v3790_v0  ;;  %v3662_v31 = vld [vmem:[%s7191_s0 + $0x30] ss:$8 sps:$4 sm:$0xff]   ;;  %v3706_v32 = vld [vmem:[%s7191_s0 + $0x1a0] ss:$8 sps:$4 sm:$0xff]   ;;  %v3663_v33 = vld [vmem:[%s7191_s0 + $0x44] ss:$8 sps:$4 sm:$0xff]  }
   0xc   :  { %v3708_v34 = vld [vmem:[%s7191_s0 + $0x1b4] ss:$8 sps:$4 sm:$0xff]   ;;  %v3665_v35 = vld [vmem:[%s7191_s0 + $0x40] ss:$8 sps:$4 sm:$0xff]   ;;  %v3712_v36 = vld [vmem:[%s7191_s0 + $0x1b0] ss:$8 sps:$4 sm:$0xff]  }
   0xd   :  { %v3666_v37 = vld [vmem:[%s7191_s0 + $0x54] ss:$8 sps:$4 sm:$0xff]   ;;  %v3714_v38 = vld [vmem:[%s7191_s0 + $0x1c4] ss:$8 sps:$4 sm:$0xff]   ;;  %v3668_v39 = vld [vmem:[%s7191_s0 + $0x50] ss:$8 sps:$4 sm:$0xff]  }
   0xe   :  { %701 = vmatpush1.bf16.msra.mxu0 %v3638_v4  ;;  %3620 = vmatpush1.bf16.msra.mxu1 %v3638_v4  ;;  %v3718_v40 = vld [vmem:[%s7191_s0 + $0x1c0] ss:$8 sps:$4 sm:$0xff]   ;;  %v3669_v41 = vld [vmem:[%s7191_s0 + $0x64] ss:$8 sps:$4 sm:$0xff]   ;;  %v3720_v42 = vld [vmem:[%s7191_s0 + $0x1d4] ss:$8 sps:$4 sm:$0xff]  }
   0xf   :  { %702 = vmatprep.subr.bf16.mxu0 %v3790_v0  ;;  %3605 = vmatprep.subr.bf16.mxu1 %v3790_v0  ;;  %v3671_v43 = vld [vmem:[%s7191_s0 + $0x60] ss:$8 sps:$4 sm:$0xff]   ;;  %v3724_v44 = vld [vmem:[%s7191_s0 + $0x1d0] ss:$8 sps:$4 sm:$0xff]   ;;  %v3672_v45 = vld [vmem:[%s7191_s0 + $0x74] ss:$8 sps:$4 sm:$0xff]  }
  0x10   :  { %v3726_v46 = vld [vmem:[%s7191_s0 + $0x1e4] ss:$8 sps:$4 sm:$0xff]   ;;  %v3674_v47 = vld [vmem:[%s7191_s0 + $0x70] ss:$8 sps:$4 sm:$0xff]   ;;  %v3730_v48 = vld [vmem:[%s7191_s0 + $0x1e0] ss:$8 sps:$4 sm:$0xff]  }
  0x11   :  { %v3675_v49 = vld [vmem:[%s7191_s0 + $0x84] ss:$8 sps:$4 sm:$0xff]   ;;  %v3732_v50 = vld [vmem:[%s7191_s0 + $0x1f4] ss:$8 sps:$4 sm:$0xff]   ;;  %v3677_v51 = vld [vmem:[%s7191_s0 + $0x80] ss:$8 sps:$4 sm:$0xff]  }
  0x12   :  { %703 = vmatpush1.bf16.msra.mxu0 %v3639_v5  ;;  %3621 = vmatpush1.bf16.msra.mxu1 %v3639_v5  ;;  %v3736_v52 = vld [vmem:[%s7191_s0 + $0x1f0] ss:$8 sps:$4 sm:$0xff]   ;;  %v3678_v53 = vld [vmem:[%s7191_s0 + $0x94] ss:$8 sps:$4 sm:$0xff]   ;;  %v3738_v54 = vld [vmem:[%s7191_s0 + $0x204] ss:$8 sps:$4 sm:$0xff]  }
  0x13   :  { %704 = vmatprep.subr.bf16.mxu0 %v3790_v0  ;;  %3606 = vmatprep.subr.bf16.mxu1 %v3790_v0  ;;  %v3680_v55 = vld [vmem:[%s7191_s0 + $0x90] ss:$8 sps:$4 sm:$0xff]   ;;  %v3742_v56 = vld [vmem:[%s7191_s0 + $0x200] ss:$8 sps:$4 sm:$0xff]   ;;  %v3681_v57 = vld [vmem:[%s7191_s0 + $0xa4] ss:$8 sps:$4 sm:$0xff]  }
  0x14   :  { %v3744_v58 = vld [vmem:[%s7191_s0 + $0x214] ss:$8 sps:$4 sm:$0xff]   ;;  %v3683_v59 = vld [vmem:[%s7191_s0 + $0xa0] ss:$8 sps:$4 sm:$0xff]   ;;  %v3748_v60 = vld [vmem:[%s7191_s0 + $0x210] ss:$8 sps:$4 sm:$0xff]  }
  0x15   :  { %v3687_v61 = vld [vmem:[%s7191_s0 + $0xb4] ss:$8 sps:$4 sm:$0xff]   ;;  %v3750_v62 = vld [vmem:[%s7191_s0 + $0x224] ss:$8 sps:$4 sm:$0xff]   ;;  %v3689_v63 = vld [vmem:[%s7191_s0 + $0xb0] ss:$8 sps:$4 sm:$0xff]  }
  0x16   :  { %705 = vmatpush1.bf16.msra.mxu0 %v3640_v7  ;;  %3622 = vmatpush1.bf16.msra.mxu1 %v3640_v7  ;;  %v3692_v1 = vld [vmem:[%s7191_s0 + $0xc4] ss:$8 sps:$4 sm:$0xff]   ;;  %v3756_v2 = vld [vmem:[%s7191_s0 + $0x234] ss:$8 sps:$4 sm:$0xff]   ;;  %v3695_v3 = vld [vmem:[%s7191_s0 + $0xc0] ss:$8 sps:$4 sm:$0xff]  }
  0x17   :  { %706 = vmatprep.subr.bf16.mxu0 %v3790_v0  ;;  %3607 = vmatprep.subr.bf16.mxu1 %v3790_v0  ;;  %v3758_v4 = vld [vmem:[%s7191_s0 + $0x230] ss:$8 sps:$4 sm:$0xff]   ;;  %v3698_v5 = vld [vmem:[%s7191_s0 + $0xd4] ss:$8 sps:$4 sm:$0xff]   ;;  %v3759_v6 = vld [vmem:[%s7191_s0 + $0x244] ss:$8 sps:$4 sm:$0xff]  }
  0x18   :  { %v3701_v7 = vld [vmem:[%s7191_s0 + $0xd0] ss:$8 sps:$4 sm:$0xff]   ;;  %v3707_v11 = vld [vmem:[%s7191_s0 + $0xe0] ss:$8 sps:$4 sm:$0xff]  }
  0x1a   :  { %707 = vmatpush1.bf16.msra.mxu0 %v3641_v8  ;;  %3623 = vmatpush1.bf16.msra.mxu1 %v3641_v8  ;;  %v3761_v8 = vld [vmem:[%s7191_s0 + $0x240] ss:$8 sps:$4 sm:$0xff]  }
  0x1b   :  { %708 = vmatprep.subr.bf16.mxu0 %v3790_v0  ;;  %3608 = vmatprep.subr.bf16.mxu1 %v3790_v0 }
  0x1e   :  { %709 = vmatpush1.bf16.msra.mxu0 %v3642_v9  ;;  %3624 = vmatpush1.bf16.msra.mxu1 %v3642_v9  ;;  %v3704_v9 = vld [vmem:[%s7191_s0 + $0xe4] ss:$8 sps:$4 sm:$0xff]  }
  0x1f   :  { %710 = vmatprep.subr.bf16.mxu0 %v3790_v0  ;;  %3609 = vmatprep.subr.bf16.mxu1 %v3790_v0 }
  0x22   :  { %711 = vmatpush1.bf16.msra.mxu0 %v3643_v10  ;;  %3625 = vmatpush1.bf16.msra.mxu1 %v3643_v10  ;;  %v3762_v10 = vld [vmem:[%s7191_s0 + $0x254] ss:$8 sps:$4 sm:$0xff]  }
  0x23   :  { %712 = vmatprep.subr.bf16.mxu0 %v3790_v0  ;;  %3610 = vmatprep.subr.bf16.mxu1 %v3790_v0 }
  0x26   :  { %713 = vmatpush1.bf16.msra.mxu0 %v3644_v12  ;;  %3626 = vmatpush1.bf16.msra.mxu1 %v3644_v12  ;;  %v3764_v12 = vld [vmem:[%s7191_s0 + $0x250] ss:$8 sps:$4 sm:$0xff]  }
  0x27   :  { %714 = vmatprep.subr.bf16.mxu0 %v3790_v0  ;;  %3611 = vmatprep.subr.bf16.mxu1 %v3790_v0 }
  0x2a   :  { %715 = vmatpush1.bf16.msra.mxu0 %v3645_v13  ;;  %3627 = vmatpush1.bf16.msra.mxu1 %v3645_v13  ;;  %v3710_v13 = vld [vmem:[%s7191_s0 + $0xf4] ss:$8 sps:$4 sm:$0xff]  }
  0x2b   :  { %716 = vmatprep.subr.bf16.mxu0 %v3790_v0  ;;  %3612 = vmatprep.subr.bf16.mxu1 %v3790_v0 }
  0x2e   :  { %717 = vmatpush1.bf16.msra.mxu0 %v3646_v14  ;;  %3628 = vmatpush1.bf16.msra.mxu1 %v3646_v14  ;;  %v3765_v14 = vld [vmem:[%s7191_s0 + $0x264] ss:$8 sps:$4 sm:$0xff]  }
  0x2f   :  { %718 = vmatprep.subr.bf16.mxu0 %v3790_v0  ;;  %3613 = vmatprep.subr.bf16.mxu1 %v3790_v0 }
  0x32   :  { %719 = vmatpush1.bf16.msra.mxu0 %v3647_v15  ;;  %3629 = vmatpush1.bf16.msra.mxu1 %v3647_v15  ;;  %v3713_v15 = vld [vmem:[%s7191_s0 + $0xf0] ss:$8 sps:$4 sm:$0xff]  }
  0x33   :  { %720 = vmatprep.subr.bf16.mxu0 %v3790_v0  ;;  %3614 = vmatprep.subr.bf16.mxu1 %v3790_v0 }
  0x36   :  { %721 = vmatpush1.bf16.msra.mxu0 %v3648_v16  ;;  %3630 = vmatpush1.bf16.msra.mxu1 %v3648_v16  ;;  %v3767_v16 = vld [vmem:[%s7191_s0 + $0x260] ss:$8 sps:$4 sm:$0xff]  }
  0x37   :  { %722 = vmatprep.subr.bf16.mxu0 %v3790_v0  ;;  %3615 = vmatprep.subr.bf16.mxu1 %v3790_v0 }
  0x3a   :  { %723 = vmatpush1.bf16.msra.mxu0 %v3649_v17  ;;  %3631 = vmatpush1.bf16.msra.mxu1 %v3649_v17  ;;  %v3716_v17 = vld [vmem:[%s7191_s0 + $0x104] ss:$8 sps:$4 sm:$0xff]  }
  0x3b   :  { %724 = vmatprep.subr.bf16.mxu0 %v3790_v0  ;;  %3616 = vmatprep.subr.bf16.mxu1 %v3790_v0  ;;  %v3754_v0 = vld [vmem:[%s7191_s0 + $0x220] ss:$8 sps:$4 sm:$0xff]  }
  0x3e   :  { %725 = vmatpush1.bf16.msra.mxu0 %v3650_v18  ;;  %3632 = vmatpush1.bf16.msra.mxu1 %v3650_v18  ;;  %v3768_v18 = vld [vmem:[%s7191_s0 + $0x274] ss:$8 sps:$4 sm:$0xff]  }
  0x41   :  { %727 = vmatmul.mubr.bf16.vlgmr.msra.gmra.mrb[0].mxu0 %v3651_v19  ;;  %911 = vmatmul.mubr.bf16.vlgmr.msra.gmra.mrb[0].mxu1 %v3684_v20  ;;  %v3719_v19 = vld [vmem:[%s7191_s0 + $0x100] ss:$8 sps:$4 sm:$0xff]   ;;  %v3770_v20 = vld [vmem:[%s7191_s0 + $0x270] ss:$8 sps:$4 sm:$0xff]  }
  0x42   :  { %734 = vmatprep.mubr.bf16.mxu0 %v3654_v21  ;;  %918 = vmatprep.mubr.bf16.mxu1 %v3690_v22  ;;  %v3722_v21 = vld [vmem:[%s7191_s0 + $0x114] ss:$8 sps:$4 sm:$0xff]   ;;  %v3771_v22 = vld [vmem:[%s7191_s0 + $0x284] ss:$8 sps:$4 sm:$0xff]  }
  0x49   :  { %735 = vmatmul.mubr.bf16.gmra.mrb[4].mxu0 %v3656_v23  ;;  %919 = vmatmul.mubr.bf16.gmra.mrb[4].mxu1 %v3694_v24  ;;  %v3725_v23 = vld [vmem:[%s7191_s0 + $0x110] ss:$8 sps:$4 sm:$0xff]   ;;  %v3773_v24 = vld [vmem:[%s7191_s0 + $0x280] ss:$8 sps:$4 sm:$0xff]  }
  0x4a   :  { %742 = vmatprep.mubr.bf16.mxu0 %v3657_v25  ;;  %926 = vmatprep.mubr.bf16.mxu1 %v3696_v26  ;;  %v3728_v25 = vld [vmem:[%s7191_s0 + $0x124] ss:$8 sps:$4 sm:$0xff]   ;;  %v3774_v26 = vld [vmem:[%s7191_s0 + $0x294] ss:$8 sps:$4 sm:$0xff]  }
  0x51   :  { %743 = vmatmul.mubr.bf16.gmra.mrb[8].mxu0 %v3659_v27  ;;  %927 = vmatmul.mubr.bf16.gmra.mrb[8].mxu1 %v3700_v28  ;;  %v3731_v27 = vld [vmem:[%s7191_s0 + $0x120] ss:$8 sps:$4 sm:$0xff]   ;;  %v3776_v28 = vld [vmem:[%s7191_s0 + $0x290] ss:$8 sps:$4 sm:$0xff]  }
  0x52   :  { %750 = vmatprep.mubr.bf16.mxu0 %v3660_v29  ;;  %934 = vmatprep.mubr.bf16.mxu1 %v3702_v30  ;;  %v3734_v29 = vld [vmem:[%s7191_s0 + $0x134] ss:$8 sps:$4 sm:$0xff]   ;;  %v3777_v30 = vld [vmem:[%s7191_s0 + $0x2a4] ss:$8 sps:$4 sm:$0xff]  }
  0x59   :  { %751 = vmatmul.mubr.bf16.gmra.mrb[12].mxu0 %v3662_v31  ;;  %935 = vmatmul.mubr.bf16.gmra.mrb[12].mxu1 %v3706_v32  ;;  %v3737_v31 = vld [vmem:[%s7191_s0 + $0x130] ss:$8 sps:$4 sm:$0xff]   ;;  %v3779_v32 = vld [vmem:[%s7191_s0 + $0x2a0] ss:$8 sps:$4 sm:$0xff]  }
  0x5a   :  { %758 = vmatprep.mubr.bf16.mxu0 %v3663_v33  ;;  %942 = vmatprep.mubr.bf16.mxu1 %v3708_v34  ;;  %v3740_v33 = vld [vmem:[%s7191_s0 + $0x144] ss:$8 sps:$4 sm:$0xff]   ;;  %v3780_v34 = vld [vmem:[%s7191_s0 + $0x2b4] ss:$8 sps:$4 sm:$0xff]  }
  0x61   :  { %759 = vmatmul.mubr.bf16.gmra.mrb[16].mxu0 %v3665_v35  ;;  %943 = vmatmul.mubr.bf16.gmra.mrb[16].mxu1 %v3712_v36  ;;  %v3743_v35 = vld [vmem:[%s7191_s0 + $0x140] ss:$8 sps:$4 sm:$0xff]   ;;  %v3782_v36 = vld [vmem:[%s7191_s0 + $0x2b0] ss:$8 sps:$4 sm:$0xff]  }
  0x62   :  { %766 = vmatprep.mubr.bf16.mxu0 %v3666_v37  ;;  %950 = vmatprep.mubr.bf16.mxu1 %v3714_v38  ;;  %v3746_v37 = vld [vmem:[%s7191_s0 + $0x154] ss:$8 sps:$4 sm:$0xff]   ;;  %v3783_v38 = vld [vmem:[%s7191_s0 + $0x2c4] ss:$8 sps:$4 sm:$0xff]  }
  0x69   :  { %767 = vmatmul.mubr.bf16.gmra.mrb[20].mxu0 %v3668_v39  ;;  %951 = vmatmul.mubr.bf16.gmra.mrb[20].mxu1 %v3718_v40  ;;  %v108_v39 = vld [vmem:[%s7191_s0 + $0x2d0] sm:$0xff] }
  0x6a   :  { %774 = vmatprep.mubr.bf16.mxu0 %v3669_v41  ;;  %958 = vmatprep.mubr.bf16.mxu1 %v3720_v42  ;;  %v3749_v40 = vld [vmem:[%s7191_s0 + $0x150] ss:$8 sps:$4 sm:$0xff]   ;;  %v3785_v41 = vld [vmem:[%s7191_s0 + $0x2c0] ss:$8 sps:$4 sm:$0xff]   ;;  %v3752_v42 = vld [vmem:[%s7191_s0 + $0x164] ss:$8 sps:$4 sm:$0xff]  }
  0x71   :  { %775 = vmatmul.mubr.bf16.gmra.mrb[24].mxu0 %v3671_v43  ;;  %959 = vmatmul.mubr.bf16.gmra.mrb[24].mxu1 %v3724_v44  ;;  %v3130_v43 = vcombine.high %v108_v39, %v108_v39  ;;  %v3755_v44 = vld [vmem:[%s7191_s0 + $0x160] ss:$8 sps:$4 sm:$0xff]  }
  0x72   :  { %782 = vmatprep.mubr.bf16.mxu0 %v3672_v45  ;;  %966 = vmatprep.mubr.bf16.mxu1 %v3726_v46  ;;  %v3129_v45 = vcombine.low %v108_v39, %v108_v39 }
  0x79   :  { %783 = vmatmul.mubr.bf16.gmra.mrb[28].mxu0 %v3674_v47  ;;  %967 = vmatmul.mubr.bf16.gmra.mrb[28].mxu1 %v3730_v48 }
  0x7a   :  { %790 = vmatprep.mubr.bf16.mxu0 %v3675_v49  ;;  %974 = vmatprep.mubr.bf16.mxu1 %v3732_v50 }
  0x81   :  { %791 = vmatmul.mubr.bf16.gmra.mrb[32].mxu0 %v3677_v51  ;;  %975 = vmatmul.mubr.bf16.gmra.mrb[32].mxu1 %v3736_v52 }
  0x82   :  { %798 = vmatprep.mubr.bf16.mxu0 %v3678_v53  ;;  %982 = vmatprep.mubr.bf16.mxu1 %v3738_v54 }
  0x89   :  { %799 = vmatmul.mubr.bf16.gmra.mrb[36].mxu0 %v3680_v55  ;;  %983 = vmatmul.mubr.bf16.gmra.mrb[36].mxu1 %v3742_v56 }
  0x8a   :  { %806 = vmatprep.mubr.bf16.mxu0 %v3681_v57  ;;  %990 = vmatprep.mubr.bf16.mxu1 %v3744_v58 }
  0x91   :  { %807 = vmatmul.mubr.bf16.gmra.mrb[40].mxu0 %v3683_v59  ;;  %991 = vmatmul.mubr.bf16.gmra.mrb[40].mxu1 %v3748_v60 }
  0x92   :  { %814 = vmatprep.mubr.bf16.mxu0 %v3687_v61  ;;  %998 = vmatprep.mubr.bf16.mxu1 %v3750_v62 }
  0x99   :  { %815 = vmatmul.mubr.bf16.gmra.mrb[44].mxu0 %v3689_v63  ;;  %999 = vmatmul.mubr.bf16.gmra.mrb[44].mxu1 %v3754_v0 }
  0x9a   :  { %822 = vmatprep.mubr.bf16.mxu0 %v3692_v1  ;;  %1006 = vmatprep.mubr.bf16.mxu1 %v3756_v2 }
  0xa1   :  { %823 = vmatmul.mubr.bf16.gmra.mrb[48].mxu0 %v3695_v3  ;;  %1007 = vmatmul.mubr.bf16.gmra.mrb[48].mxu1 %v3758_v4 }
  0xa2   :  { %830 = vmatprep.mubr.bf16.mxu0 %v3698_v5  ;;  %1014 = vmatprep.mubr.bf16.mxu1 %v3759_v6 }
  0xa9   :  { %831 = vmatmul.mubr.bf16.gmra.mrb[52].mxu0 %v3701_v7  ;;  %1015 = vmatmul.mubr.bf16.gmra.mrb[52].mxu1 %v3761_v8 }
  0xaa   :  { %838 = vmatprep.mubr.bf16.mxu0 %v3704_v9  ;;  %1022 = vmatprep.mubr.bf16.mxu1 %v3762_v10 }
  0xb1   :  { %839 = vmatmul.mubr.bf16.gmra.mrb[56].mxu0 %v3707_v11  ;;  %1023 = vmatmul.mubr.bf16.gmra.mrb[56].mxu1 %v3764_v12 }
  0xb2   :  { %846 = vmatprep.mubr.bf16.mxu0 %v3710_v13  ;;  %1030 = vmatprep.mubr.bf16.mxu1 %v3765_v14 }
  0xb9   :  { %847 = vmatmul.mubr.bf16.gmra.mrb[60].mxu0 %v3713_v15  ;;  %1031 = vmatmul.mubr.bf16.gmra.mrb[60].mxu1 %v3767_v16 }
  0xba   :  { %854 = vmatprep.mubr.bf16.mxu0 %v3716_v17  ;;  %1038 = vmatprep.mubr.bf16.mxu1 %v3768_v18 }
  0xc1   :  { %855 = vmatmul.mubr.bf16.gmra.mrb[64].mxu0 %v3719_v19  ;;  %1039 = vmatmul.mubr.bf16.gmra.mrb[64].mxu1 %v3770_v20 }
  0xc2   :  { %862 = vmatprep.mubr.bf16.mxu0 %v3722_v21  ;;  %1046 = vmatprep.mubr.bf16.mxu1 %v3771_v22 }
  0xc9   :  { %863 = vmatmul.mubr.bf16.gmra.mrb[68].mxu0 %v3725_v23  ;;  %1047 = vmatmul.mubr.bf16.gmra.mrb[68].mxu1 %v3773_v24 }
  0xca   :  { %870 = vmatprep.mubr.bf16.mxu0 %v3728_v25  ;;  %1054 = vmatprep.mubr.bf16.mxu1 %v3774_v26 }
  0xd1   :  { %871 = vmatmul.mubr.bf16.gmra.mrb[72].mxu0 %v3731_v27  ;;  %1055 = vmatmul.mubr.bf16.gmra.mrb[72].mxu1 %v3776_v28 }
  0xd2   :  { %878 = vmatprep.mubr.bf16.mxu0 %v3734_v29  ;;  %1062 = vmatprep.mubr.bf16.mxu1 %v3777_v30 }
  0xd9   :  { %879 = vmatmul.mubr.bf16.gmra.mrb[76].mxu0 %v3737_v31  ;;  %1063 = vmatmul.mubr.bf16.gmra.mrb[76].mxu1 %v3779_v32 }
  0xda   :  { %886 = vmatprep.mubr.bf16.mxu0 %v3740_v33  ;;  %1070 = vmatprep.mubr.bf16.mxu1 %v3780_v34 }
  0xe1   :  { %887 = vmatmul.mubr.bf16.gmra.mrb[80].mxu0 %v3743_v35  ;;  %1071 = vmatmul.mubr.bf16.gmra.mrb[80].mxu1 %v3782_v36 }
  0xe2   :  { %894 = vmatprep.mubr.bf16.mxu0 %v3746_v37  ;;  %1078 = vmatprep.mubr.bf16.mxu1 %v3783_v38 }
  0xe9   :  { %895 = vmatmul.mubr.bf16.gmra.mrb[84].mxu0 %v3749_v40  ;;  %1079 = vmatmul.mubr.bf16.gmra.mrb[84].mxu1 %v3785_v41 }
  0xea   :  { %902 = vmatprep.mubr.bf16.mxu0 %v3752_v42  ;;  %1086 = vmatprep.mubr.bf16.mxu1 %v3130_v43 }
  0xf1   :  { %903 = vmatmul.mubr.bf16.gmra.mrb[88].mxu0 %v3755_v44  ;;  %1087 = vmatmul.mubr.bf16.gmra.mrb[88].mxu1 %v3129_v45 }
 0x114   :  { %v4170_v46 = vpop.f32.mrb[0].mxu0  ;;  %v4172_v47 = vpop.f32.mrb[0].mxu1 }
 0x115   :  { %v730_v48 = vpop.f32.mrb[1].mxu0  ;;  %v914_v49 = vpop.f32.mrb[1].mxu1 }
 0x116   :  { %v4174_v50 = vpop.f32.mrb[2].mxu0  ;;  %v4176_v51 = vpop.f32.mrb[2].mxu1 }
 0x117   :  { %v1550_v52 = vadd.f32 %v4174_v50, %v4170_v46  ;;  %v733_v53 = vpop.f32.mrb[3].mxu0  ;;  %v917_v54 = vpop.f32.mrb[3].mxu1 }
 0x11c   :  { %v4180_v55 = vpop.f32.mrb[4].mxu0  ;;  %v4182_v56 = vpop.f32.mrb[4].mxu1 }
 0x11d   :  { %v1551_v57 = vadd.f32 %v1550_v52, %v4180_v55  ;;  %v738_v58 = vpop.f32.mrb[5].mxu0  ;;  %v922_v59 = vpop.f32.mrb[5].mxu1 }
 0x11e   :  { %v4185_v60 = vpop.f32.mrb[6].mxu0  ;;  %v4187_v61 = vpop.f32.mrb[6].mxu1 }
 0x11f   :  { %v1552_v62 = vadd.f32 %v1551_v57, %v4185_v60  ;;  %v741_v63 = vpop.f32.mrb[7].mxu0  ;;  %v925_v0 = vpop.f32.mrb[7].mxu1 }
 0x124   :  { %v4190_v1 = vpop.f32.mrb[8].mxu0  ;;  %v4192_v2 = vpop.f32.mrb[8].mxu1 }
 0x125   :  { %7360 = vst [vmem:[#allocation2_spill] sm:$0xff] %v4190_v1  ;;  %v1553_v3 = vadd.f32 %v1552_v62, %v4190_v1  ;;  %v746_v4 = vpop.f32.mrb[9].mxu0  ;;  %v930_v5 = vpop.f32.mrb[9].mxu1 }
 0x126   :  { %v4195_v6 = vpop.f32.mrb[10].mxu0  ;;  %v4197_v7 = vpop.f32.mrb[10].mxu1 }
 0x127   :  { %7361 = vst [vmem:[#allocation3_spill] sm:$0xff] %v4195_v6  ;;  %v1554_v8 = vadd.f32 %v1553_v3, %v4195_v6  ;;  %v749_v9 = vpop.f32.mrb[11].mxu0  ;;  %v933_v10 = vpop.f32.mrb[11].mxu1 }
 0x12c   :  { %v4200_v11 = vpop.f32.mrb[12].mxu0  ;;  %v4202_v12 = vpop.f32.mrb[12].mxu1 }
 0x12d   :  { %7362 = vst [vmem:[#allocation4_spill] sm:$0xff] %v4200_v11  ;;  %v1555_v13 = vadd.f32 %v1554_v8, %v4200_v11  ;;  %v754_v14 = vpop.f32.mrb[13].mxu0  ;;  %v938_v15 = vpop.f32.mrb[13].mxu1 }
 0x12e   :  { %v4205_v16 = vpop.f32.mrb[14].mxu0  ;;  %v4207_v17 = vpop.f32.mrb[14].mxu1 }
 0x12f   :  { %7363 = vst [vmem:[#allocation5_spill] sm:$0xff] %v4205_v16  ;;  %v1556_v18 = vadd.f32 %v1555_v13, %v4205_v16  ;;  %v757_v19 = vpop.f32.mrb[15].mxu0  ;;  %v941_v20 = vpop.f32.mrb[15].mxu1 }
 0x134   :  { %v4210_v21 = vpop.f32.mrb[16].mxu0  ;;  %v4212_v22 = vpop.f32.mrb[16].mxu1 }
 0x135   :  { %7364 = vst [vmem:[#allocation6_spill] sm:$0xff] %v4210_v21  ;;  %v1557_v23 = vadd.f32 %v1556_v18, %v4210_v21  ;;  %v762_v24 = vpop.f32.mrb[17].mxu0  ;;  %v946_v25 = vpop.f32.mrb[17].mxu1 }
 0x136   :  { %v4215_v26 = vpop.f32.mrb[18].mxu0  ;;  %v4217_v27 = vpop.f32.mrb[18].mxu1 }
 0x137   :  { %7365 = vst [vmem:[#allocation7_spill] sm:$0xff] %v4215_v26  ;;  %v1558_v28 = vadd.f32 %v1557_v23, %v4215_v26  ;;  %v765_v29 = vpop.f32.mrb[19].mxu0  ;;  %v949_v30 = vpop.f32.mrb[19].mxu1 }
 0x13c   :  { %v4220_v31 = vpop.f32.mrb[20].mxu0  ;;  %v4222_v32 = vpop.f32.mrb[20].mxu1 }
 0x13d   :  { %7366 = vst [vmem:[#allocation8_spill] sm:$0xff] %v4220_v31  ;;  %v1559_v33 = vadd.f32 %v1558_v28, %v4220_v31  ;;  %v770_v34 = vpop.f32.mrb[21].mxu0  ;;  %v954_v35 = vpop.f32.mrb[21].mxu1 }
 0x13e   :  { %v4225_v36 = vpop.f32.mrb[22].mxu0  ;;  %v4227_v37 = vpop.f32.mrb[22].mxu1 }
 0x13f   :  { %7367 = vst [vmem:[#allocation9_spill] sm:$0xff] %v4225_v36  ;;  %v1560_v38 = vadd.f32 %v1559_v33, %v4225_v36  ;;  %v773_v39 = vpop.f32.mrb[23].mxu0  ;;  %v957_v40 = vpop.f32.mrb[23].mxu1 }
 0x144   :  { %v4230_v41 = vpop.f32.mrb[24].mxu0  ;;  %v4232_v42 = vpop.f32.mrb[24].mxu1 }
 0x145   :  { %7368 = vst [vmem:[#allocation10_spill] sm:$0xff] %v4230_v41  ;;  %v1561_v43 = vadd.f32 %v1560_v38, %v4230_v41  ;;  %v778_v44 = vpop.f32.mrb[25].mxu0  ;;  %v962_v45 = vpop.f32.mrb[25].mxu1 }
 0x146   :  { %v4235_v48 = vpop.f32.mrb[26].mxu0  ;;  %v4237_v49 = vpop.f32.mrb[26].mxu1 }
 0x147   :  { %7369 = vst [vmem:[#allocation11_spill] sm:$0xff] %v4235_v48  ;;  %v1562_v52 = vadd.f32 %v1561_v43, %v4235_v48  ;;  %v781_v53 = vpop.f32.mrb[27].mxu0  ;;  %v965_v54 = vpop.f32.mrb[27].mxu1 }
 0x14c   :  { %v4240_v57 = vpop.f32.mrb[28].mxu0  ;;  %v4242_v58 = vpop.f32.mrb[28].mxu1 }
 0x14d   :  { %7370 = vst [vmem:[#allocation12_spill] sm:$0xff] %v4240_v57  ;;  %v1563_v59 = vadd.f32 %v1562_v52, %v4240_v57  ;;  %v786_v62 = vpop.f32.mrb[29].mxu0  ;;  %v970_v63 = vpop.f32.mrb[29].mxu1 }
 0x14e   :  { %v4245_v0 = vpop.f32.mrb[30].mxu0  ;;  %v4247_v3 = vpop.f32.mrb[30].mxu1 }
 0x14f   :  { %7371 = vst [vmem:[#allocation13_spill] sm:$0xff] %v4245_v0  ;;  %v1564_v4 = vadd.f32 %v1563_v59, %v4245_v0  ;;  %v789_v5 = vpop.f32.mrb[31].mxu0  ;;  %v973_v8 = vpop.f32.mrb[31].mxu1 }
 0x154   :  { %v4250_v9 = vpop.f32.mrb[32].mxu0  ;;  %v4252_v10 = vpop.f32.mrb[32].mxu1 }
 0x155   :  { %7372 = vst [vmem:[#allocation14_spill] sm:$0xff] %v4250_v9  ;;  %v1565_v13 = vadd.f32 %v1564_v4, %v4250_v9  ;;  %v794_v14 = vpop.f32.mrb[33].mxu0  ;;  %v978_v15 = vpop.f32.mrb[33].mxu1 }
 0x156   :  { %v4255_v18 = vpop.f32.mrb[34].mxu0  ;;  %v4257_v19 = vpop.f32.mrb[34].mxu1 }
 0x157   :  { %7373 = vst [vmem:[#allocation15_spill] sm:$0xff] %v4255_v18  ;;  %v1566_v20 = vadd.f32 %v1565_v13, %v4255_v18  ;;  %v797_v23 = vpop.f32.mrb[35].mxu0  ;;  %v981_v24 = vpop.f32.mrb[35].mxu1 }
 0x15c   :  { %v4260_v25 = vpop.f32.mrb[36].mxu0  ;;  %v4262_v28 = vpop.f32.mrb[36].mxu1 }
 0x15d   :  { %7374 = vst [vmem:[#allocation16_spill] sm:$0xff] %v4260_v25  ;;  %v1567_v29 = vadd.f32 %v1566_v20, %v4260_v25  ;;  %v802_v30 = vpop.f32.mrb[37].mxu0  ;;  %v986_v33 = vpop.f32.mrb[37].mxu1 }
 0x15e   :  { %v4265_v34 = vpop.f32.mrb[38].mxu0  ;;  %v4267_v35 = vpop.f32.mrb[38].mxu1 }
 0x15f   :  { %7375 = vst [vmem:[#allocation17_spill] sm:$0xff] %v4265_v34  ;;  %v1568_v38 = vadd.f32 %v1567_v29, %v4265_v34  ;;  %v805_v39 = vpop.f32.mrb[39].mxu0  ;;  %v989_v40 = vpop.f32.mrb[39].mxu1 }
 0x164   :  { %v4270_v43 = vpop.f32.mrb[40].mxu0  ;;  %v4272_v44 = vpop.f32.mrb[40].mxu1 }
 0x165   :  { %7376 = vst [vmem:[#allocation18_spill] sm:$0xff] %v4270_v43  ;;  %v1569_v45 = vadd.f32 %v1568_v38, %v4270_v43  ;;  %v810_v52 = vpop.f32.mrb[41].mxu0  ;;  %v994_v53 = vpop.f32.mrb[41].mxu1 }
 0x166   :  { %v4275_v54 = vpop.f32.mrb[42].mxu0  ;;  %v4277_v59 = vpop.f32.mrb[42].mxu1 }
 0x167   :  { %7377 = vst [vmem:[#allocation19_spill] sm:$0xff] %v4275_v54  ;;  %v1570_v62 = vadd.f32 %v1569_v45, %v4275_v54  ;;  %v813_v63 = vpop.f32.mrb[43].mxu0  ;;  %v997_v4 = vpop.f32.mrb[43].mxu1 }
 0x16c   :  { %v4280_v5 = vpop.f32.mrb[44].mxu0  ;;  %v4282_v8 = vpop.f32.mrb[44].mxu1 }
 0x16d   :  { %7378 = vst [vmem:[#allocation20_spill] sm:$0xff] %v4280_v5  ;;  %v1571_v13 = vadd.f32 %v1570_v62, %v4280_v5  ;;  %v818_v14 = vpop.f32.mrb[45].mxu0  ;;  %v1002_v15 = vpop.f32.mrb[45].mxu1 }
 0x16e   :  { %v4285_v20 = vpop.f32.mrb[46].mxu0  ;;  %v4287_v23 = vpop.f32.mrb[46].mxu1 }
 0x16f   :  { %7379 = vst [vmem:[#allocation21_spill] sm:$0xff] %v4285_v20  ;;  %v1572_v24 = vadd.f32 %v1571_v13, %v4285_v20  ;;  %v821_v29 = vpop.f32.mrb[47].mxu0  ;;  %v1005_v30 = vpop.f32.mrb[47].mxu1 }
 0x174   :  { %v4290_v33 = vpop.f32.mrb[48].mxu0  ;;  %v4292_v38 = vpop.f32.mrb[48].mxu1 }
 0x175   :  { %7380 = vst [vmem:[#allocation22_spill] sm:$0xff] %v4290_v33  ;;  %v1573_v39 = vadd.f32 %v1572_v24, %v4290_v33  ;;  %v826_v40 = vpop.f32.mrb[49].mxu0  ;;  %v1010_v45 = vpop.f32.mrb[49].mxu1 }
 0x176   :  { %v4295_v52 = vpop.f32.mrb[50].mxu0  ;;  %v4297_v53 = vpop.f32.mrb[50].mxu1 }
 0x177   :  { %7381 = vst [vmem:[#allocation23_spill] sm:$0xff] %v4295_v52  ;;  %v1574_v62 = vadd.f32 %v1573_v39, %v4295_v52  ;;  %v829_v63 = vpop.f32.mrb[51].mxu0  ;;  %v1013_v4 = vpop.f32.mrb[51].mxu1 }
 0x17c   :  { %v4300_v14 = vpop.f32.mrb[52].mxu0  ;;  %v4302_v13 = vpop.f32.mrb[52].mxu1 }
 0x17d   :  { %7382 = vst [vmem:[#allocation24_spill] sm:$0xff] %v4300_v14  ;;  %v1575_v15 = vadd.f32 %v1574_v62, %v4300_v14  ;;  %v834_v29 = vpop.f32.mrb[53].mxu0  ;;  %v1018_v30 = vpop.f32.mrb[53].mxu1 }
 0x17e   :  { %v4305_v20 = vpop.f32.mrb[54].mxu0  ;;  %v4307_v24 = vpop.f32.mrb[54].mxu1 }
 0x17f   :  { %7383 = vst [vmem:[#allocation25_spill] sm:$0xff] %v4305_v20  ;;  %v1576_v40 = vadd.f32 %v1575_v15, %v4305_v20  ;;  %v837_v45 = vpop.f32.mrb[55].mxu0  ;;  %v1021_v33 = vpop.f32.mrb[55].mxu1 }
 0x184   :  { %v4310_v5 = vpop.f32.mrb[56].mxu0  ;;  %v4312_v39 = vpop.f32.mrb[56].mxu1 }
 0x185   :  { %7384 = vst [vmem:[#allocation26_spill] sm:$0xff] %v4310_v5  ;;  %v1577_v63 = vadd.f32 %v1576_v40, %v4310_v5  ;;  %v842_v4 = vpop.f32.mrb[57].mxu0  ;;  %v1026_v52 = vpop.f32.mrb[57].mxu1 }
 0x186   :  { %v4315_v54 = vpop.f32.mrb[58].mxu0  ;;  %v4317_v62 = vpop.f32.mrb[58].mxu1 }
 0x187   :  { %7385 = vst [vmem:[#allocation27_spill] sm:$0xff] %v4315_v54  ;;  %v1578_v29 = vadd.f32 %v1577_v63, %v4315_v54  ;;  %v845_v30 = vpop.f32.mrb[59].mxu0  ;;  %v1029_v14 = vpop.f32.mrb[59].mxu1 }
 0x18c   :  { %v4320_v43 = vpop.f32.mrb[60].mxu0  ;;  %v4322_v15 = vpop.f32.mrb[60].mxu1 }
 0x18d   :  { %7386 = vst [vmem:[#allocation28_spill] sm:$0xff] %v4320_v43  ;;  %v1579_v33 = vadd.f32 %v1578_v29, %v4320_v43  ;;  %v850_v45 = vpop.f32.mrb[61].mxu0  ;;  %v1034_v20 = vpop.f32.mrb[61].mxu1 }
 0x18e   :  { %v4325_v34 = vpop.f32.mrb[62].mxu0  ;;  %v4327_v40 = vpop.f32.mrb[62].mxu1 }
 0x18f   :  { %7387 = vst [vmem:[#allocation29_spill] sm:$0xff] %v4325_v34  ;;  %v1580_v52 = vadd.f32 %v1579_v33, %v4325_v34  ;;  %v853_v4 = vpop.f32.mrb[63].mxu0  ;;  %v1037_v5 = vpop.f32.mrb[63].mxu1 }
 0x194   :  { %v4330_v25 = vpop.f32.mrb[64].mxu0  ;;  %v4332_v63 = vpop.f32.mrb[64].mxu1 }
 0x195   :  { %7388 = vst [vmem:[#allocation30_spill] sm:$0xff] %v4330_v25  ;;  %v1581_v14 = vadd.f32 %v1580_v52, %v4330_v25  ;;  %v858_v30 = vpop.f32.mrb[65].mxu0  ;;  %v1042_v54 = vpop.f32.mrb[65].mxu1 }
 0x196   :  { %v4335_v18 = vpop.f32.mrb[66].mxu0  ;;  %v4337_v29 = vpop.f32.mrb[66].mxu1 }
 0x197   :  { %7389 = vst [vmem:[#allocation31_spill] sm:$0xff] %v4335_v18  ;;  %v1582_v20 = vadd.f32 %v1581_v14, %v4335_v18  ;;  %v861_v45 = vpop.f32.mrb[67].mxu0  ;;  %v1045_v43 = vpop.f32.mrb[67].mxu1 }
 0x19c   :  { %v4340_v9 = vpop.f32.mrb[68].mxu0  ;;  %v4342_v33 = vpop.f32.mrb[68].mxu1 }
 0x19d   :  { %7390 = vst [vmem:[#allocation32_spill] sm:$0xff] %v4340_v9  ;;  %v1583_v5 = vadd.f32 %v1582_v20, %v4340_v9  ;;  %v866_v4 = vpop.f32.mrb[69].mxu0  ;;  %v1050_v34 = vpop.f32.mrb[69].mxu1 }
 0x19e   :  { %v4345_v0 = vpop.f32.mrb[70].mxu0  ;;  %v4347_v52 = vpop.f32.mrb[70].mxu1 }
 0x19f   :  { %7391 = vst [vmem:[#allocation33_spill] sm:$0xff] %v4345_v0  ;;  %v1584_v54 = vadd.f32 %v1583_v5, %v4345_v0  ;;  %v869_v30 = vpop.f32.mrb[71].mxu0  ;;  %v1053_v25 = vpop.f32.mrb[71].mxu1 }
 0x1a4   :  { %v4350_v57 = vpop.f32.mrb[72].mxu0  ;;  %v4352_v14 = vpop.f32.mrb[72].mxu1 }
 0x1a5   :  { %7392 = vst [vmem:[#allocation34_spill] sm:$0xff] %v4350_v57  ;;  %v1585_v43 = vadd.f32 %v1584_v54, %v4350_v57  ;;  %v874_v45 = vpop.f32.mrb[73].mxu0  ;;  %v1058_v18 = vpop.f32.mrb[73].mxu1 }
 0x1a6   :  { %v4355_v48 = vpop.f32.mrb[74].mxu0  ;;  %v4357_v20 = vpop.f32.mrb[74].mxu1 }
 0x1a7   :  { %7393 = vst [vmem:[#allocation35_spill] sm:$0xff] %v4355_v48  ;;  %v1586_v34 = vadd.f32 %v1585_v43, %v4355_v48  ;;  %v877_v4 = vpop.f32.mrb[75].mxu0  ;;  %v1061_v9 = vpop.f32.mrb[75].mxu1 }
 0x1ac   :  { %v4360_v41 = vpop.f32.mrb[76].mxu0  ;;  %v4362_v5 = vpop.f32.mrb[76].mxu1 }
 0x1ad   :  { %7394 = vst [vmem:[#allocation36_spill] sm:$0xff] %v4360_v41  ;;  %7395 = vst [vmem:[#allocation37_spill] sm:$0xff] %v4362_v5  ;;  %v1587_v25 = vadd.f32 %v1586_v34, %v4360_v41  ;;  %v882_v30 = vpop.f32.mrb[77].mxu0  ;;  %v1066_v0 = vpop.f32.mrb[77].mxu1 }
 0x1ae   :  { %v4365_v36 = vpop.f32.mrb[78].mxu0  ;;  %v4367_v54 = vpop.f32.mrb[78].mxu1 }
 0x1af   :  { %7396 = vst [vmem:[#allocation38_spill] sm:$0xff] %v4365_v36  ;;  %7397 = vst [vmem:[#allocation39_spill] sm:$0xff] %v4367_v54  ;;  %v1588_v18 = vadd.f32 %v1587_v25, %v4365_v36  ;;  %v885_v45 = vpop.f32.mrb[79].mxu0  ;;  %v1069_v57 = vpop.f32.mrb[79].mxu1 }
 0x1b4   :  { %v4370_v31 = vpop.f32.mrb[80].mxu0  ;;  %v4372_v43 = vpop.f32.mrb[80].mxu1 }
 0x1b5   :  { %7398 = vst [vmem:[#allocation40_spill] sm:$0xff] %v4370_v31  ;;  %v1589_v9 = vadd.f32 %v1588_v18, %v4370_v31  ;;  %v890_v4 = vpop.f32.mrb[81].mxu0  ;;  %v1074_v48 = vpop.f32.mrb[81].mxu1 }
 0x1b6   :  { %v4375_v26 = vpop.f32.mrb[82].mxu0  ;;  %v4377_v34 = vpop.f32.mrb[82].mxu1 }
 0x1b7   :  { %7399 = vst [vmem:[#allocation41_spill] sm:$0xff] %v4375_v26  ;;  %v1590_v0 = vadd.f32 %v1589_v9, %v4375_v26  ;;  %v893_v30 = vpop.f32.mrb[83].mxu0  ;;  %v1077_v41 = vpop.f32.mrb[83].mxu1 }
 0x1bc   :  { %v4380_v21 = vpop.f32.mrb[84].mxu0  ;;  %v4382_v25 = vpop.f32.mrb[84].mxu1 }
 0x1bd   :  { %7400 = vst [vmem:[#allocation42_spill] sm:$0xff] %v4380_v21  ;;  %v1591_v57 = vadd.f32 %v1590_v0, %v4380_v21  ;;  %v898_v45 = vpop.f32.mrb[85].mxu0  ;;  %v1082_v36 = vpop.f32.mrb[85].mxu1 }
 0x1be   :  { %v4385_v16 = vpop.f32.mrb[86].mxu0  ;;  %v4387_v18 = vpop.f32.mrb[86].mxu1 }
 0x1bf   :  { %7401 = vst [vmem:[#allocation43_spill] sm:$0xff] %v4385_v16  ;;  %v1592_v48 = vadd.f32 %v1591_v57, %v4385_v16  ;;  %v901_v4 = vpop.f32.mrb[87].mxu0  ;;  %v1085_v31 = vpop.f32.mrb[87].mxu1 }
 0x1c4   :  { %v4390_v11 = vpop.f32.mrb[88].mxu0  ;;  %v4392_v9 = vpop.f32.mrb[88].mxu1 }
 0x1c5   :  { %v1593_v41 = vadd.f32 %v1592_v48, %v4390_v11  ;;  %v906_v30 = vpop.f32.mrb[89].mxu0  ;;  %v1090_v26 = vpop.f32.mrb[89].mxu1 }
 0x1c6   :  { %v4395_v6 = vpop.f32.mrb[90].mxu0  ;;  %v1091_v0 = vpop.f32.mrb[90].mxu1 }
 0x1c7   :  { %v1594_v36 = vadd.f32 %v1593_v41, %v4395_v6  ;;  %v909_v45 = vpop.f32.mrb[91].mxu0  ;;  %v1092_v21 = vpop.f32.mrb[91].mxu1 }
 0x1c9   :  { %v1595_v1 = vadd.f32 %v1594_v36, %v4172_v47 }
 0x1cb   :  { %v1596_v57 = vadd.f32 %v1595_v1, %v4176_v51 }
 0x1cd   :  { %v1597_v31 = vadd.f32 %v1596_v57, %v4182_v56 }
 0x1cf   :  { %v1598_v4 = vadd.f32 %v1597_v31, %v4187_v61 }
 0x1d1   :  { %v1599_v16 = vadd.f32 %v1598_v4, %v4192_v2 }
 0x1d3   :  { %v1600_v48 = vadd.f32 %v1599_v16, %v4197_v7 }
 0x1d5   :  { %v1601_v26 = vadd.f32 %v1600_v48, %v4202_v12 }
 0x1d7   :  { %v1602_v30 = vadd.f32 %v1601_v26, %v4207_v17 }
 0x1d9   :  { %v1603_v41 = vadd.f32 %v1602_v30, %v4212_v22 }
 0x1db   :  { %v1604_v21 = vadd.f32 %v1603_v41, %v4217_v27 }
 0x1dd   :  { %v1605_v0 = vadd.f32 %v1604_v21, %v4222_v32 }
 0x1df   :  { %v1606_v1 = vadd.f32 %v1605_v0, %v4227_v37 }
 0x1e1   :  { %v1607_v36 = vadd.f32 %v1606_v1, %v4232_v42 }
 0x1e3   :  { %v1608_v45 = vadd.f32 %v1607_v36, %v4237_v49 }
 0x1e5   :  { %v1609_v57 = vadd.f32 %v1608_v45, %v4242_v58 }
 0x1e7   :  { %v1610_v16 = vadd.f32 %v1609_v57, %v4247_v3 }
 0x1e9   :  { %v1611_v31 = vadd.f32 %v1610_v16, %v4252_v10 }
 0x1eb   :  { %v1612_v4 = vadd.f32 %v1611_v31, %v4257_v19 }
 0x1ed   :  { %v1613_v48 = vadd.f32 %v1612_v4, %v4262_v28 }
 0x1ef   :  { %v1614_v26 = vadd.f32 %v1613_v48, %v4267_v35 }
 0x1f1   :  { %v1615_v30 = vadd.f32 %v1614_v26, %v4272_v44 }
 0x1f3   :  { %v1616_v41 = vadd.f32 %v1615_v30, %v4277_v59 }
 0x1f5   :  { %v1617_v21 = vadd.f32 %v1616_v41, %v4282_v8  ;;  %v1094_v41 = vlaneseq }
 0x1f7   :  { %v1618_v0 = vadd.f32 %v1617_v21, %v4287_v23 }
 0x1f9   :  { %v1619_v1 = vadd.f32 %v1618_v0, %v4292_v38 }
 0x1fb   :  { %v1620_v36 = vadd.f32 %v1619_v1, %v4297_v53  ;;  %v1095_v1 = vshrl.u32 %v1094_v41, 7 }
 0x1fd   :  { %v1621_v45 = vadd.f32 %v1620_v36, %v4302_v13 }
 0x1ff   :  { %v1622_v57 = vadd.f32 %v1621_v45, %v4307_v24 }
 0x201   :  { %v1623_v16 = vadd.f32 %v1622_v57, %v4312_v39  ;;  %v1185_v57 = vadd.s32 720, %v1095_v1 }
 0x203   :  { %v1624_v31 = vadd.f32 %v1623_v16, %v4317_v62  ;;  %vm1276_vm0 = vcmp.lt.s32.totalorder %v1185_v57, 722 }
 0x205   :  { %v1625_v4 = vadd.f32 %v1624_v31, %v4322_v15 }
 0x207   :  { %v1626_v48 = vadd.f32 %v1625_v4, %v4327_v40 }
 0x209   :  { %v1627_v26 = vadd.f32 %v1626_v48, %v4332_v63  ;;  %v3791_v48 = vmov 0.0  }
 0x20b   :  { %v1628_v30 = vadd.f32 %v1627_v26, %v4337_v29  ;;  %v4439_v26 = vsel %vm1276_vm0, 1.0, %v3791_v48 }
 0x20c   :  { %7402 = vst [vmem:[#allocation44_spill] sm:$0xff] %v4439_v26  ;;  %v1549_v41 = vmul.f32 %v4439_v26, %v4392_v9  ;;  %v7423_v26 = vld [vmem:[#allocation10_spill] sm:$0xff] }
 0x20d   :  { %v1629_v21 = vadd.f32 %v1628_v30, %v4342_v33 }
 0x20f   :  { %v1630_v0 = vadd.f32 %v1629_v21, %v4347_v52 }
 0x211   :  { %v1631_v36 = vadd.f32 %v1630_v0, %v4352_v14 }
 0x213   :  { %v1632_v45 = vadd.f32 %v1631_v36, %v4357_v20 }
 0x215   :  { %v1633_v16 = vadd.f32 %v1632_v45, %v4362_v5 }
 0x217   :  { %v1634_v31 = vadd.f32 %v1633_v16, %v4367_v54 }
 0x219   :  { %v1635_v4 = vadd.f32 %v1634_v31, %v4372_v43 }
 0x21b   :  { %v1636_v30 = vadd.f32 %v1635_v4, %v4377_v34 }
 0x21d   :  { %v1637_v21 = vadd.f32 %v1636_v30, %v4382_v25 }
 0x21f   :  { %v1638_v0 = vadd.f32 %v1637_v21, %v4387_v18 }
 0x221   :  { %v1639_v1 = vadd.f32 %v1638_v0, %v1549_v41  ;;  %v7409_v41 = vld [vmem:[#allocation3_spill] sm:$0xff]  ;;  %v7411_v0 = vld [vmem:[#allocation4_spill] sm:$0xff] }
 0x223   :  { %v1640_v36 = vrot.slane %v1639_v1, 4 }
 0x225   :  { %v1641_v45 = vadd.f32 %v1640_v36, %v1639_v1  ;;  %v7413_v1 = vld [vmem:[#allocation5_spill] sm:$0xff]  ;;  %v7415_v36 = vld [vmem:[#allocation6_spill] sm:$0xff] }
 0x227   :  { %v1642_v5 = vrot.slane %v1641_v45, 2 }
 0x229   :  { %v1643_v16 = vadd.f32 %v1642_v5, %v1641_v45  ;;  %v7407_v5 = vld [vmem:[#allocation2_spill] sm:$0xff]  ;;  %v7417_v45 = vld [vmem:[#allocation7_spill] sm:$0xff] }
 0x22b   :  { %v1644_v57 = vrot.slane %v1643_v16, 1 }
 0x22d   :  { %v1645_v54 = vadd.f32 %v1644_v57, %v1643_v16  ;;  %v7419_v57 = vld [vmem:[#allocation8_spill] sm:$0xff] }
 0x22f   :  { %v4446_v31 = vmul.f32 0.0013850415, %v1645_v54 }
 0x231   :  { %v4450_v48 = vsub.f32 %v4170_v46, %v4446_v31  ;;  %v4454_v4 = vsub.f32 %v4174_v50, %v4446_v31  ;;  %v4458_v30 = vsub.f32 %v4180_v55, %v4446_v31  ;;  %v4462_v21 = vsub.f32 %v4185_v60, %v4446_v31 }
 0x232   :  { %v4466_v54 = vsub.f32 %v7407_v5, %v4446_v31  ;;  %v4470_v46 = vsub.f32 %v7409_v41, %v4446_v31  ;;  %v4474_v50 = vsub.f32 %v7411_v0, %v4446_v31  ;;  %v4478_v55 = vsub.f32 %v7413_v1, %v4446_v31  ;;  %v7421_v41 = vld [vmem:[#allocation9_spill] sm:$0xff] }
 0x233   :  { %7403 = vst [vmem:[#allocation45_spill] sm:$0xff] %v4450_v48  ;;  %7404 = vst [vmem:[#allocation46_spill] sm:$0xff] %v4454_v4  ;;  %v4482_v60 = vsub.f32 %v7415_v36, %v4446_v31  ;;  %v4486_v16 = vsub.f32 %v7417_v45, %v4446_v31  ;;  %v4490_v5 = vsub.f32 %v7419_v57, %v4446_v31 }
 0x234   :  { %7405 = vst [vmem:[#allocation47_spill] sm:$0xff] %v4458_v30  ;;  %7406 = vst [vmem:[#allocation48_spill] sm:$0xff] %v4462_v21  ;;  %v4494_v0 = vsub.f32 %v7421_v41, %v4446_v31  ;;  %v4498_v1 = vsub.f32 %v7423_v26, %v4446_v31 }
 0x235   :  { %7408 = vst [vmem:[#allocation2_spill] sm:$0xff] %v4466_v54  ;;  %7410 = vst [vmem:[#allocation3_spill] sm:$0xff] %v4470_v46 }
 0x236   :  { %7412 = vst [vmem:[#allocation4_spill] sm:$0xff] %v4474_v50  ;;  %7414 = vst [vmem:[#allocation5_spill] sm:$0xff] %v4478_v55  ;;  %v7425_v55 = vld [vmem:[#allocation11_spill] sm:$0xff] }
 0x237   :  { %7416 = vst [vmem:[#allocation6_spill] sm:$0xff] %v4482_v60  ;;  %7418 = vst [vmem:[#allocation7_spill] sm:$0xff] %v4486_v16  ;;  %v4502_v36 = vsub.f32 %v7425_v55, %v4446_v31  ;;  %v7427_v60 = vld [vmem:[#allocation12_spill] sm:$0xff]  ;;  %v7429_v16 = vld [vmem:[#allocation13_spill] sm:$0xff] }
 0x238   :  { %7420 = vst [vmem:[#allocation8_spill] sm:$0xff] %v4490_v5  ;;  %7422 = vst [vmem:[#allocation9_spill] sm:$0xff] %v4494_v0  ;;  %v4506_v45 = vsub.f32 %v7427_v60, %v4446_v31  ;;  %v4510_v57 = vsub.f32 %v7429_v16, %v4446_v31  ;;  %v7431_v5 = vld [vmem:[#allocation14_spill] sm:$0xff]  ;;  %v7433_v0 = vld [vmem:[#allocation15_spill] sm:$0xff] }
 0x239   :  { %7424 = vst [vmem:[#allocation10_spill] sm:$0xff] %v4498_v1  ;;  %7426 = vst [vmem:[#allocation11_spill] sm:$0xff] %v4502_v36  ;;  %v4514_v41 = vsub.f32 %v7431_v5, %v4446_v31  ;;  %v4518_v26 = vsub.f32 %v7433_v0, %v4446_v31  ;;  %v7435_v1 = vld [vmem:[#allocation16_spill] sm:$0xff]  ;;  %v7437_v36 = vld [vmem:[#allocation17_spill] sm:$0xff] }
 0x23a   :  { %7428 = vst [vmem:[#allocation12_spill] sm:$0xff] %v4506_v45  ;;  %7430 = vst [vmem:[#allocation13_spill] sm:$0xff] %v4510_v57  ;;  %v4522_v55 = vsub.f32 %v7435_v1, %v4446_v31  ;;  %v4526_v60 = vsub.f32 %v7437_v36, %v4446_v31  ;;  %v7439_v45 = vld [vmem:[#allocation18_spill] sm:$0xff]  ;;  %v7441_v57 = vld [vmem:[#allocation19_spill] sm:$0xff] }
 0x23b   :  { %7432 = vst [vmem:[#allocation14_spill] sm:$0xff] %v4514_v41  ;;  %7434 = vst [vmem:[#allocation15_spill] sm:$0xff] %v4518_v26  ;;  %v4530_v16 = vsub.f32 %v7439_v45, %v4446_v31  ;;  %v4534_v5 = vsub.f32 %v7441_v57, %v4446_v31  ;;  %v7443_v41 = vld [vmem:[#allocation20_spill] sm:$0xff]  ;;  %v7445_v26 = vld [vmem:[#allocation21_spill] sm:$0xff] }
 0x23c   :  { %7436 = vst [vmem:[#allocation16_spill] sm:$0xff] %v4522_v55  ;;  %7438 = vst [vmem:[#allocation17_spill] sm:$0xff] %v4526_v60  ;;  %v4538_v0 = vsub.f32 %v7443_v41, %v4446_v31  ;;  %v4542_v1 = vsub.f32 %v7445_v26, %v4446_v31  ;;  %v7447_v55 = vld [vmem:[#allocation22_spill] sm:$0xff]  ;;  %v7449_v60 = vld [vmem:[#allocation23_spill] sm:$0xff] }
 0x23d   :  { %7440 = vst [vmem:[#allocation18_spill] sm:$0xff] %v4530_v16  ;;  %7442 = vst [vmem:[#allocation19_spill] sm:$0xff] %v4534_v5  ;;  %v4546_v36 = vsub.f32 %v7447_v55, %v4446_v31  ;;  %v4550_v45 = vsub.f32 %v7449_v60, %v4446_v31  ;;  %v7451_v16 = vld [vmem:[#allocation24_spill] sm:$0xff]  ;;  %v7453_v5 = vld [vmem:[#allocation25_spill] sm:$0xff] }
 0x23e   :  { %7444 = vst [vmem:[#allocation20_spill] sm:$0xff] %v4538_v0  ;;  %7446 = vst [vmem:[#allocation21_spill] sm:$0xff] %v4542_v1  ;;  %v4554_v57 = vsub.f32 %v7451_v16, %v4446_v31  ;;  %v4558_v41 = vsub.f32 %v7453_v5, %v4446_v31  ;;  %v7455_v0 = vld [vmem:[#allocation26_spill] sm:$0xff]  ;;  %v7457_v1 = vld [vmem:[#allocation27_spill] sm:$0xff] }
 0x23f   :  { %7448 = vst [vmem:[#allocation22_spill] sm:$0xff] %v4546_v36  ;;  %7450 = vst [vmem:[#allocation23_spill] sm:$0xff] %v4550_v45  ;;  %v4562_v26 = vsub.f32 %v7455_v0, %v4446_v31  ;;  %v4566_v55 = vsub.f32 %v7457_v1, %v4446_v31  ;;  %v7459_v36 = vld [vmem:[#allocation28_spill] sm:$0xff]  ;;  %v7461_v45 = vld [vmem:[#allocation29_spill] sm:$0xff] }
 0x240   :  { %7452 = vst [vmem:[#allocation24_spill] sm:$0xff] %v4554_v57  ;;  %7454 = vst [vmem:[#allocation25_spill] sm:$0xff] %v4558_v41  ;;  %v4570_v60 = vsub.f32 %v7459_v36, %v4446_v31  ;;  %v4574_v16 = vsub.f32 %v7461_v45, %v4446_v31  ;;  %v7463_v57 = vld [vmem:[#allocation30_spill] sm:$0xff]  ;;  %v7465_v41 = vld [vmem:[#allocation31_spill] sm:$0xff] }
 0x241   :  { %7456 = vst [vmem:[#allocation26_spill] sm:$0xff] %v4562_v26  ;;  %7458 = vst [vmem:[#allocation27_spill] sm:$0xff] %v4566_v55  ;;  %v4578_v5 = vsub.f32 %v7463_v57, %v4446_v31  ;;  %v4582_v0 = vsub.f32 %v7465_v41, %v4446_v31  ;;  %v7467_v26 = vld [vmem:[#allocation32_spill] sm:$0xff]  ;;  %v7469_v55 = vld [vmem:[#allocation33_spill] sm:$0xff] }
 0x242   :  { %7460 = vst [vmem:[#allocation28_spill] sm:$0xff] %v4570_v60  ;;  %7462 = vst [vmem:[#allocation29_spill] sm:$0xff] %v4574_v16  ;;  %v4586_v1 = vsub.f32 %v7467_v26, %v4446_v31  ;;  %v4590_v36 = vsub.f32 %v7469_v55, %v4446_v31  ;;  %v7471_v60 = vld [vmem:[#allocation34_spill] sm:$0xff]  ;;  %v7473_v16 = vld [vmem:[#allocation35_spill] sm:$0xff] }
 0x243   :  { %7464 = vst [vmem:[#allocation30_spill] sm:$0xff] %v4578_v5  ;;  %7466 = vst [vmem:[#allocation31_spill] sm:$0xff] %v4582_v0  ;;  %v4594_v45 = vsub.f32 %v7471_v60, %v4446_v31  ;;  %v4598_v57 = vsub.f32 %v7473_v16, %v4446_v31  ;;  %v7475_v5 = vld [vmem:[#allocation36_spill] sm:$0xff]  ;;  %v7476_v0 = vld [vmem:[#allocation38_spill] sm:$0xff] }
 0x244   :  { %7468 = vst [vmem:[#allocation32_spill] sm:$0xff] %v4586_v1  ;;  %7470 = vst [vmem:[#allocation33_spill] sm:$0xff] %v4590_v36  ;;  %v4602_v41 = vsub.f32 %v7475_v5, %v4446_v31  ;;  %v4606_v26 = vsub.f32 %v7476_v0, %v4446_v31  ;;  %v7477_v1 = vld [vmem:[#allocation40_spill] sm:$0xff]  ;;  %v7478_v36 = vld [vmem:[#allocation41_spill] sm:$0xff]  ;;  %v4626_v0 = vsub.f32 %v4390_v11, %v4446_v31 }
 0x245   :  { %7472 = vst [vmem:[#allocation34_spill] sm:$0xff] %v4594_v45  ;;  %7474 = vst [vmem:[#allocation35_spill] sm:$0xff] %v4598_v57  ;;  %v4610_v55 = vsub.f32 %v7477_v1, %v4446_v31  ;;  %v4614_v60 = vsub.f32 %v7478_v36, %v4446_v31  ;;  %v7479_v45 = vld [vmem:[#allocation42_spill] sm:$0xff]  ;;  %v7480_v57 = vld [vmem:[#allocation43_spill] sm:$0xff]  ;;  %v4630_v1 = vsub.f32 %v4395_v6, %v4446_v31 }
 0x246   :  { %v4618_v16 = vsub.f32 %v7479_v45, %v4446_v31  ;;  %v4622_v5 = vsub.f32 %v7480_v57, %v4446_v31  ;;  %v4634_v36 = vsub.f32 %v4172_v47, %v4446_v31  ;;  %v4638_v45 = vsub.f32 %v4176_v51, %v4446_v31 }
 0x247   :  { %v4642_v57 = vsub.f32 %v4182_v56, %v4446_v31  ;;  %v4646_v11 = vsub.f32 %v4187_v61, %v4446_v31  ;;  %v4650_v6 = vsub.f32 %v4192_v2, %v4446_v31  ;;  %v4654_v47 = vsub.f32 %v4197_v7, %v4446_v31 }
 0x248   :  { %v4658_v51 = vsub.f32 %v4202_v12, %v4446_v31  ;;  %v4662_v56 = vsub.f32 %v4207_v17, %v4446_v31  ;;  %v4666_v61 = vsub.f32 %v4212_v22, %v4446_v31  ;;  %v4670_v2 = vsub.f32 %v4217_v27, %v4446_v31 }
 0x249   :  { %v4674_v7 = vsub.f32 %v4222_v32, %v4446_v31  ;;  %v4678_v12 = vsub.f32 %v4227_v37, %v4446_v31  ;;  %v4682_v17 = vsub.f32 %v4232_v42, %v4446_v31  ;;  %v4686_v22 = vsub.f32 %v4237_v49, %v4446_v31 }
 0x24a   :  { %v4690_v27 = vsub.f32 %v4242_v58, %v4446_v31  ;;  %v4694_v32 = vsub.f32 %v4247_v3, %v4446_v31  ;;  %v4698_v37 = vsub.f32 %v4252_v10, %v4446_v31  ;;  %v4702_v42 = vsub.f32 %v4257_v19, %v4446_v31 }
 0x24b   :  { %v4706_v49 = vsub.f32 %v4262_v28, %v4446_v31  ;;  %v4710_v58 = vsub.f32 %v4267_v35, %v4446_v31  ;;  %v4714_v3 = vsub.f32 %v4272_v44, %v4446_v31  ;;  %v4718_v10 = vsub.f32 %v4277_v59, %v4446_v31 }
 0x24c   :  { %v4722_v19 = vsub.f32 %v4282_v8, %v4446_v31  ;;  %v4726_v28 = vsub.f32 %v4287_v23, %v4446_v31  ;;  %v4730_v35 = vsub.f32 %v4292_v38, %v4446_v31  ;;  %v4734_v44 = vsub.f32 %v4297_v53, %v4446_v31 }
 0x24d   :  { %7481 = vst [vmem:[#allocation36_spill] sm:$0xff] %v4710_v58  ;;  %7482 = vst [vmem:[#allocation38_spill] sm:$0xff] %v4714_v3  ;;  %v4738_v59 = vsub.f32 %v4302_v13, %v4446_v31  ;;  %v4742_v8 = vsub.f32 %v4307_v24, %v4446_v31  ;;  %v4746_v23 = vsub.f32 %v4312_v39, %v4446_v31 }
 0x24e   :  { %7483 = vst [vmem:[#allocation40_spill] sm:$0xff] %v4718_v10  ;;  %7484 = vst [vmem:[#allocation41_spill] sm:$0xff] %v4722_v19  ;;  %v4750_v38 = vsub.f32 %v4317_v62, %v4446_v31  ;;  %v4754_v53 = vsub.f32 %v4322_v15, %v4446_v31  ;;  %v4758_v13 = vsub.f32 %v4327_v40, %v4446_v31 }
 0x24f   :  { %7485 = vst [vmem:[#allocation42_spill] sm:$0xff] %v4726_v28  ;;  %7486 = vst [vmem:[#allocation43_spill] sm:$0xff] %v4730_v35  ;;  %v4762_v24 = vsub.f32 %v4332_v63, %v4446_v31  ;;  %v4766_v39 = vsub.f32 %v4337_v29, %v4446_v31  ;;  %v4770_v62 = vsub.f32 %v4342_v33, %v4446_v31 }
 0x250   :  { %7487 = vst [vmem:[#allocation49_spill] sm:$0xff] %v4734_v44  ;;  %7488 = vst [vmem:[#allocation50_spill] sm:$0xff] %v4738_v59  ;;  %v4774_v15 = vsub.f32 %v4347_v52, %v4446_v31  ;;  %v4778_v40 = vsub.f32 %v4352_v14, %v4446_v31  ;;  %v4782_v63 = vsub.f32 %v4357_v20, %v4446_v31 }
 0x251   :  { %7489 = vst [vmem:[#allocation51_spill] sm:$0xff] %v4742_v8  ;;  %7490 = vst [vmem:[#allocation52_spill] sm:$0xff] %v4746_v23  ;;  %v4794_v52 = vsub.f32 %v4372_v43, %v4446_v31  ;;  %v4798_v14 = vsub.f32 %v4377_v34, %v4446_v31  ;;  %v4802_v20 = vsub.f32 %v4382_v25, %v4446_v31 }
 0x252   :  { %7491 = vst [vmem:[#allocation53_spill] sm:$0xff] %v4750_v38  ;;  %7492 = vst [vmem:[#allocation54_spill] sm:$0xff] %v4754_v53  ;;  %v1738_v43 = vmul.f32 %v4450_v48, %v4450_v48  ;;  %v1740_v34 = vmul.f32 %v4458_v30, %v4458_v30  ;;  %v1741_v25 = vmul.f32 %v4462_v21, %v4462_v21 }
 0x253   :  { %7493 = vst [vmem:[#allocation55_spill] sm:$0xff] %v4758_v13  ;;  %7494 = vst [vmem:[#allocation56_spill] sm:$0xff] %v4762_v24  ;;  %v7496_v24 = vld [vmem:[#allocation37_spill] sm:$0xff]  ;;  %v1744_v48 = vmul.f32 %v4474_v50, %v4474_v50 }
 0x254   :  { %7495 = vst [vmem:[#allocation57_spill] sm:$0xff] %v4766_v39  ;;  %v4786_v29 = vsub.f32 %v7496_v24, %v4446_v31  ;;  %v7497_v39 = vld [vmem:[#allocation39_spill] sm:$0xff]  ;;  %7498 = vst [vmem:[#allocation37_spill] sm:$0xff] %v4794_v52  ;;  %v4806_v24 = vsub.f32 %v4387_v18, %v4446_v31  ;;  %v1739_v52 = vmul.f32 %v4454_v4, %v4454_v4 }
 0x255   :  { %v4790_v33 = vsub.f32 %v7497_v39, %v4446_v31  ;;  %7499 = vst [vmem:[#allocation39_spill] sm:$0xff] %v4798_v14  ;;  %7500 = vst [vmem:[#allocation58_spill] sm:$0xff] %v4802_v20  ;;  %v4810_v39 = vsub.f32 %v4392_v9, %v4446_v31  ;;  %v1742_v18 = vmul.f32 %v4466_v54, %v4466_v54 }
 0x256   :  { %7501 = vst [vmem:[#allocation59_spill] sm:$0xff] %v4806_v24  ;;  %v1920_v14 = vadd.f32 %v1739_v52, %v1738_v43  ;;  %v1743_v9 = vmul.f32 %v4470_v46, %v4470_v46  ;;  %v7504_v43 = vld [vmem:[#allocation6_spill] sm:$0xff] }
 0x257   :  { %7502 = vst [vmem:[#allocation60_spill] sm:$0xff] %v4810_v39  ;;  %v7503_v39 = vld [vmem:[#allocation5_spill] sm:$0xff]  ;;  %v1746_v21 = vmul.f32 %v7504_v43, %v7504_v43 }
 0x258   :  { %v1921_v20 = vadd.f32 %v1920_v14, %v1740_v34  ;;  %v1745_v30 = vmul.f32 %v7503_v39, %v7503_v39  ;;  %v7505_v34 = vld [vmem:[#allocation7_spill] sm:$0xff] }
 0x259   :  { %v1747_v54 = vmul.f32 %v7505_v34, %v7505_v34 }
 0x25a   :  { %v1922_v24 = vadd.f32 %v1921_v20, %v1741_v25  ;;  %v7506_v25 = vld [vmem:[#allocation8_spill] sm:$0xff] }
 0x25b   :  { %v1748_v46 = vmul.f32 %v7506_v25, %v7506_v25 }
 0x25c   :  { %v1923_v31 = vadd.f32 %v1922_v24, %v1742_v18  ;;  %v7507_v18 = vld [vmem:[#allocation9_spill] sm:$0xff] }
 0x25d   :  { %v1749_v50 = vmul.f32 %v7507_v18, %v7507_v18 }
 0x25e   :  { %v1924_v4 = vadd.f32 %v1923_v31, %v1743_v9  ;;  %v7508_v31 = vld [vmem:[#allocation10_spill] sm:$0xff] }
 0x25f   :  { %v1750_v39 = vmul.f32 %v7508_v31, %v7508_v31 }
 0x260   :  { %v1925_v52 = vadd.f32 %v1924_v4, %v1744_v48  ;;  %v7509_v4 = vld [vmem:[#allocation11_spill] sm:$0xff] }
 0x261   :  { %v1751_v43 = vmul.f32 %v7509_v4, %v7509_v4 }
 0x262   :  { %v1926_v14 = vadd.f32 %v1925_v52, %v1745_v30  ;;  %v7510_v52 = vld [vmem:[#allocation12_spill] sm:$0xff] }
 0x263   :  { %v1752_v34 = vmul.f32 %v7510_v52, %v7510_v52 }
 0x264   :  { %v1927_v20 = vadd.f32 %v1926_v14, %v1746_v21  ;;  %v7511_v14 = vld [vmem:[#allocation13_spill] sm:$0xff] }
 0x265   :  { %v1753_v25 = vmul.f32 %v7511_v14, %v7511_v14 }
 0x266   :  { %v1928_v24 = vadd.f32 %v1927_v20, %v1747_v54  ;;  %v7512_v20 = vld [vmem:[#allocation14_spill] sm:$0xff] }
 0x267   :  { %v1754_v18 = vmul.f32 %v7512_v20, %v7512_v20 }
 0x268   :  { %v1929_v9 = vadd.f32 %v1928_v24, %v1748_v46  ;;  %v7513_v24 = vld [vmem:[#allocation15_spill] sm:$0xff] }
 0x269   :  { %v1755_v31 = vmul.f32 %v7513_v24, %v7513_v24 }
 0x26a   :  { %v1930_v48 = vadd.f32 %v1929_v9, %v1749_v50  ;;  %v7514_v9 = vld [vmem:[#allocation16_spill] sm:$0xff] }
 0x26b   :  { %v1756_v4 = vmul.f32 %v7514_v9, %v7514_v9 }
 0x26c   :  { %v1931_v30 = vadd.f32 %v1930_v48, %v1750_v39  ;;  %v7515_v48 = vld [vmem:[#allocation17_spill] sm:$0xff] }
 0x26d   :  { %v1757_v52 = vmul.f32 %v7515_v48, %v7515_v48 }
 0x26e   :  { %v1932_v21 = vadd.f32 %v1931_v30, %v1751_v43  ;;  %v7516_v30 = vld [vmem:[#allocation18_spill] sm:$0xff] }
 0x26f   :  { %v1758_v14 = vmul.f32 %v7516_v30, %v7516_v30 }
 0x270   :  { %v1933_v54 = vadd.f32 %v1932_v21, %v1752_v34  ;;  %v7517_v21 = vld [vmem:[#allocation19_spill] sm:$0xff] }
 0x271   :  { %v1759_v20 = vmul.f32 %v7517_v21, %v7517_v21 }
 0x272   :  { %v1934_v46 = vadd.f32 %v1933_v54, %v1753_v25  ;;  %v7518_v54 = vld [vmem:[#allocation20_spill] sm:$0xff] }
 0x273   :  { %v1760_v24 = vmul.f32 %v7518_v54, %v7518_v54 }
 0x274   :  { %v1935_v50 = vadd.f32 %v1934_v46, %v1754_v18  ;;  %v7519_v46 = vld [vmem:[#allocation21_spill] sm:$0xff] }
 0x275   :  { %v1761_v9 = vmul.f32 %v7519_v46, %v7519_v46 }
 0x276   :  { %v1936_v39 = vadd.f32 %v1935_v50, %v1755_v31  ;;  %v7520_v50 = vld [vmem:[#allocation22_spill] sm:$0xff] }
 0x277   :  { %v1762_v48 = vmul.f32 %v7520_v50, %v7520_v50 }
 0x278   :  { %v1937_v43 = vadd.f32 %v1936_v39, %v1756_v4  ;;  %v7521_v39 = vld [vmem:[#allocation23_spill] sm:$0xff] }
 0x279   :  { %v1763_v30 = vmul.f32 %v7521_v39, %v7521_v39 }
 0x27a   :  { %v1938_v34 = vadd.f32 %v1937_v43, %v1757_v52  ;;  %v7522_v43 = vld [vmem:[#allocation24_spill] sm:$0xff] }
 0x27b   :  { %v1764_v21 = vmul.f32 %v7522_v43, %v7522_v43 }
 0x27c   :  { %v1939_v25 = vadd.f32 %v1938_v34, %v1758_v14  ;;  %v7523_v34 = vld [vmem:[#allocation25_spill] sm:$0xff] }
 0x27d   :  { %v1765_v54 = vmul.f32 %v7523_v34, %v7523_v34 }
 0x27e   :  { %v1940_v18 = vadd.f32 %v1939_v25, %v1759_v20  ;;  %v7524_v25 = vld [vmem:[#allocation26_spill] sm:$0xff] }
 0x27f   :  { %v1766_v46 = vmul.f32 %v7524_v25, %v7524_v25 }
 0x280   :  { %v1941_v31 = vadd.f32 %v1940_v18, %v1760_v24  ;;  %v7525_v18 = vld [vmem:[#allocation27_spill] sm:$0xff] }
 0x281   :  { %v1767_v50 = vmul.f32 %v7525_v18, %v7525_v18 }
 0x282   :  { %v1942_v4 = vadd.f32 %v1941_v31, %v1761_v9  ;;  %v7526_v31 = vld [vmem:[#allocation28_spill] sm:$0xff] }
 0x283   :  { %v1768_v39 = vmul.f32 %v7526_v31, %v7526_v31 }
 0x284   :  { %v1943_v52 = vadd.f32 %v1942_v4, %v1762_v48  ;;  %v7527_v4 = vld [vmem:[#allocation29_spill] sm:$0xff] }
 0x285   :  { %v1769_v43 = vmul.f32 %v7527_v4, %v7527_v4 }
 0x286   :  { %v1944_v14 = vadd.f32 %v1943_v52, %v1763_v30  ;;  %v7528_v52 = vld [vmem:[#allocation30_spill] sm:$0xff] }
 0x287   :  { %v1770_v34 = vmul.f32 %v7528_v52, %v7528_v52 }
 0x288   :  { %v1945_v20 = vadd.f32 %v1944_v14, %v1764_v21  ;;  %v7529_v14 = vld [vmem:[#allocation31_spill] sm:$0xff] }
 0x289   :  { %v1771_v25 = vmul.f32 %v7529_v14, %v7529_v14 }
 0x28a   :  { %v1946_v24 = vadd.f32 %v1945_v20, %v1765_v54  ;;  %v7530_v20 = vld [vmem:[#allocation32_spill] sm:$0xff] }
 0x28b   :  { %v1772_v18 = vmul.f32 %v7530_v20, %v7530_v20 }
 0x28c   :  { %v1947_v9 = vadd.f32 %v1946_v24, %v1766_v46  ;;  %v7531_v24 = vld [vmem:[#allocation33_spill] sm:$0xff] }
 0x28d   :  { %v1773_v31 = vmul.f32 %v7531_v24, %v7531_v24 }
 0x28e   :  { %v1948_v48 = vadd.f32 %v1947_v9, %v1767_v50  ;;  %v7532_v9 = vld [vmem:[#allocation34_spill] sm:$0xff] }
 0x28f   :  { %v1774_v4 = vmul.f32 %v7532_v9, %v7532_v9 }
 0x290   :  { %v1949_v30 = vadd.f32 %v1948_v48, %v1768_v39  ;;  %v7533_v48 = vld [vmem:[#allocation35_spill] sm:$0xff] }
 0x291   :  { %v1775_v52 = vmul.f32 %v7533_v48, %v7533_v48 }
 0x292   :  { %v1950_v21 = vadd.f32 %v1949_v30, %v1769_v43  ;;  %v1776_v30 = vmul.f32 %v4602_v41, %v4602_v41 }
 0x294   :  { %v1951_v54 = vadd.f32 %v1950_v21, %v1770_v34  ;;  %v1777_v21 = vmul.f32 %v4606_v26, %v4606_v26 }
 0x296   :  { %v1952_v46 = vadd.f32 %v1951_v54, %v1771_v25  ;;  %v1778_v54 = vmul.f32 %v4610_v55, %v4610_v55 }
 0x298   :  { %v1953_v50 = vadd.f32 %v1952_v46, %v1772_v18  ;;  %v1779_v46 = vmul.f32 %v4614_v60, %v4614_v60 }
 0x29a   :  { %v1954_v39 = vadd.f32 %v1953_v50, %v1773_v31  ;;  %v1780_v50 = vmul.f32 %v4618_v16, %v4618_v16 }
 0x29c   :  { %v1955_v43 = vadd.f32 %v1954_v39, %v1774_v4  ;;  %v1781_v39 = vmul.f32 %v4622_v5, %v4622_v5 }
 0x29e   :  { %v1956_v34 = vadd.f32 %v1955_v43, %v1775_v52  ;;  %v1782_v43 = vmul.f32 %v4626_v0, %v4626_v0 }
 0x2a0   :  { %v1957_v25 = vadd.f32 %v1956_v34, %v1776_v30  ;;  %v1783_v34 = vmul.f32 %v4630_v1, %v4630_v1 }
 0x2a2   :  { %v1958_v18 = vadd.f32 %v1957_v25, %v1777_v21  ;;  %v1784_v25 = vmul.f32 %v4634_v36, %v4634_v36 }
 0x2a4   :  { %v1959_v31 = vadd.f32 %v1958_v18, %v1778_v54  ;;  %v1785_v18 = vmul.f32 %v4638_v45, %v4638_v45 }
 0x2a6   :  { %v1960_v4 = vadd.f32 %v1959_v31, %v1779_v46  ;;  %v1786_v31 = vmul.f32 %v4642_v57, %v4642_v57 }
 0x2a8   :  { %v1961_v52 = vadd.f32 %v1960_v4, %v1780_v50  ;;  %v1787_v4 = vmul.f32 %v4646_v11, %v4646_v11 }
 0x2aa   :  { %v1962_v30 = vadd.f32 %v1961_v52, %v1781_v39  ;;  %v1788_v52 = vmul.f32 %v4650_v6, %v4650_v6 }
 0x2ac   :  { %v1963_v21 = vadd.f32 %v1962_v30, %v1782_v43  ;;  %v1789_v30 = vmul.f32 %v4654_v47, %v4654_v47 }
 0x2ae   :  { %v1964_v54 = vadd.f32 %v1963_v21, %v1783_v34  ;;  %v1790_v21 = vmul.f32 %v4658_v51, %v4658_v51 }
 0x2b0   :  { %v1965_v46 = vadd.f32 %v1964_v54, %v1784_v25  ;;  %v1791_v54 = vmul.f32 %v4662_v56, %v4662_v56 }
 0x2b2   :  { %v1966_v50 = vadd.f32 %v1965_v46, %v1785_v18  ;;  %v1792_v46 = vmul.f32 %v4666_v61, %v4666_v61 }
 0x2b4   :  { %v1967_v39 = vadd.f32 %v1966_v50, %v1786_v31  ;;  %v1793_v50 = vmul.f32 %v4670_v2, %v4670_v2 }
 0x2b6   :  { %v1968_v43 = vadd.f32 %v1967_v39, %v1787_v4  ;;  %v1794_v39 = vmul.f32 %v4674_v7, %v4674_v7 }
 0x2b8   :  { %v1969_v34 = vadd.f32 %v1968_v43, %v1788_v52  ;;  %v1795_v43 = vmul.f32 %v4678_v12, %v4678_v12 }
 0x2ba   :  { %v1970_v25 = vadd.f32 %v1969_v34, %v1789_v30  ;;  %v1796_v34 = vmul.f32 %v4682_v17, %v4682_v17 }
 0x2bc   :  { %v1971_v18 = vadd.f32 %v1970_v25, %v1790_v21  ;;  %v1797_v25 = vmul.f32 %v4686_v22, %v4686_v22 }
 0x2be   :  { %v1972_v31 = vadd.f32 %v1971_v18, %v1791_v54  ;;  %v1798_v18 = vmul.f32 %v4690_v27, %v4690_v27 }
 0x2c0   :  { %v1973_v4 = vadd.f32 %v1972_v31, %v1792_v46  ;;  %v1799_v31 = vmul.f32 %v4694_v32, %v4694_v32 }
 0x2c2   :  { %v1974_v52 = vadd.f32 %v1973_v4, %v1793_v50  ;;  %v1800_v4 = vmul.f32 %v4698_v37, %v4698_v37 }
 0x2c4   :  { %v1975_v30 = vadd.f32 %v1974_v52, %v1794_v39  ;;  %v1801_v52 = vmul.f32 %v4702_v42, %v4702_v42 }
 0x2c6   :  { %v1976_v21 = vadd.f32 %v1975_v30, %v1795_v43  ;;  %v1802_v30 = vmul.f32 %v4706_v49, %v4706_v49 }
 0x2c8   :  { %v1977_v54 = vadd.f32 %v1976_v21, %v1796_v34  ;;  %v1803_v21 = vmul.f32 %v4710_v58, %v4710_v58 }
 0x2ca   :  { %v1978_v46 = vadd.f32 %v1977_v54, %v1797_v25  ;;  %v1804_v54 = vmul.f32 %v4714_v3, %v4714_v3 }
 0x2cc   :  { %v1979_v50 = vadd.f32 %v1978_v46, %v1798_v18  ;;  %v1805_v46 = vmul.f32 %v4718_v10, %v4718_v10 }
 0x2ce   :  { %v1980_v39 = vadd.f32 %v1979_v50, %v1799_v31  ;;  %v1806_v50 = vmul.f32 %v4722_v19, %v4722_v19 }
 0x2d0   :  { %v1981_v43 = vadd.f32 %v1980_v39, %v1800_v4  ;;  %v1807_v39 = vmul.f32 %v4726_v28, %v4726_v28 }
 0x2d2   :  { %v1982_v34 = vadd.f32 %v1981_v43, %v1801_v52  ;;  %v1808_v43 = vmul.f32 %v4730_v35, %v4730_v35 }
 0x2d4   :  { %v1983_v25 = vadd.f32 %v1982_v34, %v1802_v30  ;;  %v1809_v34 = vmul.f32 %v4734_v44, %v4734_v44 }
 0x2d6   :  { %v1984_v18 = vadd.f32 %v1983_v25, %v1803_v21  ;;  %v1810_v25 = vmul.f32 %v4738_v59, %v4738_v59 }
 0x2d8   :  { %v1985_v31 = vadd.f32 %v1984_v18, %v1804_v54  ;;  %v1811_v18 = vmul.f32 %v4742_v8, %v4742_v8 }
 0x2da   :  { %v1986_v4 = vadd.f32 %v1985_v31, %v1805_v46  ;;  %v1812_v31 = vmul.f32 %v4746_v23, %v4746_v23 }
 0x2dc   :  { %v1987_v52 = vadd.f32 %v1986_v4, %v1806_v50  ;;  %v1813_v4 = vmul.f32 %v4750_v38, %v4750_v38 }
 0x2de   :  { %v1988_v30 = vadd.f32 %v1987_v52, %v1807_v39  ;;  %v1814_v52 = vmul.f32 %v4754_v53, %v4754_v53 }
 0x2e0   :  { %v1989_v21 = vadd.f32 %v1988_v30, %v1808_v43  ;;  %v1815_v30 = vmul.f32 %v4758_v13, %v4758_v13 }
 0x2e2   :  { %v1990_v54 = vadd.f32 %v1989_v21, %v1809_v34  ;;  %v7534_v21 = vld [vmem:[#allocation56_spill] sm:$0xff] }
 0x2e3   :  { %v1816_v8 = vmul.f32 %v7534_v21, %v7534_v21 }
 0x2e4   :  { %v1991_v46 = vadd.f32 %v1990_v54, %v1810_v25  ;;  %v7535_v54 = vld [vmem:[#allocation57_spill] sm:$0xff] }
 0x2e5   :  { %v1817_v23 = vmul.f32 %v7535_v54, %v7535_v54 }
 0x2e6   :  { %v1992_v50 = vadd.f32 %v1991_v46, %v1811_v18  ;;  %v1818_v46 = vmul.f32 %v4770_v62, %v4770_v62 }
 0x2e8   :  { %v1993_v39 = vadd.f32 %v1992_v50, %v1812_v31  ;;  %v1819_v50 = vmul.f32 %v4774_v15, %v4774_v15 }
 0x2ea   :  { %v1994_v43 = vadd.f32 %v1993_v39, %v1813_v4  ;;  %v1820_v39 = vmul.f32 %v4778_v40, %v4778_v40 }
 0x2ec   :  { %v1995_v34 = vadd.f32 %v1994_v43, %v1814_v52  ;;  %v1821_v43 = vmul.f32 %v4782_v63, %v4782_v63 }
 0x2ee   :  { %v1996_v25 = vadd.f32 %v1995_v34, %v1815_v30  ;;  %v1822_v34 = vmul.f32 %v4786_v29, %v4786_v29 }
 0x2f0   :  { %v1997_v18 = vadd.f32 %v1996_v25, %v1816_v8  ;;  %v1823_v25 = vmul.f32 %v4790_v33, %v4790_v33 }
 0x2f2   :  { %v1998_v31 = vadd.f32 %v1997_v18, %v1817_v23  ;;  %v7536_v18 = vld [vmem:[#allocation37_spill] sm:$0xff] }
 0x2f3   :  { %v1824_v21 = vmul.f32 %v7536_v18, %v7536_v18 }
 0x2f4   :  { %v1999_v4 = vadd.f32 %v1998_v31, %v1818_v46  ;;  %v7537_v31 = vld [vmem:[#allocation39_spill] sm:$0xff] }
 0x2f5   :  { %v1825_v13 = vmul.f32 %v7537_v31, %v7537_v31 }
 0x2f6   :  { %v2000_v52 = vadd.f32 %v1999_v4, %v1819_v50  ;;  %v7538_v4 = vld [vmem:[#allocation58_spill] sm:$0xff] }
 0x2f7   :  { %v1826_v53 = vmul.f32 %v7538_v4, %v7538_v4 }
 0x2f8   :  { %v2001_v30 = vadd.f32 %v2000_v52, %v1820_v39  ;;  %v7539_v39 = vld [vmem:[#allocation60_spill] sm:$0xff] }
 0x2f9   :  { %v1828_v52 = vmul.f32 %v7539_v39, %v7539_v39 }
 0x2fa   :  { %v2002_v8 = vadd.f32 %v2001_v30, %v1821_v43  ;;  %v7540_v43 = vld [vmem:[#allocation59_spill] sm:$0xff] }
 0x2fb   :  { %v1827_v30 = vmul.f32 %v7540_v43, %v7540_v43 }
 0x2fc   :  { %v2003_v23 = vadd.f32 %v2002_v8, %v1822_v34  ;;  %v7541_v34 = vld [vmem:[#allocation44_spill] sm:$0xff] }
 0x2fd   :  { %v1919_v8 = vmul.f32 %v7541_v34, %v1828_v52  ;;  %v7559_v52 = vld [vmem:[#allocation3_spill] sm:$0xff] }
 0x2fe   :  { %v2004_v46 = vadd.f32 %v2003_v23, %v1823_v25 }
 0x300   :  { %v2005_v50 = vadd.f32 %v2004_v46, %v1824_v21 }
 0x302   :  { %v2006_v38 = vadd.f32 %v2005_v50, %v1825_v13 }
 0x304   :  { %v2007_v59 = vadd.f32 %v2006_v38, %v1826_v53 }
 0x306   :  { %v2008_v44 = vadd.f32 %v2007_v59, %v1827_v30  ;;  %v7560_v30 = vld [vmem:[#allocation4_spill] sm:$0xff] }
 0x308   :  { %v2009_v35 = vadd.f32 %v2008_v44, %v1919_v8  ;;  %v7561_v8 = vld [vmem:[#allocation5_spill] sm:$0xff] }
 0x30a   :  { %v2010_v25 = vrot.slane %v2009_v35, 4 }
 0x30c   :  { %v2011_v23 = vadd.f32 %v2010_v25, %v2009_v35 }
 0x30e   :  { %v2012_v28 = vrot.slane %v2011_v23, 2 }
 0x310   :  { %v2013_v19 = vadd.f32 %v2012_v28, %v2011_v23  ;;  %v7562_v23 = vld [vmem:[#allocation6_spill] sm:$0xff] }
 0x312   :  { %v2014_v21 = vrot.slane %v2013_v19, 1 }
 0x314   :  { %v2015_v46 = vadd.f32 %v2014_v21, %v2013_v19 }
 0x316   :  { %v2016_v10 = vmul.f32 0.0013850415, %v2015_v46  ;;  %v7563_v46 = vld [vmem:[#allocation7_spill] sm:$0xff] }
 0x318   :  { %v2017_v3 = vadd.f32 1e-05, %v2016_v10 }
 0x31a   :  { %3788 = vrsqrt.f32 %v2017_v3 }
 0x324   :  { %v4995_v58 = vpop.eup %3788 }
 0x325   :  { %v4999_v13 = vmul.f32 %v4995_v58, %v7535_v54  ;;  %v5003_v38 = vmul.f32 %v4995_v58, %v4770_v62  ;;  %v5007_v35 = vmul.f32 %v4995_v58, %v4774_v15  ;;  %v5011_v19 = vmul.f32 %v4995_v58, %v4778_v40  ;;  %v7554_v40 = vld [vmem:[#allocation45_spill] sm:$0xff]  ;;  %v7556_v54 = vld [vmem:[#allocation47_spill] sm:$0xff] }
 0x326   :  { %v5015_v3 = vmul.f32 %v4995_v58, %v4782_v63  ;;  %v5019_v10 = vmul.f32 %v4995_v58, %v4786_v29  ;;  %v5023_v28 = vmul.f32 %v4995_v58, %v4790_v33  ;;  %v5027_v44 = vmul.f32 %v4995_v58, %v7536_v18  ;;  %v7555_v29 = vld [vmem:[#allocation46_spill] sm:$0xff] }
 0x327   :  { %7542 = vst [vmem:[#allocation31_spill] sm:$0xff] %v4999_v13  ;;  %7543 = vst [vmem:[#allocation32_spill] sm:$0xff] %v5003_v38  ;;  %v5031_v59 = vmul.f32 %v4995_v58, %v7537_v31  ;;  %v5035_v53 = vmul.f32 %v4995_v58, %v7538_v4  ;;  %v5039_v62 = vmul.f32 %v4995_v58, %v7540_v43  ;;  %v7557_v31 = vld [vmem:[#allocation48_spill] sm:$0xff]  ;;  %v7558_v4 = vld [vmem:[#allocation2_spill] sm:$0xff] }
 0x328   :  { %7544 = vst [vmem:[#allocation33_spill] sm:$0xff] %v5007_v35  ;;  %7545 = vst [vmem:[#allocation34_spill] sm:$0xff] %v5011_v19  ;;  %v5043_v15 = vmul.f32 %v4995_v58, %v7539_v39  ;;  %v5047_v63 = vmul.f32 %v4995_v58, %v7554_v40  ;;  %v5051_v33 = vmul.f32 %v4995_v58, %v7555_v29  ;;  %v7564_v29 = vld [vmem:[#allocation8_spill] sm:$0xff]  ;;  %v7580_v35 = vld [vmem:[#allocation21_spill] sm:$0xff] }
 0x329   :  { %7546 = vst [vmem:[#allocation35_spill] sm:$0xff] %v5015_v3  ;;  %7547 = vst [vmem:[#allocation57_spill] sm:$0xff] %v5019_v10  ;;  %v5055_v18 = vmul.f32 %v4995_v58, %v7556_v54  ;;  %v5059_v50 = vmul.f32 %v4995_v58, %v7557_v31  ;;  %v5063_v39 = vmul.f32 %v4995_v58, %v7558_v4  ;;  %v7565_v31 = vld [vmem:[#allocation9_spill] sm:$0xff]  ;;  %v7574_v10 = vld [vmem:[#allocation18_spill] sm:$0xff] }
 0x32a   :  { %7548 = vst [vmem:[#allocation37_spill] sm:$0xff] %v5023_v28  ;;  %7549 = vst [vmem:[#allocation39_spill] sm:$0xff] %v5027_v44  ;;  %v5067_v43 = vmul.f32 %v4995_v58, %v7559_v52  ;;  %v5071_v34 = vmul.f32 %v4995_v58, %v7560_v30  ;;  %v5075_v25 = vmul.f32 %v4995_v58, %v7561_v8  ;;  %v7566_v52 = vld [vmem:[#allocation10_spill] sm:$0xff]  ;;  %v7567_v8 = vld [vmem:[#allocation11_spill] sm:$0xff] }
 0x32b   :  { %7550 = vst [vmem:[#allocation58_spill] sm:$0xff] %v5031_v59  ;;  %7551 = vst [vmem:[#allocation60_spill] sm:$0xff] %v5035_v53  ;;  %v5079_v21 = vmul.f32 %v4995_v58, %v7562_v23  ;;  %v5083_v40 = vmul.f32 %v4995_v58, %v7563_v46  ;;  %v5087_v54 = vmul.f32 %v4995_v58, %v7564_v29  ;;  %v7570_v53 = vld [vmem:[#allocation14_spill] sm:$0xff]  ;;  %v7571_v59 = vld [vmem:[#allocation15_spill] sm:$0xff] }
 0x32c   :  { %7552 = vst [vmem:[#allocation59_spill] sm:$0xff] %v5039_v62  ;;  %7553 = vst [vmem:[#allocation44_spill] sm:$0xff] %v5043_v15  ;;  %v5091_v4 = vmul.f32 %v4995_v58, %v7565_v31  ;;  %v5095_v30 = vmul.f32 %v4995_v58, %v7566_v52  ;;  %v5099_v23 = vmul.f32 %v4995_v58, %v7567_v8  ;;  %v7568_v15 = vld [vmem:[#allocation12_spill] sm:$0xff]  ;;  %v7569_v62 = vld [vmem:[#allocation13_spill] sm:$0xff] }
 0x32d   :  { %v5103_v46 = vmul.f32 %v4995_v58, %v7568_v15  ;;  %v5107_v29 = vmul.f32 %v4995_v58, %v7569_v62  ;;  %v5111_v31 = vmul.f32 %v4995_v58, %v7570_v53  ;;  %v5115_v52 = vmul.f32 %v4995_v58, %v7571_v59  ;;  %v7572_v44 = vld [vmem:[#allocation16_spill] sm:$0xff]  ;;  %v7573_v28 = vld [vmem:[#allocation17_spill] sm:$0xff]  ;;  %v7576_v3 = vld [vmem:[#allocation19_spill] sm:$0xff] }
 0x32e   :  { %v5119_v8 = vmul.f32 %v4995_v58, %v7572_v44  ;;  %v5123_v15 = vmul.f32 %v4995_v58, %v7573_v28  ;;  %v5127_v62 = vmul.f32 %v4995_v58, %v7574_v10  ;;  %v5131_v53 = vmul.f32 %v4995_v58, %v7576_v3  ;;  %v7578_v19 = vld [vmem:[#allocation20_spill] sm:$0xff]  ;;  %v7582_v38 = vld [vmem:[#allocation22_spill] sm:$0xff]  ;;  %v7584_v13 = vld [vmem:[#allocation23_spill] sm:$0xff] }
 0x32f   :  { %v5135_v59 = vmul.f32 %v4995_v58, %v7578_v19  ;;  %v5139_v44 = vmul.f32 %v4995_v58, %v7580_v35  ;;  %v5143_v28 = vmul.f32 %v4995_v58, %v7582_v38  ;;  %v5147_v10 = vmul.f32 %v4995_v58, %v7584_v13 }
 0x330   :  { %7575 = vst [vmem:[#allocation45_spill] sm:$0xff] %v5127_v62  ;;  %7577 = vst [vmem:[#allocation46_spill] sm:$0xff] %v5131_v53  ;;  %v7586_v62 = vld [vmem:[#allocation24_spill] sm:$0xff]  ;;  %v7588_v53 = vld [vmem:[#allocation25_spill] sm:$0xff] }
 0x331   :  { %7579 = vst [vmem:[#allocation47_spill] sm:$0xff] %v5135_v59  ;;  %7581 = vst [vmem:[#allocation48_spill] sm:$0xff] %v5139_v44  ;;  %v5151_v3 = vmul.f32 %v4995_v58, %v7586_v62  ;;  %v5155_v19 = vmul.f32 %v4995_v58, %v7588_v53  ;;  %v7589_v59 = vld [vmem:[#allocation26_spill] sm:$0xff]  ;;  %v7590_v44 = vld [vmem:[#allocation27_spill] sm:$0xff] }
 0x332   :  { %7583 = vst [vmem:[#allocation2_spill] sm:$0xff] %v5143_v28  ;;  %7585 = vst [vmem:[#allocation3_spill] sm:$0xff] %v5147_v10  ;;  %v5159_v35 = vmul.f32 %v4995_v58, %v7589_v59  ;;  %v5163_v38 = vmul.f32 %v4995_v58, %v7590_v44  ;;  %v7591_v28 = vld [vmem:[#allocation28_spill] sm:$0xff]  ;;  %v7592_v10 = vld [vmem:[#allocation29_spill] sm:$0xff]  ;;  %v5179_v59 = vmul.f32 %v4995_v58, %v7529_v14 }
 0x333   :  { %7587 = vst [vmem:[#allocation4_spill] sm:$0xff] %v5151_v3  ;;  %v5167_v13 = vmul.f32 %v4995_v58, %v7591_v28  ;;  %v5171_v62 = vmul.f32 %v4995_v58, %v7592_v10  ;;  %v7593_v3 = vld [vmem:[#allocation30_spill] sm:$0xff]  ;;  %v5183_v44 = vmul.f32 %v4995_v58, %v7530_v20  ;;  %v5187_v28 = vmul.f32 %v4995_v58, %v7531_v24 }
 0x334   :  { %v5175_v53 = vmul.f32 %v4995_v58, %v7593_v3  ;;  %v5191_v10 = vmul.f32 %v4995_v58, %v7532_v9  ;;  %v5195_v3 = vmul.f32 %v4995_v58, %v7533_v48  ;;  %v5199_v14 = vmul.f32 %v4995_v58, %v4602_v41 }
 0x335   :  { %v5203_v20 = vmul.f32 %v4995_v58, %v4606_v26  ;;  %v5207_v24 = vmul.f32 %v4995_v58, %v4610_v55  ;;  %v5211_v9 = vmul.f32 %v4995_v58, %v4614_v60  ;;  %v5215_v48 = vmul.f32 %v4995_v58, %v4618_v16 }
 0x336   :  { %v5219_v41 = vmul.f32 %v4995_v58, %v4622_v5  ;;  %v5223_v26 = vmul.f32 %v4995_v58, %v4626_v0  ;;  %v5227_v55 = vmul.f32 %v4995_v58, %v4630_v1  ;;  %v5231_v60 = vmul.f32 %v4995_v58, %v4634_v36 }
 0x337   :  { %v5235_v16 = vmul.f32 %v4995_v58, %v4638_v45  ;;  %v5239_v5 = vmul.f32 %v4995_v58, %v4642_v57  ;;  %v5243_v0 = vmul.f32 %v4995_v58, %v4646_v11  ;;  %v5247_v1 = vmul.f32 %v4995_v58, %v4650_v6 }
 0x338   :  { %v5251_v36 = vmul.f32 %v4995_v58, %v4654_v47  ;;  %v5255_v45 = vmul.f32 %v4995_v58, %v4658_v51  ;;  %v5259_v57 = vmul.f32 %v4995_v58, %v4662_v56  ;;  %v5263_v11 = vmul.f32 %v4995_v58, %v4666_v61 }
 0x339   :  { %v5267_v6 = vmul.f32 %v4995_v58, %v4670_v2  ;;  %v5271_v47 = vmul.f32 %v4995_v58, %v4674_v7  ;;  %v5275_v51 = vmul.f32 %v4995_v58, %v4678_v12  ;;  %v5279_v56 = vmul.f32 %v4995_v58, %v4682_v17 }
 0x33a   :  { %v5283_v61 = vmul.f32 %v4995_v58, %v4686_v22  ;;  %v5287_v2 = vmul.f32 %v4995_v58, %v4690_v27  ;;  %v5291_v7 = vmul.f32 %v4995_v58, %v4694_v32  ;;  %v5295_v12 = vmul.f32 %v4995_v58, %v4698_v37 }
 0x33b   :  { %7594 = vst [vmem:[#allocation5_spill] sm:$0xff] %v5279_v56  ;;  %v5299_v17 = vmul.f32 %v4995_v58, %v4702_v42  ;;  %v5303_v22 = vmul.f32 %v4995_v58, %v4706_v49  ;;  %v5320_v42 = vld [vmem:[%s7192_s2] ss:$0 sm:$0xff]  ;;  %v7617_v56 = vld [vmem:[#allocation51_spill] sm:$0xff] }
 0x33c   :  { %7595 = vst [vmem:[#allocation6_spill] sm:$0xff] %v5283_v61  ;;  %7596 = vst [vmem:[#allocation7_spill] sm:$0xff] %v5287_v2  ;;  %v7601_v61 = vld [vmem:[#allocation36_spill] sm:$0xff]  ;;  %v7603_v2 = vld [vmem:[#allocation38_spill] sm:$0xff] }
 0x33d   :  { %7597 = vst [vmem:[#allocation8_spill] sm:$0xff] %v5291_v7  ;;  %7598 = vst [vmem:[#allocation9_spill] sm:$0xff] %v5295_v12  ;;  %v5307_v27 = vmul.f32 %v4995_v58, %v7601_v61  ;;  %v5311_v32 = vmul.f32 %v4995_v58, %v7603_v2  ;;  %v7605_v7 = vld [vmem:[#allocation40_spill] sm:$0xff] }
 0x33e   :  { %7599 = vst [vmem:[#allocation10_spill] sm:$0xff] %v5299_v17  ;;  %7600 = vst [vmem:[#allocation11_spill] sm:$0xff] %v5303_v22  ;;  %v5315_v37 = vmul.f32 %v4995_v58, %v7605_v7  ;;  %v7607_v17 = vld [vmem:[#allocation41_spill] sm:$0xff]  ;;  %v7609_v22 = vld [vmem:[#allocation42_spill] sm:$0xff] }
 0x33f   :  { %7602 = vst [vmem:[#allocation12_spill] sm:$0xff] %v5307_v27  ;;  %7604 = vst [vmem:[#allocation13_spill] sm:$0xff] %v5311_v32  ;;  %v5324_v49 = vmul.f32 %v4995_v58, %v7607_v17  ;;  %v5328_v61 = vmul.f32 %v4995_v58, %v7609_v22  ;;  %v7611_v27 = vld [vmem:[#allocation43_spill] sm:$0xff]  ;;  %v7613_v32 = vld [vmem:[#allocation49_spill] sm:$0xff]  ;;  %v5344_v17 = vmul.f32 %v4995_v58, %v7617_v56 }
 0x340   :  { %7606 = vst [vmem:[#allocation14_spill] sm:$0xff] %v5315_v37  ;;  %v5332_v2 = vmul.f32 %v4995_v58, %v7611_v27  ;;  %v5336_v7 = vmul.f32 %v4995_v58, %v7613_v32  ;;  %v7615_v37 = vld [vmem:[#allocation50_spill] sm:$0xff] }
 0x341   :  { %7608 = vst [vmem:[#allocation15_spill] sm:$0xff] %v5324_v49  ;;  %7610 = vst [vmem:[#allocation16_spill] sm:$0xff] %v5328_v61  ;;  %v5340_v12 = vmul.f32 %v4995_v58, %v7615_v37  ;;  %v7618_v49 = vld [vmem:[#allocation52_spill] sm:$0xff]  ;;  %v7619_v61 = vld [vmem:[#allocation53_spill] sm:$0xff] }
 0x342   :  { %7612 = vst [vmem:[#allocation17_spill] sm:$0xff] %v5332_v2  ;;  %7614 = vst [vmem:[#allocation18_spill] sm:$0xff] %v5336_v7  ;;  %v5348_v22 = vmul.f32 %v4995_v58, %v7618_v49  ;;  %v5352_v27 = vmul.f32 %v4995_v58, %v7619_v61  ;;  %v7620_v2 = vld [vmem:[#allocation54_spill] sm:$0xff]  ;;  %v7621_v7 = vld [vmem:[#allocation55_spill] sm:$0xff]  ;;  %v5368_v49 = vmul.f32 %v5320_v42, %v5047_v63 }
 0x343   :  { %7616 = vst [vmem:[#allocation19_spill] sm:$0xff] %v5340_v12  ;;  %v5356_v32 = vmul.f32 %v4995_v58, %v7620_v2  ;;  %v5360_v37 = vmul.f32 %v4995_v58, %v7621_v7  ;;  %v7622_v12 = vld [vmem:[#allocation56_spill] sm:$0xff]  ;;  %v5372_v61 = vmul.f32 %v5320_v42, %v5051_v33  ;;  %v5376_v2 = vmul.f32 %v5320_v42, %v5055_v18 }
 0x344   :  { %v5364_v56 = vmul.f32 %v4995_v58, %v7622_v12  ;;  %v5380_v7 = vmul.f32 %v5320_v42, %v5059_v50  ;;  %v5384_v58 = vmul.f32 %v5320_v42, %v5063_v39  ;;  %v5388_v63 = vmul.f32 %v5320_v42, %v5067_v43  ;;  %v7628_v12 = vld [vmem:[#allocation45_spill] sm:$0xff] }
 0x345   :  { %v5392_v33 = vmul.f32 %v5320_v42, %v5071_v34  ;;  %v5396_v18 = vmul.f32 %v5320_v42, %v5075_v25  ;;  %v5400_v50 = vmul.f32 %v5320_v42, %v5079_v21  ;;  %v5404_v39 = vmul.f32 %v5320_v42, %v5083_v40 }
 0x346   :  { %v5408_v43 = vmul.f32 %v5320_v42, %v5087_v54  ;;  %v5412_v34 = vmul.f32 %v5320_v42, %v5091_v4  ;;  %v5416_v25 = vmul.f32 %v5320_v42, %v5095_v30  ;;  %v5420_v21 = vmul.f32 %v5320_v42, %v5099_v23 }
 0x347   :  { %v5424_v40 = vmul.f32 %v5320_v42, %v5103_v46  ;;  %v5428_v54 = vmul.f32 %v5320_v42, %v5107_v29  ;;  %v5432_v4 = vmul.f32 %v5320_v42, %v5111_v31  ;;  %v5436_v30 = vmul.f32 %v5320_v42, %v5115_v52 }
 0x348   :  { %v5440_v23 = vmul.f32 %v5320_v42, %v5119_v8  ;;  %v5444_v46 = vmul.f32 %v5320_v42, %v5123_v15  ;;  %v5448_v29 = vmul.f32 %v5320_v42, %v7628_v12 }
 0x349   :  { %7623 = vst [vmem:[#allocation20_spill] sm:$0xff] %v5428_v54  ;;  %7624 = vst [vmem:[#allocation21_spill] sm:$0xff] %v5432_v4  ;;  %v7630_v54 = vld [vmem:[#allocation46_spill] sm:$0xff]  ;;  %v7631_v4 = vld [vmem:[#allocation47_spill] sm:$0xff] }
 0x34a   :  { %7625 = vst [vmem:[#allocation22_spill] sm:$0xff] %v5436_v30  ;;  %7626 = vst [vmem:[#allocation23_spill] sm:$0xff] %v5440_v23  ;;  %v5452_v31 = vmul.f32 %v5320_v42, %v7630_v54  ;;  %v5456_v52 = vmul.f32 %v5320_v42, %v7631_v4  ;;  %v7632_v30 = vld [vmem:[#allocation48_spill] sm:$0xff]  ;;  %v7633_v23 = vld [vmem:[#allocation2_spill] sm:$0xff]  ;;  %v5476_v4 = vmul.f32 %v5320_v42, %v5155_v19 }
 0x34b   :  { %7627 = vst [vmem:[#allocation24_spill] sm:$0xff] %v5444_v46  ;;  %7629 = vst [vmem:[#allocation25_spill] sm:$0xff] %v5448_v29  ;;  %v5460_v8 = vmul.f32 %v5320_v42, %v7632_v30  ;;  %v5464_v15 = vmul.f32 %v5320_v42, %v7633_v23  ;;  %v7634_v46 = vld [vmem:[#allocation3_spill] sm:$0xff]  ;;  %v7635_v29 = vld [vmem:[#allocation4_spill] sm:$0xff]  ;;  %v5480_v30 = vmul.f32 %v5320_v42, %v5159_v35 }
 0x34c   :  { %v5468_v12 = vmul.f32 %v5320_v42, %v7634_v46  ;;  %v5472_v54 = vmul.f32 %v5320_v42, %v7635_v29  ;;  %v5484_v23 = vmul.f32 %v5320_v42, %v5163_v38  ;;  %v5488_v46 = vmul.f32 %v5320_v42, %v5167_v13 }
 0x34d   :  { %v5492_v29 = vmul.f32 %v5320_v42, %v5171_v62  ;;  %v5496_v19 = vmul.f32 %v5320_v42, %v5175_v53  ;;  %v5500_v35 = vmul.f32 %v5320_v42, %v5179_v59  ;;  %v5504_v38 = vmul.f32 %v5320_v42, %v5183_v44 }
 0x34e   :  { %v5508_v13 = vmul.f32 %v5320_v42, %v5187_v28  ;;  %v5512_v62 = vmul.f32 %v5320_v42, %v5191_v10  ;;  %v5516_v53 = vmul.f32 %v5320_v42, %v5195_v3  ;;  %v5520_v59 = vmul.f32 %v5320_v42, %v5199_v14 }
 0x34f   :  { %v5524_v44 = vmul.f32 %v5320_v42, %v5203_v20  ;;  %v5528_v28 = vmul.f32 %v5320_v42, %v5207_v24  ;;  %v5532_v10 = vmul.f32 %v5320_v42, %v5211_v9  ;;  %v5536_v3 = vmul.f32 %v5320_v42, %v5215_v48 }
 0x350   :  { %v5540_v14 = vmul.f32 %v5320_v42, %v5219_v41  ;;  %v5544_v20 = vmul.f32 %v5320_v42, %v5223_v26  ;;  %v5548_v24 = vmul.f32 %v5320_v42, %v5227_v55  ;;  %v5552_v9 = vmul.f32 %v5320_v42, %v5231_v60 }
 0x351   :  { %v5556_v48 = vmul.f32 %v5320_v42, %v5235_v16  ;;  %v5560_v41 = vmul.f32 %v5320_v42, %v5239_v5  ;;  %v5564_v26 = vmul.f32 %v5320_v42, %v5243_v0  ;;  %v5568_v55 = vmul.f32 %v5320_v42, %v5247_v1 }
 0x352   :  { %v5572_v60 = vmul.f32 %v5320_v42, %v5251_v36  ;;  %v5576_v16 = vmul.f32 %v5320_v42, %v5255_v45  ;;  %v5580_v5 = vmul.f32 %v5320_v42, %v5259_v57  ;;  %v5584_v0 = vmul.f32 %v5320_v42, %v5263_v11 }
 0x353   :  { %v5588_v1 = vmul.f32 %v5320_v42, %v5267_v6  ;;  %v5592_v36 = vmul.f32 %v5320_v42, %v5271_v47  ;;  %v5596_v45 = vmul.f32 %v5320_v42, %v5275_v51 }
 0x354   :  { %7636 = vst [vmem:[#allocation26_spill] sm:$0xff] %v5576_v16  ;;  %7637 = vst [vmem:[#allocation27_spill] sm:$0xff] %v5580_v5  ;;  %v7642_v16 = vld [vmem:[#allocation5_spill] sm:$0xff]  ;;  %v7644_v5 = vld [vmem:[#allocation6_spill] sm:$0xff] }
 0x355   :  { %7638 = vst [vmem:[#allocation28_spill] sm:$0xff] %v5584_v0  ;;  %7639 = vst [vmem:[#allocation29_spill] sm:$0xff] %v5588_v1  ;;  %v5600_v57 = vmul.f32 %v5320_v42, %v7642_v16  ;;  %v5604_v11 = vmul.f32 %v5320_v42, %v7644_v5  ;;  %v7646_v0 = vld [vmem:[#allocation7_spill] sm:$0xff]  ;;  %v7648_v1 = vld [vmem:[#allocation8_spill] sm:$0xff] }
 0x356   :  { %7640 = vst [vmem:[#allocation30_spill] sm:$0xff] %v5592_v36  ;;  %7641 = vst [vmem:[#allocation36_spill] sm:$0xff] %v5596_v45  ;;  %v5608_v6 = vmul.f32 %v5320_v42, %v7646_v0  ;;  %v5612_v47 = vmul.f32 %v5320_v42, %v7648_v1  ;;  %v7650_v36 = vld [vmem:[#allocation9_spill] sm:$0xff]  ;;  %v7652_v45 = vld [vmem:[#allocation10_spill] sm:$0xff] }
 0x357   :  { %7643 = vst [vmem:[#allocation38_spill] sm:$0xff] %v5600_v57  ;;  %7645 = vst [vmem:[#allocation40_spill] sm:$0xff] %v5604_v11  ;;  %v5616_v51 = vmul.f32 %v5320_v42, %v7650_v36  ;;  %v5620_v16 = vmul.f32 %v5320_v42, %v7652_v45  ;;  %v7654_v57 = vld [vmem:[#allocation11_spill] sm:$0xff]  ;;  %v7656_v11 = vld [vmem:[#allocation12_spill] sm:$0xff] }
 0x358   :  { %7647 = vst [vmem:[#allocation41_spill] sm:$0xff] %v5608_v6  ;;  %7649 = vst [vmem:[#allocation42_spill] sm:$0xff] %v5612_v47  ;;  %v5624_v5 = vmul.f32 %v5320_v42, %v7654_v57  ;;  %v5628_v0 = vmul.f32 %v5320_v42, %v7656_v11  ;;  %v7658_v6 = vld [vmem:[#allocation13_spill] sm:$0xff]  ;;  %v7660_v47 = vld [vmem:[#allocation14_spill] sm:$0xff] }
 0x359   :  { %7651 = vst [vmem:[#allocation43_spill] sm:$0xff] %v5616_v51  ;;  %7653 = vst [vmem:[#allocation49_spill] sm:$0xff] %v5620_v16  ;;  %v5632_v1 = vmul.f32 %v5320_v42, %v7658_v6  ;;  %v5636_v36 = vmul.f32 %v5320_v42, %v7660_v47  ;;  %v7661_v51 = vld [vmem:[#allocation15_spill] sm:$0xff]  ;;  %v7662_v16 = vld [vmem:[#allocation16_spill] sm:$0xff] }
 0x35a   :  { %7655 = vst [vmem:[#allocation50_spill] sm:$0xff] %v5624_v5  ;;  %7657 = vst [vmem:[#allocation51_spill] sm:$0xff] %v5628_v0  ;;  %v5640_v45 = vmul.f32 %v5320_v42, %v7661_v51  ;;  %v5644_v57 = vmul.f32 %v5320_v42, %v7662_v16  ;;  %v7663_v5 = vld [vmem:[#allocation17_spill] sm:$0xff]  ;;  %v7664_v0 = vld [vmem:[#allocation18_spill] sm:$0xff]  ;;  %v5660_v51 = vmul.f32 %v5320_v42, %v5344_v17 }
 0x35b   :  { %7659 = vst [vmem:[#allocation52_spill] sm:$0xff] %v5632_v1  ;;  %v5648_v11 = vmul.f32 %v5320_v42, %v7663_v5  ;;  %v5652_v6 = vmul.f32 %v5320_v42, %v7664_v0  ;;  %v7665_v1 = vld [vmem:[#allocation19_spill] sm:$0xff]  ;;  %v5664_v16 = vmul.f32 %v5320_v42, %v5348_v22  ;;  %v5668_v5 = vmul.f32 %v5320_v42, %v5352_v27 }
 0x35c   :  { %v5656_v47 = vmul.f32 %v5320_v42, %v7665_v1  ;;  %7667 = vst [vmem:[#allocation54_spill] sm:$0xff] %v5660_v51  ;;  %v5672_v0 = vmul.f32 %v5320_v42, %v5356_v32  ;;  %v5676_v1 = vmul.f32 %v5320_v42, %v5360_v37  ;;  %v5680_v17 = vmul.f32 %v5320_v42, %v5364_v56  ;;  %v7673_v51 = vld [vmem:[#allocation31_spill] sm:$0xff]  ;;  %v5693_v32 = vld [vmem:[%s7193_s3] ss:$0 sm:$0xff] }
 0x35d   :  { %7668 = vst [vmem:[#allocation55_spill] sm:$0xff] %v5664_v16  ;;  %7669 = vst [vmem:[#allocation56_spill] sm:$0xff] %v5668_v5  ;;  %v5684_v22 = vmul.f32 %v5320_v42, %v7673_v51  ;;  %v7675_v16 = vld [vmem:[#allocation32_spill] sm:$0xff] }
 0x35e   :  { %7666 = vst [vmem:[#allocation53_spill] sm:$0xff] %v5656_v47  ;;  %7670 = vst [vmem:[#allocation45_spill] sm:$0xff] %v5672_v0  ;;  %v5688_v27 = vmul.f32 %v5320_v42, %v7675_v16  ;;  %v7677_v0 = vld [vmem:[#allocation33_spill] sm:$0xff]  ;;  %v7686_v47 = vld [vmem:[#allocation39_spill] sm:$0xff] }
 0x35f   :  { %7671 = vst [vmem:[#allocation46_spill] sm:$0xff] %v5676_v1  ;;  %7672 = vst [vmem:[#allocation47_spill] sm:$0xff] %v5680_v17  ;;  %v5697_v37 = vmul.f32 %v5320_v42, %v7677_v0  ;;  %v7679_v1 = vld [vmem:[#allocation34_spill] sm:$0xff]  ;;  %v7681_v17 = vld [vmem:[#allocation35_spill] sm:$0xff]  ;;  %v5717_v0 = vmul.f32 %v5320_v42, %v7686_v47  ;;  %v5737_v47 = vadd.f32 %v5693_v32, %v5368_v49 }
 0x360   :  { %7674 = vst [vmem:[#allocation48_spill] sm:$0xff] %v5684_v22  ;;  %7676 = vst [vmem:[#allocation2_spill] sm:$0xff] %v5688_v27  ;;  %v5701_v56 = vmul.f32 %v5320_v42, %v7679_v1  ;;  %v5705_v51 = vmul.f32 %v5320_v42, %v7681_v17  ;;  %v7683_v22 = vld [vmem:[#allocation57_spill] sm:$0xff]  ;;  %v5757_v49 = vadd.f32 %v5693_v32, %v5388_v63 }
 0x361   :  { %7678 = vst [vmem:[#allocation3_spill] sm:$0xff] %v5697_v37  ;;  %v5709_v16 = vmul.f32 %v5320_v42, %v7683_v22  ;;  %v7685_v27 = vld [vmem:[#allocation37_spill] sm:$0xff]  ;;  %v7687_v37 = vld [vmem:[#allocation58_spill] sm:$0xff]  ;;  %v5777_v63 = vadd.f32 %v5693_v32, %v5408_v43  ;;  %vm2306_vm1 = vcmp.ge.f32.partialorder %v5737_v47, 0.0 }
 0x362   :  { %7680 = vst [vmem:[#allocation4_spill] sm:$0xff] %v5701_v56  ;;  %7682 = vst [vmem:[#allocation5_spill] sm:$0xff] %v5705_v51  ;;  %v5713_v5 = vmul.f32 %v5320_v42, %v7685_v27  ;;  %v5721_v1 = vmul.f32 %v5320_v42, %v7687_v37  ;;  %v7688_v56 = vld [vmem:[#allocation60_spill] sm:$0xff]  ;;  %v7689_v51 = vld [vmem:[#allocation59_spill] sm:$0xff]  ;;  %v5741_v37 = vadd.f32 %v5693_v32, %v5372_v61  ;;  %vm2311_vm6 = vcmp.ge.f32.partialorder %v5757_v49, 0.0 }
 0x363   :  { %7684 = vst [vmem:[#allocation6_spill] sm:$0xff] %v5709_v16  ;;  %v5725_v17 = vmul.f32 %v5320_v42, %v7688_v56  ;;  %v5729_v22 = vmul.f32 %v5320_v42, %v7689_v51  ;;  %v7690_v16 = vld [vmem:[#allocation44_spill] sm:$0xff]  ;;  %v5745_v56 = vadd.f32 %v5693_v32, %v5376_v2  ;;  %v5749_v51 = vadd.f32 %v5693_v32, %v5380_v7 }
 0x364   :  { %v5733_v27 = vmul.f32 %v5320_v42, %v7690_v16  ;;  %v5753_v42 = vadd.f32 %v5693_v32, %v5384_v58  ;;  %v5761_v61 = vadd.f32 %v5693_v32, %v5392_v33  ;;  %v5765_v2 = vadd.f32 %v5693_v32, %v5396_v18  ;;  %7691 = vst [vmem:[#allocation7_spill] sm:$0xff] %v5777_v63  ;;  %v7696_v16 = vld [vmem:[#allocation20_spill] sm:$0xff]  ;;  %v7697_v63 = vld [vmem:[#allocation21_spill] sm:$0xff] }
 0x365   :  { %v5769_v7 = vadd.f32 %v5693_v32, %v5400_v50  ;;  %v5773_v58 = vadd.f32 %v5693_v32, %v5404_v39  ;;  %v5781_v33 = vadd.f32 %v5693_v32, %v5412_v34  ;;  %v5785_v18 = vadd.f32 %v5693_v32, %v5416_v25 }
 0x366   :  { %v5789_v50 = vadd.f32 %v5693_v32, %v5420_v21  ;;  %v5793_v39 = vadd.f32 %v5693_v32, %v5424_v40  ;;  %v5797_v43 = vadd.f32 %v5693_v32, %v7696_v16  ;;  %v5801_v34 = vadd.f32 %v5693_v32, %v7697_v63 }
 0x367   :  { %7692 = vst [vmem:[#allocation8_spill] sm:$0xff] %v5781_v33  ;;  %7693 = vst [vmem:[#allocation9_spill] sm:$0xff] %v5785_v18  ;;  %v7698_v33 = vld [vmem:[#allocation22_spill] sm:$0xff]  ;;  %v7699_v18 = vld [vmem:[#allocation23_spill] sm:$0xff]  ;;  %v5821_v63 = vadd.f32 %v5693_v32, %v5452_v31  ;;  %v5841_v31 = vadd.f32 %v5693_v32, %v5472_v54  ;;  %v5861_v54 = vadd.f32 %v5693_v32, %v5492_v29  ;;  %vm2307_vm2 = vcmp.ge.f32.partialorder %v5741_v37, 0.0 }
 0x368   :  { %7694 = vst [vmem:[#allocation10_spill] sm:$0xff] %v5789_v50  ;;  %7695 = vst [vmem:[#allocation11_spill] sm:$0xff] %v5793_v39  ;;  %v5805_v25 = vadd.f32 %v5693_v32, %v7698_v33  ;;  %v5809_v21 = vadd.f32 %v5693_v32, %v7699_v18  ;;  %v7700_v50 = vld [vmem:[#allocation24_spill] sm:$0xff]  ;;  %v7701_v39 = vld [vmem:[#allocation25_spill] sm:$0xff]  ;;  %v5825_v33 = vadd.f32 %v5693_v32, %v5456_v52  ;;  %vm2308_vm3 = vcmp.ge.f32.partialorder %v5745_v56, 0.0 }
 0x369   :  { %v5813_v40 = vadd.f32 %v5693_v32, %v7700_v50  ;;  %v5817_v16 = vadd.f32 %v5693_v32, %v7701_v39  ;;  %v5829_v18 = vadd.f32 %v5693_v32, %v5460_v8  ;;  %v5833_v50 = vadd.f32 %v5693_v32, %v5464_v15 }
 0x36a   :  { %v5837_v39 = vadd.f32 %v5693_v32, %v5468_v12  ;;  %v5845_v52 = vadd.f32 %v5693_v32, %v5476_v4  ;;  %v5849_v8 = vadd.f32 %v5693_v32, %v5480_v30  ;;  %v5853_v15 = vadd.f32 %v5693_v32, %v5484_v23 }
 0x36b   :  { %v5857_v12 = vadd.f32 %v5693_v32, %v5488_v46  ;;  %v5865_v4 = vadd.f32 %v5693_v32, %v5496_v19  ;;  %v5869_v30 = vadd.f32 %v5693_v32, %v5500_v35  ;;  %v5873_v23 = vadd.f32 %v5693_v32, %v5504_v38 }
 0x36c   :  { %v5877_v46 = vadd.f32 %v5693_v32, %v5508_v13  ;;  %v5881_v29 = vadd.f32 %v5693_v32, %v5512_v62  ;;  %v5885_v19 = vadd.f32 %v5693_v32, %v5516_v53  ;;  %v5889_v35 = vadd.f32 %v5693_v32, %v5520_v59 }
 0x36d   :  { %v5893_v38 = vadd.f32 %v5693_v32, %v5524_v44  ;;  %v5897_v13 = vadd.f32 %v5693_v32, %v5528_v28  ;;  %v5901_v62 = vadd.f32 %v5693_v32, %v5532_v10  ;;  %v5905_v53 = vadd.f32 %v5693_v32, %v5536_v3 }
 0x36e   :  { %7702 = vst [vmem:[#allocation12_spill] sm:$0xff] %v5885_v19  ;;  %7703 = vst [vmem:[#allocation13_spill] sm:$0xff] %v5889_v35  ;;  %v5909_v59 = vadd.f32 %v5693_v32, %v5540_v14  ;;  %v5913_v44 = vadd.f32 %v5693_v32, %v5544_v20  ;;  %v5917_v28 = vadd.f32 %v5693_v32, %v5548_v24  ;;  %vm2309_vm4 = vcmp.ge.f32.partialorder %v5749_v51, 0.0 }
 0x36f   :  { %7704 = vst [vmem:[#allocation14_spill] sm:$0xff] %v5905_v53  ;;  %v5921_v10 = vadd.f32 %v5693_v32, %v5552_v9  ;;  %v5925_v3 = vadd.f32 %v5693_v32, %v5556_v48  ;;  %v5929_v14 = vadd.f32 %v5693_v32, %v5560_v41  ;;  %v5933_v20 = vadd.f32 %v5693_v32, %v5564_v26 }
 0x370   :  { %v5937_v24 = vadd.f32 %v5693_v32, %v5568_v55  ;;  %v5941_v9 = vadd.f32 %v5693_v32, %v5572_v60  ;;  %vm2310_vm5 = vcmp.ge.f32.partialorder %v5753_v42, 0.0  ;;  %vm2312_vm7 = vcmp.ge.f32.partialorder %v5761_v61, 0.0 }
 0x371   :  { %7705 = vst [vmem:[#allocation15_spill] sm:$0xff] %v5921_v10  ;;  %7706 = vst [vmem:[#allocation16_spill] sm:$0xff] %v5925_v3  ;;  %v7711_v10 = vld [vmem:[#allocation26_spill] sm:$0xff]  ;;  %v7713_v3 = vld [vmem:[#allocation27_spill] sm:$0xff]  ;;  %vm2313_vm8 = vcmp.ge.f32.partialorder %v5765_v2, 0.0  ;;  %vm2314_vm9 = vcmp.ge.f32.partialorder %v5769_v7, 0.0 }
 0x372   :  { %7707 = vst [vmem:[#allocation17_spill] sm:$0xff] %v5929_v14  ;;  %7708 = vst [vmem:[#allocation18_spill] sm:$0xff] %v5933_v20  ;;  %v5945_v48 = vadd.f32 %v5693_v32, %v7711_v10  ;;  %v5949_v41 = vadd.f32 %v5693_v32, %v7713_v3  ;;  %v7715_v14 = vld [vmem:[#allocation28_spill] sm:$0xff]  ;;  %v7717_v20 = vld [vmem:[#allocation29_spill] sm:$0xff]  ;;  %vm2315_vm10 = vcmp.ge.f32.partialorder %v5773_v58, 0.0  ;;  %vm2321_vm0 = vcmp.ge.f32.partialorder %v5797_v43, 0.0 }
 0x373   :  { %7709 = vst [vmem:[#allocation19_spill] sm:$0xff] %v5937_v24  ;;  %7710 = vst [vmem:[#allocation31_spill] sm:$0xff] %v5941_v9  ;;  %v5953_v26 = vadd.f32 %v5693_v32, %v7715_v14  ;;  %v5957_v55 = vadd.f32 %v5693_v32, %v7717_v20  ;;  %v7719_v24 = vld [vmem:[#allocation30_spill] sm:$0xff]  ;;  %v7721_v9 = vld [vmem:[#allocation36_spill] sm:$0xff] }
 0x374   :  { %7712 = vst [vmem:[#allocation32_spill] sm:$0xff] %v5945_v48  ;;  %7714 = vst [vmem:[#allocation33_spill] sm:$0xff] %v5949_v41  ;;  %v5961_v60 = vadd.f32 %v5693_v32, %v7719_v24  ;;  %v5965_v10 = vadd.f32 %v5693_v32, %v7721_v9  ;;  %v7723_v48 = vld [vmem:[#allocation38_spill] sm:$0xff]  ;;  %v7725_v41 = vld [vmem:[#allocation40_spill] sm:$0xff] }
 0x375   :  { %7716 = vst [vmem:[#allocation34_spill] sm:$0xff] %v5953_v26  ;;  %7718 = vst [vmem:[#allocation35_spill] sm:$0xff] %v5957_v55  ;;  %v5969_v3 = vadd.f32 %v5693_v32, %v7723_v48  ;;  %v5973_v14 = vadd.f32 %v5693_v32, %v7725_v41  ;;  %v7727_v26 = vld [vmem:[#allocation41_spill] sm:$0xff]  ;;  %v7729_v55 = vld [vmem:[#allocation42_spill] sm:$0xff] }
 0x376   :  { %7720 = vst [vmem:[#allocation57_spill] sm:$0xff] %v5961_v60  ;;  %7722 = vst [vmem:[#allocation37_spill] sm:$0xff] %v5965_v10  ;;  %v5977_v20 = vadd.f32 %v5693_v32, %v7727_v26  ;;  %v5981_v24 = vadd.f32 %v5693_v32, %v7729_v55  ;;  %v7731_v60 = vld [vmem:[#allocation43_spill] sm:$0xff]  ;;  %v7733_v10 = vld [vmem:[#allocation49_spill] sm:$0xff] }
 0x377   :  { %7724 = vst [vmem:[#allocation39_spill] sm:$0xff] %v5969_v3  ;;  %7726 = vst [vmem:[#allocation58_spill] sm:$0xff] %v5973_v14  ;;  %v5985_v9 = vadd.f32 %v5693_v32, %v7731_v60  ;;  %v5989_v48 = vadd.f32 %v5693_v32, %v7733_v10  ;;  %v7735_v3 = vld [vmem:[#allocation50_spill] sm:$0xff]  ;;  %v7737_v14 = vld [vmem:[#allocation51_spill] sm:$0xff]  ;;  %v6005_v60 = vadd.f32 %v5693_v32, %v5636_v36 }
 0x378   :  { %7728 = vst [vmem:[#allocation60_spill] sm:$0xff] %v5977_v20  ;;  %7730 = vst [vmem:[#allocation59_spill] sm:$0xff] %v5981_v24  ;;  %v5993_v41 = vadd.f32 %v5693_v32, %v7735_v3  ;;  %v5997_v26 = vadd.f32 %v5693_v32, %v7737_v14  ;;  %v7739_v20 = vld [vmem:[#allocation52_spill] sm:$0xff]  ;;  %v6009_v10 = vadd.f32 %v5693_v32, %v5640_v45 }
 0x379   :  { %7732 = vst [vmem:[#allocation44_spill] sm:$0xff] %v5985_v9  ;;  %7734 = vst [vmem:[#allocation20_spill] sm:$0xff] %v5989_v48  ;;  %v6001_v55 = vadd.f32 %v5693_v32, %v7739_v20  ;;  %v6013_v3 = vadd.f32 %v5693_v32, %v5644_v57  ;;  %v6017_v14 = vadd.f32 %v5693_v32, %v5648_v11  ;;  %v6145_v48 = vmul.f32 0.01, %v5797_v43 }
 0x37a   :  { %7736 = vst [vmem:[#allocation21_spill] sm:$0xff] %v5993_v41  ;;  %7738 = vst [vmem:[#allocation22_spill] sm:$0xff] %v5997_v26  ;;  %v6021_v20 = vadd.f32 %v5693_v32, %v5652_v6 }
 0x37b   :  { %7740 = vst [vmem:[#allocation23_spill] sm:$0xff] %v6001_v55  ;;  %7741 = vst [vmem:[#allocation24_spill] sm:$0xff] %v6005_v60  ;;  %v7746_v55 = vld [vmem:[#allocation53_spill] sm:$0xff]  ;;  %v7748_v60 = vld [vmem:[#allocation54_spill] sm:$0xff] }
 0x37c   :  { %7742 = vst [vmem:[#allocation25_spill] sm:$0xff] %v6009_v10  ;;  %7743 = vst [vmem:[#allocation26_spill] sm:$0xff] %v6013_v3  ;;  %v6025_v36 = vadd.f32 %v5693_v32, %v7746_v55  ;;  %v6029_v45 = vadd.f32 %v5693_v32, %v7748_v60  ;;  %v7750_v10 = vld [vmem:[#allocation55_spill] sm:$0xff]  ;;  %v7752_v3 = vld [vmem:[#allocation56_spill] sm:$0xff] }
 0x37d   :  { %7744 = vst [vmem:[#allocation27_spill] sm:$0xff] %v6017_v14  ;;  %7745 = vst [vmem:[#allocation28_spill] sm:$0xff] %v6021_v20  ;;  %v6033_v57 = vadd.f32 %v5693_v32, %v7750_v10  ;;  %v6037_v11 = vadd.f32 %v5693_v32, %v7752_v3  ;;  %v7754_v14 = vld [vmem:[#allocation45_spill] sm:$0xff]  ;;  %v7756_v20 = vld [vmem:[#allocation46_spill] sm:$0xff] }
 0x37e   :  { %7747 = vst [vmem:[#allocation29_spill] sm:$0xff] %v6025_v36  ;;  %7749 = vst [vmem:[#allocation30_spill] sm:$0xff] %v6029_v45  ;;  %v6041_v6 = vadd.f32 %v5693_v32, %v7754_v14  ;;  %v6045_v55 = vadd.f32 %v5693_v32, %v7756_v20  ;;  %v7758_v36 = vld [vmem:[#allocation47_spill] sm:$0xff]  ;;  %v7760_v45 = vld [vmem:[#allocation48_spill] sm:$0xff] }
 0x37f   :  { %7751 = vst [vmem:[#allocation36_spill] sm:$0xff] %v6033_v57  ;;  %7753 = vst [vmem:[#allocation38_spill] sm:$0xff] %v6037_v11  ;;  %v6049_v60 = vadd.f32 %v5693_v32, %v7758_v36  ;;  %v6053_v10 = vadd.f32 %v5693_v32, %v7760_v45  ;;  %v7762_v57 = vld [vmem:[#allocation2_spill] sm:$0xff]  ;;  %v7764_v11 = vld [vmem:[#allocation3_spill] sm:$0xff] }
 0x380   :  { %7755 = vst [vmem:[#allocation40_spill] sm:$0xff] %v6041_v6  ;;  %7757 = vst [vmem:[#allocation41_spill] sm:$0xff] %v6045_v55  ;;  %v6057_v3 = vadd.f32 %v5693_v32, %v7762_v57  ;;  %v6061_v14 = vadd.f32 %v5693_v32, %v7764_v11  ;;  %v7766_v6 = vld [vmem:[#allocation4_spill] sm:$0xff]  ;;  %v7768_v55 = vld [vmem:[#allocation5_spill] sm:$0xff]  ;;  %v6077_v57 = vadd.f32 %v5693_v32, %v5713_v5 }
 0x381   :  { %7759 = vst [vmem:[#allocation42_spill] sm:$0xff] %v6049_v60  ;;  %7761 = vst [vmem:[#allocation43_spill] sm:$0xff] %v6053_v10  ;;  %v6065_v20 = vadd.f32 %v5693_v32, %v7766_v6  ;;  %v6069_v36 = vadd.f32 %v5693_v32, %v7768_v55  ;;  %v7770_v60 = vld [vmem:[#allocation6_spill] sm:$0xff]  ;;  %v6081_v11 = vadd.f32 %v5693_v32, %v5717_v0  ;;  %v2397_v0 = vmul.f32 0.01, %v5737_v47 }
 0x382   :  { %7763 = vst [vmem:[#allocation49_spill] sm:$0xff] %v6057_v3  ;;  %7765 = vst [vmem:[#allocation50_spill] sm:$0xff] %v6061_v14  ;;  %v6073_v45 = vadd.f32 %v5693_v32, %v7770_v60  ;;  %v6085_v6 = vadd.f32 %v5693_v32, %v5721_v1  ;;  %v6089_v55 = vadd.f32 %v5693_v32, %v5725_v17  ;;  %v2398_v1 = vmul.f32 0.01, %v5741_v37  ;;  %v7783_v10 = vld [vmem:[#allocation10_spill] sm:$0xff] }
 0x383   :  { %7767 = vst [vmem:[#allocation51_spill] sm:$0xff] %v6065_v20  ;;  %7769 = vst [vmem:[#allocation52_spill] sm:$0xff] %v6069_v36  ;;  %v6102_v5 = vadd.f32 %v5693_v32, %v5729_v22  ;;  %v2399_v17 = vmul.f32 0.01, %v5745_v56  ;;  %v6110_v60 = vadd.f32 %v5693_v32, %v5733_v27  ;;  %v2402_v22 = vmul.f32 0.01, %v5757_v49 }
 0x384   :  { %7771 = vst [vmem:[#allocation53_spill] sm:$0xff] %v6073_v45  ;;  %7772 = vst [vmem:[#allocation54_spill] sm:$0xff] %v6077_v57  ;;  %v2403_v57 = vmul.f32 0.01, %v5761_v61  ;;  %v2404_v45 = vmul.f32 0.01, %v5765_v2  ;;  %v6123_v32 = vsel %vm2306_vm1, %v5737_v47, %v2397_v0  ;;  %v6132_v3 = vsel %vm2307_vm2, %v5741_v37, %v2398_v1 }
 0x385   :  { %7773 = vst [vmem:[#allocation55_spill] sm:$0xff] %v6081_v11  ;;  %7774 = vst [vmem:[#allocation56_spill] sm:$0xff] %v6085_v6  ;;  %v2400_v6 = vmul.f32 0.01, %v5749_v51  ;;  %v2401_v11 = vmul.f32 0.01, %v5753_v42  ;;  %v6141_v41 = vsel %vm2308_vm3, %v5745_v56, %v2399_v17 }
 0x386   :  { %7775 = vst [vmem:[#allocation45_spill] sm:$0xff] %v6089_v55  ;;  %7776 = vst [vmem:[#allocation46_spill] sm:$0xff] %v6102_v5  ;;  %v7778_v55 = vld [vmem:[#allocation7_spill] sm:$0xff]  ;;  %v7779_v5 = vld [vmem:[#allocation8_spill] sm:$0xff]  ;;  %v2405_v36 = vmul.f32 0.01, %v5769_v7 }
 0x387   :  { %7777 = vst [vmem:[#allocation47_spill] sm:$0xff] %v6110_v60  ;;  %vm2316_vm11 = vcmp.ge.f32.partialorder %v7778_v55, 0.0  ;;  %vm2317_vm12 = vcmp.ge.f32.partialorder %v7779_v5, 0.0  ;;  %7780 = vst [vmem:[#allocation48_spill] sm:$0xff] %v6123_v32  ;;  %v7781_v27 = vld [vmem:[#allocation9_spill] sm:$0xff]  ;;  %vm2319_vm14 = vcmp.ge.f32.partialorder %v7783_v10, 0.0  ;;  %v6171_v9 = vsel %vm2310_vm5, %v5753_v42, %v2401_v11 }
 0x388   :  { %vm2318_vm13 = vcmp.ge.f32.partialorder %v7781_v27, 0.0  ;;  %v2406_v60 = vmul.f32 0.01, %v5773_v58  ;;  %v2407_v20 = vmul.f32 0.01, %v7778_v55  ;;  %7782 = vst [vmem:[#allocation2_spill] sm:$0xff] %v6132_v3  ;;  %v6156_v3 = vsel %vm2309_vm4, %v5749_v51, %v2400_v6 }
 0x389   :  { %v2408_v14 = vmul.f32 0.01, %v7779_v5  ;;  %v2409_v26 = vmul.f32 0.01, %v7781_v27  ;;  %v2410_v47 = vmul.f32 0.01, %v7783_v10 }
 0x38a   :  { %v7784_v0 = vld [vmem:[#allocation11_spill] sm:$0xff]  ;;  %7785 = vst [vmem:[#allocation3_spill] sm:$0xff] %v6141_v41  ;;  %v6148_v37 = vmul.f32 0.01, %v5801_v34  ;;  %v6151_v1 = vmul.f32 0.01, %v5805_v25 }
 0x38b   :  { %v2411_v32 = vmul.f32 0.01, %v7784_v0  ;;  %vm2320_vm15 = vcmp.ge.f32.partialorder %v7784_v0, 0.0  ;;  %7786 = vst [vmem:[#allocation4_spill] sm:$0xff] %v6156_v3  ;;  %v6160_v56 = vmul.f32 0.01, %v5809_v21 }
 0x38c   :  { %v6163_v17 = vmul.f32 0.01, %v5813_v40  ;;  %v6166_v41 = vmul.f32 0.01, %v5817_v16  ;;  %7788 = vst [vmem:[#allocation6_spill] sm:$0xff] %v6171_v9  ;;  %vm2322_vm1 = vcmp.ge.f32.partialorder %v5801_v34, 0.0 }
 0x38d   :  { %v6175_v51 = vmul.f32 0.01, %v5821_v63  ;;  %v6178_v6 = vmul.f32 0.01, %v5825_v33  ;;  %v6181_v3 = vmul.f32 0.01, %v5829_v18 }
 0x38e   :  { %7787 = vst [vmem:[#allocation5_spill] sm:$0xff] %v6166_v41  ;;  %v6186_v41 = vsel %vm2311_vm6, %v5757_v49, %v2402_v22  ;;  %vm2323_vm2 = vcmp.ge.f32.partialorder %v5805_v25, 0.0  ;;  %v6190_v42 = vmul.f32 0.01, %v5833_v50  ;;  %v6193_v11 = vmul.f32 0.01, %v5837_v39 }
 0x38f   :  { %7789 = vst [vmem:[#allocation7_spill] sm:$0xff] %v6181_v3  ;;  %7790 = vst [vmem:[#allocation8_spill] sm:$0xff] %v6186_v41  ;;  %v6196_v9 = vmul.f32 0.01, %v5841_v31  ;;  %v6201_v3 = vsel %vm2312_vm7, %v5761_v61, %v2403_v57  ;;  %vm2324_vm3 = vcmp.ge.f32.partialorder %v5809_v21, 0.0  ;;  %vm2325_vm4 = vcmp.ge.f32.partialorder %v5813_v40, 0.0 }
 0x390   :  { %7792 = vst [vmem:[#allocation10_spill] sm:$0xff] %v6201_v3  ;;  %v6205_v49 = vmul.f32 0.01, %v5845_v52  ;;  %v6208_v22 = vmul.f32 0.01, %v5849_v8  ;;  %vm2326_vm5 = vcmp.ge.f32.partialorder %v5817_v16, 0.0 }
 0x391   :  { %7791 = vst [vmem:[#allocation9_spill] sm:$0xff] %v6196_v9  ;;  %v6211_v41 = vmul.f32 0.01, %v5853_v15  ;;  %v6216_v9 = vsel %vm2313_vm8, %v5765_v2, %v2404_v45  ;;  %v6220_v61 = vmul.f32 0.01, %v5857_v12  ;;  %vm2327_vm6 = vcmp.ge.f32.partialorder %v5821_v63, 0.0 }
 0x392   :  { %7794 = vst [vmem:[#allocation61_spill] sm:$0xff] %v6216_v9  ;;  %v6223_v57 = vmul.f32 0.01, %v5861_v54  ;;  %v6226_v3 = vmul.f32 0.01, %v5865_v4  ;;  %vm2328_vm7 = vcmp.ge.f32.partialorder %v5825_v33, 0.0 }
 0x393   :  { %7793 = vst [vmem:[#allocation11_spill] sm:$0xff] %v6211_v41  ;;  %v6231_v41 = vsel %vm2314_vm9, %v5769_v7, %v2405_v36  ;;  %v6235_v2 = vmul.f32 0.01, %v5869_v30  ;;  %v6238_v45 = vmul.f32 0.01, %v5873_v23  ;;  %vm2329_vm8 = vcmp.ge.f32.partialorder %v5829_v18, 0.0 }
 0x394   :  { %7795 = vst [vmem:[#allocation62_spill] sm:$0xff] %v6226_v3  ;;  %7796 = vst [vmem:[#allocation63_spill] sm:$0xff] %v6231_v41  ;;  %v6241_v9 = vmul.f32 0.01, %v5877_v46  ;;  %v6246_v3 = vsel %vm2315_vm10, %v5773_v58, %v2406_v60  ;;  %v6250_v7 = vmul.f32 0.01, %v5881_v29 }
 0x395   :  { %7798 = vst [vmem:[#allocation65_spill] sm:$0xff] %v6246_v3  ;;  %v6253_v36 = vmul.f32 0.01, %v5885_v19  ;;  %v6256_v41 = vmul.f32 0.01, %v5889_v35  ;;  %vm2330_vm9 = vcmp.ge.f32.partialorder %v5833_v50, 0.0 }
 0x396   :  { %7797 = vst [vmem:[#allocation64_spill] sm:$0xff] %v6241_v9  ;;  %7799 = vst [vmem:[#allocation66_spill] sm:$0xff] %v6250_v7  ;;  %v6261_v9 = vsel %vm2316_vm11, %v7778_v55, %v2407_v20  ;;  %v6265_v58 = vmul.f32 0.01, %v5893_v38  ;;  %v6268_v60 = vmul.f32 0.01, %v5897_v13 }
 0x397   :  { %7800 = vst [vmem:[#allocation67_spill] sm:$0xff] %v6253_v36  ;;  %7801 = vst [vmem:[#allocation68_spill] sm:$0xff] %v6256_v41  ;;  %v6271_v3 = vmul.f32 0.01, %v5901_v62  ;;  %v6276_v41 = vsel %vm2317_vm12, %v7779_v5, %v2408_v14  ;;  %v6280_v20 = vmul.f32 0.01, %v5905_v53 }
 0x398   :  { %7802 = vst [vmem:[#allocation69_spill] sm:$0xff] %v6261_v9  ;;  %7803 = vst [vmem:[#allocation70_spill] sm:$0xff] %v6265_v58  ;;  %v6283_v55 = vmul.f32 0.01, %v5909_v59  ;;  %v6286_v9 = vmul.f32 0.01, %v5913_v44 }
 0x399   :  { %7804 = vst [vmem:[#allocation71_spill] sm:$0xff] %v6268_v60  ;;  %7805 = vst [vmem:[#allocation72_spill] sm:$0xff] %v6271_v3  ;;  %v6291_v3 = vsel %vm2318_vm13, %v7781_v27, %v2409_v26  ;;  %v6295_v14 = vmul.f32 0.01, %v5917_v28  ;;  %v7812_v5 = vld [vmem:[#allocation15_spill] sm:$0xff]  ;;  %vm2331_vm10 = vcmp.ge.f32.partialorder %v5837_v39, 0.0 }
 0x39a   :  { %7806 = vst [vmem:[#allocation73_spill] sm:$0xff] %v6276_v41  ;;  %7807 = vst [vmem:[#allocation74_spill] sm:$0xff] %v6280_v20  ;;  %v6298_v41 = vmul.f32 0.01, %v7812_v5  ;;  %v7814_v20 = vld [vmem:[#allocation16_spill] sm:$0xff]  ;;  %v7817_v26 = vld [vmem:[#allocation17_spill] sm:$0xff] }
 0x39b   :  { %7808 = vst [vmem:[#allocation75_spill] sm:$0xff] %v6283_v55  ;;  %7809 = vst [vmem:[#allocation76_spill] sm:$0xff] %v6286_v9  ;;  %v6301_v60 = vmul.f32 0.01, %v7814_v20  ;;  %v6306_v9 = vsel %vm2319_vm14, %v7783_v10, %v2410_v47  ;;  %v6310_v27 = vmul.f32 0.01, %v7817_v26 }
 0x39c   :  { %7810 = vst [vmem:[#allocation77_spill] sm:$0xff] %v6291_v3  ;;  %7811 = vst [vmem:[#allocation78_spill] sm:$0xff] %v6295_v14  ;;  %v7819_v3 = vld [vmem:[#allocation18_spill] sm:$0xff]  ;;  %v7821_v14 = vld [vmem:[#allocation19_spill] sm:$0xff]  ;;  %vm2332_vm11 = vcmp.ge.f32.partialorder %v5841_v31, 0.0  ;;  %vm2333_vm12 = vcmp.ge.f32.partialorder %v5845_v52, 0.0 }
 0x39d   :  { %7813 = vst [vmem:[#allocation79_spill] sm:$0xff] %v6298_v41  ;;  %7815 = vst [vmem:[#allocation16_spill] sm:$0xff] %v6301_v60  ;;  %v6313_v55 = vmul.f32 0.01, %v7819_v3  ;;  %v6316_v58 = vmul.f32 0.01, %v7821_v14  ;;  %v6321_v60 = vsel %vm2320_vm15, %v7784_v0, %v2411_v32 }
 0x39e   :  { %7816 = vst [vmem:[#allocation80_spill] sm:$0xff] %v6306_v9  ;;  %7818 = vst [vmem:[#allocation17_spill] sm:$0xff] %v6310_v27  ;;  %v7824_v10 = vld [vmem:[#allocation31_spill] sm:$0xff]  ;;  %v7826_v9 = vld [vmem:[#allocation32_spill] sm:$0xff]  ;;  %vm2334_vm13 = vcmp.ge.f32.partialorder %v5849_v8, 0.0  ;;  %vm7918_vm14 = vcmp.ge.f32.partialorder %v5857_v12, 0.0 }
 0x39f   :  { %7820 = vst [vmem:[#allocation81_spill] sm:$0xff] %v6313_v55  ;;  %7822 = vst [vmem:[#allocation82_spill] sm:$0xff] %v6316_v58  ;;  %v6325_v47 = vmul.f32 0.01, %v7824_v10  ;;  %v6328_v41 = vmul.f32 0.01, %v7826_v9  ;;  %v6337_v58 = vsel %vm2321_vm0, %v5797_v43, %v6145_v48 }
 0x3a0   :  { %7823 = vst [vmem:[#allocation83_spill] sm:$0xff] %v6321_v60  ;;  %v7828_v27 = vld [vmem:[#allocation33_spill] sm:$0xff]  ;;  %7830 = vst [vmem:[#allocation84_spill] sm:$0xff] %v6337_v58  ;;  %v7831_v32 = vld [vmem:[#allocation34_spill] sm:$0xff]  ;;  %vm2337_vm0 = vcmp.ge.f32.partialorder %v5861_v54, 0.0 }
 0x3a1   :  { %7825 = vst [vmem:[#allocation31_spill] sm:$0xff] %v6325_v47  ;;  %7827 = vst [vmem:[#allocation32_spill] sm:$0xff] %v6328_v41  ;;  %v6331_v36 = vmul.f32 0.01, %v7828_v27  ;;  %v6341_v0 = vmul.f32 0.01, %v7831_v32 }
 0x3a2   :  { %v7833_v60 = vld [vmem:[#allocation35_spill] sm:$0xff]  ;;  %v7835_v47 = vld [vmem:[#allocation57_spill] sm:$0xff] }
 0x3a3   :  { %7829 = vst [vmem:[#allocation33_spill] sm:$0xff] %v6331_v36  ;;  %7832 = vst [vmem:[#allocation85_spill] sm:$0xff] %v6341_v0  ;;  %v6344_v55 = vmul.f32 0.01, %v7833_v60  ;;  %v6347_v7 = vmul.f32 0.01, %v7835_v47  ;;  %v6353_v36 = vsel %vm2322_vm1, %v5801_v34, %v6148_v37  ;;  %v6371_v34 = vsel %vm2323_vm2, %v5805_v25, %v6151_v1 }
 0x3a4   :  { %7837 = vst [vmem:[#allocation86_spill] sm:$0xff] %v6353_v36  ;;  %v7838_v43 = vld [vmem:[#allocation37_spill] sm:$0xff]  ;;  %v7840_v58 = vld [vmem:[#allocation39_spill] sm:$0xff]  ;;  %v7842_v0 = vld [vmem:[#allocation58_spill] sm:$0xff]  ;;  %v6390_v25 = vsel %vm2324_vm3, %v5809_v21, %v6160_v56  ;;  %vm2341_vm2 = vcmp.ge.f32.partialorder %v5877_v46, 0.0  ;;  %v6409_v21 = vsel %vm2325_vm4, %v5813_v40, %v6163_v17  ;;  %vm2345_vm3 = vcmp.ge.f32.partialorder %v5893_v38, 0.0 }
 0x3a5   :  { %7834 = vst [vmem:[#allocation35_spill] sm:$0xff] %v6344_v55  ;;  %7836 = vst [vmem:[#allocation57_spill] sm:$0xff] %v6347_v7  ;;  %v6359_v48 = vmul.f32 0.01, %v7838_v43  ;;  %v6362_v55 = vmul.f32 0.01, %v7840_v58 }
 0x3a6   :  { %v6365_v7 = vmul.f32 0.01, %v7842_v0  ;;  %7844 = vst [vmem:[#allocation88_spill] sm:$0xff] %v6371_v34  ;;  %v7845_v37 = vld [vmem:[#allocation60_spill] sm:$0xff]  ;;  %7850 = vst [vmem:[#allocation91_spill] sm:$0xff] %v6390_v25  ;;  %v7858_v56 = vld [vmem:[#allocation23_spill] sm:$0xff] }
 0x3a7   :  { %7839 = vst [vmem:[#allocation37_spill] sm:$0xff] %v6359_v48  ;;  %7841 = vst [vmem:[#allocation87_spill] sm:$0xff] %v6362_v55  ;;  %v6378_v36 = vmul.f32 0.01, %v7845_v37  ;;  %v6381_v55 = vmul.f32 0.01, %v5981_v24 }
 0x3a8   :  { %7843 = vst [vmem:[#allocation58_spill] sm:$0xff] %v6365_v7  ;;  %v7848_v7 = vld [vmem:[#allocation44_spill] sm:$0xff]  ;;  %7857 = vst [vmem:[#allocation92_spill] sm:$0xff] %v6409_v21  ;;  %v6416_v25 = vmul.f32 0.01, %v7858_v56  ;;  %v7864_v19 = vld [vmem:[#allocation5_spill] sm:$0xff] }
 0x3a9   :  { %7846 = vst [vmem:[#allocation60_spill] sm:$0xff] %v6378_v36  ;;  %7847 = vst [vmem:[#allocation89_spill] sm:$0xff] %v6381_v55  ;;  %v6384_v48 = vmul.f32 0.01, %v7848_v7  ;;  %v7851_v1 = vld [vmem:[#allocation20_spill] sm:$0xff]  ;;  %v7853_v55 = vld [vmem:[#allocation21_spill] sm:$0xff]  ;;  %v6428_v40 = vsel %vm2326_vm5, %v5817_v16, %v7864_v19  ;;  %v6447_v16 = vsel %vm2327_vm6, %v5821_v63, %v6175_v51  ;;  %v6466_v63 = vsel %vm2328_vm7, %v5825_v33, %v6178_v6 }
 0x3aa   :  { %v6397_v34 = vmul.f32 0.01, %v7851_v1  ;;  %v6400_v36 = vmul.f32 0.01, %v7853_v55  ;;  %7859 = vst [vmem:[#allocation93_spill] sm:$0xff] %v6416_v25  ;;  %7865 = vst [vmem:[#allocation5_spill] sm:$0xff] %v6428_v40 }
 0x3ab   :  { %7849 = vst [vmem:[#allocation90_spill] sm:$0xff] %v6384_v48  ;;  %v7855_v48 = vld [vmem:[#allocation22_spill] sm:$0xff]  ;;  %vm2349_vm4 = vcmp.ge.f32.partialorder %v5909_v59, 0.0  ;;  %7872 = vst [vmem:[#allocation94_spill] sm:$0xff] %v6447_v16  ;;  %vm2353_vm5 = vcmp.ge.f32.partialorder %v7814_v20, 0.0  ;;  %v7873_v19 = vld [vmem:[#allocation29_spill] sm:$0xff] }
 0x3ac   :  { %7852 = vst [vmem:[#allocation20_spill] sm:$0xff] %v6397_v34  ;;  %7854 = vst [vmem:[#allocation21_spill] sm:$0xff] %v6400_v36  ;;  %v6403_v41 = vmul.f32 0.01, %v7855_v48  ;;  %v7860_v36 = vld [vmem:[#allocation24_spill] sm:$0xff]  ;;  %v7866_v17 = vld [vmem:[#allocation26_spill] sm:$0xff] }
 0x3ad   :  { %v6419_v34 = vmul.f32 0.01, %v7860_v36  ;;  %v6435_v21 = vmul.f32 0.01, %v7866_v17  ;;  %v6454_v40 = vmul.f32 0.01, %v7873_v19 }
 0x3ae   :  { %7856 = vst [vmem:[#allocation22_spill] sm:$0xff] %v6403_v41  ;;  %v7862_v41 = vld [vmem:[#allocation25_spill] sm:$0xff]  ;;  %7879 = vst [vmem:[#allocation95_spill] sm:$0xff] %v6466_v63  ;;  %vm2357_vm6 = vcmp.ge.f32.partialorder %v7824_v10, 0.0  ;;  %v7880_v51 = vld [vmem:[#allocation38_spill] sm:$0xff]  ;;  %vm2361_vm7 = vcmp.ge.f32.partialorder %v7833_v60, 0.0 }
 0x3af   :  { %7861 = vst [vmem:[#allocation24_spill] sm:$0xff] %v6419_v34  ;;  %v6422_v35 = vmul.f32 0.01, %v7862_v41  ;;  %7867 = vst [vmem:[#allocation26_spill] sm:$0xff] %v6435_v21  ;;  %v7868_v34 = vld [vmem:[#allocation27_spill] sm:$0xff]  ;;  %v7888_v6 = vld [vmem:[#allocation42_spill] sm:$0xff] }
 0x3b0   :  { %v6438_v25 = vmul.f32 0.01, %v7868_v34  ;;  %7874 = vst [vmem:[#allocation29_spill] sm:$0xff] %v6454_v40  ;;  %v6473_v16 = vmul.f32 0.01, %v7880_v51  ;;  %v7886_v3 = vld [vmem:[#allocation7_spill] sm:$0xff] }
 0x3b1   :  { %7863 = vst [vmem:[#allocation25_spill] sm:$0xff] %v6422_v35  ;;  %v7870_v35 = vld [vmem:[#allocation28_spill] sm:$0xff]  ;;  %v6485_v33 = vsel %vm2329_vm8, %v5829_v18, %v7886_v3  ;;  %v6492_v63 = vmul.f32 0.01, %v7888_v6  ;;  %v6504_v18 = vsel %vm2330_vm9, %v5833_v50, %v6190_v42  ;;  %vm2365_vm8 = vcmp.ge.f32.partialorder %v7842_v0, 0.0  ;;  %v7895_v3 = vld [vmem:[#allocation50_spill] sm:$0xff] }
 0x3b2   :  { %7869 = vst [vmem:[#allocation27_spill] sm:$0xff] %v6438_v25  ;;  %v6441_v53 = vmul.f32 0.01, %v7870_v35  ;;  %v7875_v25 = vld [vmem:[#allocation30_spill] sm:$0xff]  ;;  %7881 = vst [vmem:[#allocation38_spill] sm:$0xff] %v6473_v16  ;;  %v6523_v50 = vsel %vm2331_vm10, %v5837_v39, %v6193_v11  ;;  %vm2369_vm9 = vcmp.ge.f32.partialorder %v7851_v1, 0.0 }
 0x3b3   :  { %v6457_v21 = vmul.f32 0.01, %v7875_v25  ;;  %7887 = vst [vmem:[#allocation7_spill] sm:$0xff] %v6485_v33  ;;  %7889 = vst [vmem:[#allocation42_spill] sm:$0xff] %v6492_v63  ;;  %v6511_v33 = vmul.f32 0.01, %v7895_v3 }
 0x3b4   :  { %7871 = vst [vmem:[#allocation28_spill] sm:$0xff] %v6441_v53  ;;  %v7877_v53 = vld [vmem:[#allocation36_spill] sm:$0xff]  ;;  %7894 = vst [vmem:[#allocation96_spill] sm:$0xff] %v6504_v18  ;;  %v7902_v42 = vld [vmem:[#allocation53_spill] sm:$0xff]  ;;  %vm2373_vm10 = vcmp.ge.f32.partialorder %v7860_v36, 0.0  ;;  %vm2381_vm1 = vcmp.ge.f32.partialorder %v7880_v51, 0.0 }
 0x3b5   :  { %7876 = vst [vmem:[#allocation30_spill] sm:$0xff] %v6457_v21  ;;  %v6460_v5 = vmul.f32 0.01, %v7877_v53  ;;  %v7882_v21 = vld [vmem:[#allocation40_spill] sm:$0xff]  ;;  %7896 = vst [vmem:[#allocation50_spill] sm:$0xff] %v6511_v33  ;;  %v7908_v24 = vld [vmem:[#allocation9_spill] sm:$0xff] }
 0x3b6   :  { %v6476_v40 = vmul.f32 0.01, %v7882_v21  ;;  %7901 = vst [vmem:[#allocation97_spill] sm:$0xff] %v6523_v50  ;;  %v6530_v18 = vmul.f32 0.01, %v7902_v42  ;;  %v6542_v39 = vsel %vm2332_vm11, %v5841_v31, %v7908_v24  ;;  %v7910_v11 = vld [vmem:[#allocation56_spill] sm:$0xff]  ;;  %v6561_v31 = vsel %vm2333_vm12, %v5845_v52, %v6205_v49 }
 0x3b7   :  { %7878 = vst [vmem:[#allocation36_spill] sm:$0xff] %v6460_v5  ;;  %v7884_v5 = vld [vmem:[#allocation41_spill] sm:$0xff]  ;;  %7909 = vst [vmem:[#allocation9_spill] sm:$0xff] %v6542_v39  ;;  %v6549_v50 = vmul.f32 0.01, %v7910_v11  ;;  %v7915_v24 = vld [vmem:[#allocation47_spill] sm:$0xff]  ;;  %v6586_v49 = vsel %vm7918_vm14, %v5857_v12, %v6220_v61 }
 0x3b8   :  { %7883 = vst [vmem:[#allocation40_spill] sm:$0xff] %v6476_v40  ;;  %v6479_v14 = vmul.f32 0.01, %v7884_v5  ;;  %v7890_v40 = vld [vmem:[#allocation43_spill] sm:$0xff]  ;;  %7903 = vst [vmem:[#allocation53_spill] sm:$0xff] %v6530_v18  ;;  %vm7917_vm12 = vcmp.ge.f32.partialorder %v5853_v15, 0.0 }
 0x3b9   :  { %v6495_v16 = vmul.f32 0.01, %v7890_v40  ;;  %v6568_v39 = vmul.f32 0.01, %v7915_v24  ;;  %vm7921_vm14 = vcmp.ge.f32.partialorder %v5869_v30, 0.0 }
 0x3ba   :  { %7885 = vst [vmem:[#allocation41_spill] sm:$0xff] %v6479_v14  ;;  %v7892_v14 = vld [vmem:[#allocation49_spill] sm:$0xff] }
 0x3bb   :  { %7891 = vst [vmem:[#allocation43_spill] sm:$0xff] %v6495_v16  ;;  %v6498_v32 = vmul.f32 0.01, %v7892_v14  ;;  %v7897_v16 = vld [vmem:[#allocation51_spill] sm:$0xff] }
 0x3bc   :  { %v6514_v63 = vmul.f32 0.01, %v7897_v16 }
 0x3bd   :  { %7893 = vst [vmem:[#allocation49_spill] sm:$0xff] %v6498_v32  ;;  %v7899_v32 = vld [vmem:[#allocation52_spill] sm:$0xff] }
 0x3be   :  { %7898 = vst [vmem:[#allocation51_spill] sm:$0xff] %v6514_v63  ;;  %v6517_v58 = vmul.f32 0.01, %v7899_v32  ;;  %v7904_v63 = vld [vmem:[#allocation54_spill] sm:$0xff] }
 0x3bf   :  { %v6533_v33 = vmul.f32 0.01, %v7904_v63 }
 0x3c0   :  { %7900 = vst [vmem:[#allocation52_spill] sm:$0xff] %v6517_v58  ;;  %v7906_v58 = vld [vmem:[#allocation55_spill] sm:$0xff] }
 0x3c1   :  { %7905 = vst [vmem:[#allocation54_spill] sm:$0xff] %v6533_v33  ;;  %v6536_v7 = vmul.f32 0.01, %v7906_v58  ;;  %v7911_v33 = vld [vmem:[#allocation45_spill] sm:$0xff] }
 0x3c2   :  { %v6552_v18 = vmul.f32 0.01, %v7911_v33  ;;  %vm2394_vm11 = vcmp.ge.f32.partialorder %v7911_v33, 0.0 }
 0x3c3   :  { %7907 = vst [vmem:[#allocation55_spill] sm:$0xff] %v6536_v7  ;;  %v7913_v7 = vld [vmem:[#allocation46_spill] sm:$0xff] }
 0x3c4   :  { %7912 = vst [vmem:[#allocation56_spill] sm:$0xff] %v6552_v18  ;;  %v6555_v56 = vmul.f32 0.01, %v7913_v7  ;;  %v7916_v18 = vld [vmem:[#allocation11_spill] sm:$0xff]  ;;  %vm2395_vm15 = vcmp.ge.f32.partialorder %v7913_v7, 0.0 }
 0x3c5   :  { %v6580_v52 = vsel %vm7917_vm12, %v5853_v15, %v7916_v18  ;;  %v7919_v15 = vld [vmem:[#allocation62_spill] sm:$0xff]  ;;  %vm7920_vm12 = vcmp.ge.f32.partialorder %v5865_v4, 0.0  ;;  %v7930_v18 = vld [vmem:[#allocation68_spill] sm:$0xff] }
 0x3c6   :  { %7914 = vst [vmem:[#allocation45_spill] sm:$0xff] %v6555_v56  ;;  %v6574_v56 = vsel %vm2334_vm13, %v5849_v8, %v6208_v22  ;;  %v6596_v8 = vsel %vm2337_vm0, %v5861_v54, %v6223_v57  ;;  %v6602_v12 = vsel %vm7920_vm12, %v5865_v4, %v7919_v15  ;;  %v6608_v22 = vsel %vm7921_vm14, %v5869_v30, %v6235_v2  ;;  %v7924_v54 = vld [vmem:[#allocation64_spill] sm:$0xff]  ;;  %v7925_v30 = vld [vmem:[#allocation66_spill] sm:$0xff]  ;;  %v7927_v57 = vld [vmem:[#allocation67_spill] sm:$0xff] }
 0x3c7   :  { %vm7922_vm13 = vcmp.ge.f32.partialorder %v5873_v23, 0.0  ;;  %vm2385_vm0 = vcmp.ge.f32.partialorder %v7890_v40, 0.0  ;;  %v6624_v4 = vsel %vm2341_vm2, %v5877_v46, %v7924_v54  ;;  %vm7926_vm14 = vcmp.ge.f32.partialorder %v5881_v29, 0.0  ;;  %v7928_v2 = vld [vmem:[#allocation12_spill] sm:$0xff]  ;;  %v7931_v15 = vld [vmem:[#allocation13_spill] sm:$0xff]  ;;  %v7934_v46 = vld [vmem:[#allocation70_spill] sm:$0xff] }
 0x3c8   :  { %v6614_v61 = vsel %vm7922_vm13, %v5873_v23, %v6238_v45  ;;  %v6630_v23 = vsel %vm7926_vm14, %v5881_v29, %v7925_v30  ;;  %vm7929_vm13 = vcmp.ge.f32.partialorder %v7928_v2, 0.0  ;;  %vm7932_vm12 = vcmp.ge.f32.partialorder %v7931_v15, 0.0  ;;  %v7935_v54 = vld [vmem:[#allocation71_spill] sm:$0xff] }
 0x3c9   :  { %7923 = vst [vmem:[#allocation46_spill] sm:$0xff] %v6614_v61  ;;  %v6636_v45 = vsel %vm7929_vm13, %v7928_v2, %v7927_v57  ;;  %v6642_v61 = vsel %vm7932_vm12, %v7931_v15, %v7930_v18  ;;  %vm2389_vm2 = vcmp.ge.f32.partialorder %v7899_v32, 0.0  ;;  %v6652_v29 = vsel %vm2345_vm3, %v5893_v38, %v7934_v46  ;;  %v7937_v57 = vld [vmem:[#allocation72_spill] sm:$0xff]  ;;  %v7939_v18 = vld [vmem:[#allocation74_spill] sm:$0xff]  ;;  %v7943_v38 = vld [vmem:[#allocation75_spill] sm:$0xff] }
 0x3ca   :  { %7933 = vst [vmem:[#allocation47_spill] sm:$0xff] %v6642_v61  ;;  %vm7936_vm13 = vcmp.ge.f32.partialorder %v5897_v13, 0.0  ;;  %vm7938_vm12 = vcmp.ge.f32.partialorder %v5901_v62, 0.0  ;;  %v7940_v15 = vld [vmem:[#allocation14_spill] sm:$0xff]  ;;  %vm2393_vm3 = vcmp.ge.f32.partialorder %v7910_v11, 0.0 }
 0x3cb   :  { %v6658_v30 = vsel %vm7936_vm13, %v5897_v13, %v7935_v54  ;;  %v6664_v2 = vsel %vm7938_vm12, %v5901_v62, %v7937_v57  ;;  %vm7941_vm14 = vcmp.ge.f32.partialorder %v7940_v15, 0.0  ;;  %v6680_v13 = vsel %vm2349_vm4, %v5909_v59, %v7943_v38  ;;  %v7944_v62 = vld [vmem:[#allocation76_spill] sm:$0xff]  ;;  %v7946_v54 = vld [vmem:[#allocation78_spill] sm:$0xff] }
 0x3cc   :  { %v6670_v61 = vsel %vm7941_vm14, %v7940_v15, %v7939_v18  ;;  %vm7945_vm12 = vcmp.ge.f32.partialorder %v5913_v44, 0.0  ;;  %vm7947_vm14 = vcmp.ge.f32.partialorder %v5917_v28, 0.0  ;;  %v7949_v18 = vld [vmem:[#allocation79_spill] sm:$0xff]  ;;  %v7953_v59 = vld [vmem:[#allocation16_spill] sm:$0xff]  ;;  %vm7955_vm4 = vcmp.ge.f32.partialorder %v7817_v26, 0.0 }
 0x3cd   :  { %7942 = vst [vmem:[#allocation11_spill] sm:$0xff] %v6670_v61  ;;  %v6686_v46 = vsel %vm7945_vm12, %v5913_v44, %v7944_v62  ;;  %v6692_v57 = vsel %vm7947_vm14, %v5917_v28, %v7946_v54  ;;  %v7950_v15 = vld [vmem:[#allocation15_spill] sm:$0xff]  ;;  %v6704_v38 = vsel %vm2353_vm5, %v7814_v20, %v7953_v59  ;;  %v7954_v44 = vld [vmem:[#allocation17_spill] sm:$0xff]  ;;  %v7957_v54 = vld [vmem:[#allocation18_spill] sm:$0xff]  ;;  %vm7965_vm5 = vcmp.ge.f32.partialorder %v7826_v9, 0.0 }
 0x3ce   :  { %7948 = vst [vmem:[#allocation62_spill] sm:$0xff] %v6692_v57  ;;  %vm7951_vm13 = vcmp.ge.f32.partialorder %v7950_v15, 0.0  ;;  %v6710_v62 = vsel %vm7955_vm4, %v7817_v26, %v7954_v44  ;;  %v7956_v28 = vld [vmem:[#allocation81_spill] sm:$0xff]  ;;  %vm7958_vm12 = vcmp.ge.f32.partialorder %v7957_v54, 0.0  ;;  %v7963_v20 = vld [vmem:[#allocation31_spill] sm:$0xff]  ;;  %v7964_v26 = vld [vmem:[#allocation32_spill] sm:$0xff] }
 0x3cf   :  { %v6698_v61 = vsel %vm7951_vm13, %v7950_v15, %v7949_v18  ;;  %v6716_v57 = vsel %vm7958_vm12, %v7957_v54, %v7956_v28  ;;  %v7959_v18 = vld [vmem:[#allocation82_spill] sm:$0xff]  ;;  %v7960_v15 = vld [vmem:[#allocation19_spill] sm:$0xff]  ;;  %v6728_v59 = vsel %vm2357_vm6, %v7824_v10, %v7963_v20  ;;  %v6734_v44 = vsel %vm7965_vm5, %v7826_v9, %v7964_v26  ;;  %v7966_v28 = vld [vmem:[#allocation33_spill] sm:$0xff] }
 0x3d0   :  { %7952 = vst [vmem:[#allocation64_spill] sm:$0xff] %v6698_v61  ;;  %vm7961_vm13 = vcmp.ge.f32.partialorder %v7960_v15, 0.0  ;;  %vm7967_vm14 = vcmp.ge.f32.partialorder %v7828_v27, 0.0  ;;  %v7972_v10 = vld [vmem:[#allocation35_spill] sm:$0xff]  ;;  %v7973_v9 = vld [vmem:[#allocation57_spill] sm:$0xff]  ;;  %vm7974_vm6 = vcmp.ge.f32.partialorder %v7835_v47, 0.0 }
 0x3d1   :  { %v6722_v61 = vsel %vm7961_vm13, %v7960_v15, %v7959_v18  ;;  %v6740_v54 = vsel %vm7967_vm14, %v7828_v27, %v7966_v28  ;;  %v7968_v18 = vld [vmem:[#allocation85_spill] sm:$0xff]  ;;  %v7969_v15 = vld [vmem:[#allocation34_spill] sm:$0xff]  ;;  %v6752_v20 = vsel %vm2361_vm7, %v7833_v60, %v7972_v10  ;;  %v6758_v26 = vsel %vm7974_vm6, %v7835_v47, %v7973_v9  ;;  %v7983_v47 = vld [vmem:[#allocation60_spill] sm:$0xff] }
 0x3d2   :  { %7962 = vst [vmem:[#allocation66_spill] sm:$0xff] %v6722_v61  ;;  %vm7970_vm4 = vcmp.ge.f32.partialorder %v7969_v15, 0.0  ;;  %v7975_v27 = vld [vmem:[#allocation37_spill] sm:$0xff]  ;;  %vm7976_vm12 = vcmp.ge.f32.partialorder %v7838_v43, 0.0  ;;  %v7982_v60 = vld [vmem:[#allocation58_spill] sm:$0xff]  ;;  %vm7984_vm7 = vcmp.ge.f32.partialorder %v7845_v37, 0.0 }
 0x3d3   :  { %v6746_v61 = vsel %vm7970_vm4, %v7969_v15, %v7968_v18  ;;  %v6764_v28 = vsel %vm7976_vm12, %v7838_v43, %v7975_v27  ;;  %v7978_v18 = vld [vmem:[#allocation87_spill] sm:$0xff]  ;;  %v6776_v10 = vsel %vm2365_vm8, %v7842_v0, %v7982_v60  ;;  %v6782_v9 = vsel %vm7984_vm7, %v7845_v37, %v7983_v47  ;;  %v7985_v43 = vld [vmem:[#allocation89_spill] sm:$0xff]  ;;  %v7992_v0 = vld [vmem:[#allocation20_spill] sm:$0xff] }
 0x3d4   :  { %7971 = vst [vmem:[#allocation67_spill] sm:$0xff] %v6746_v61  ;;  %7977 = vst [vmem:[#allocation12_spill] sm:$0xff] %v6764_v28  ;;  %v7979_v15 = vld [vmem:[#allocation39_spill] sm:$0xff]  ;;  %v6800_v60 = vsel %vm2369_vm9, %v7851_v1, %v7992_v0  ;;  %v7993_v37 = vld [vmem:[#allocation21_spill] sm:$0xff]  ;;  %vm7994_vm8 = vcmp.ge.f32.partialorder %v7853_v55, 0.0  ;;  %vm7996_vm4 = vcmp.ge.f32.partialorder %v7855_v48, 0.0 }
 0x3d5   :  { %vm7980_vm13 = vcmp.ge.f32.partialorder %v7979_v15, 0.0  ;;  %v7986_v27 = vld [vmem:[#allocation59_spill] sm:$0xff]  ;;  %v6806_v47 = vsel %vm7994_vm8, %v7853_v55, %v7993_v37  ;;  %v8000_v1 = vld [vmem:[#allocation24_spill] sm:$0xff]  ;;  %v8001_v55 = vld [vmem:[#allocation25_spill] sm:$0xff]  ;;  %vm8002_vm9 = vcmp.ge.f32.partialorder %v7862_v41, 0.0  ;;  %vm8004_vm12 = vcmp.ge.f32.partialorder %v7866_v17, 0.0 }
 0x3d6   :  { %v6770_v61 = vsel %vm7980_vm13, %v7979_v15, %v7978_v18  ;;  %vm7987_vm5 = vcmp.ge.f32.partialorder %v7986_v27, 0.0  ;;  %v7988_v18 = vld [vmem:[#allocation90_spill] sm:$0xff]  ;;  %v7989_v15 = vld [vmem:[#allocation44_spill] sm:$0xff]  ;;  %v6824_v0 = vsel %vm2373_vm10, %v7860_v36, %v8000_v1  ;;  %v6830_v37 = vsel %vm8002_vm9, %v7862_v41, %v8001_v55  ;;  %v8009_v41 = vld [vmem:[#allocation29_spill] sm:$0xff] }
 0x3d7   :  { %7981 = vst [vmem:[#allocation68_spill] sm:$0xff] %v6770_v61  ;;  %v6788_v28 = vsel %vm7987_vm5, %v7986_v27, %v7985_v43  ;;  %vm7990_vm14 = vcmp.ge.f32.partialorder %v7989_v15, 0.0  ;;  %v7995_v43 = vld [vmem:[#allocation22_spill] sm:$0xff]  ;;  %vm8006_vm13 = vcmp.ge.f32.partialorder %v7868_v34, 0.0  ;;  %v8007_v36 = vld [vmem:[#allocation28_spill] sm:$0xff]  ;;  %vm8008_vm10 = vcmp.ge.f32.partialorder %v7870_v35, 0.0 }
 0x3d8   :  { %v6794_v61 = vsel %vm7990_vm14, %v7989_v15, %v7988_v18  ;;  %v6812_v27 = vsel %vm7996_vm4, %v7855_v48, %v7995_v43  ;;  %v7997_v18 = vld [vmem:[#allocation93_spill] sm:$0xff]  ;;  %v7998_v15 = vld [vmem:[#allocation23_spill] sm:$0xff]  ;;  %v8003_v48 = vld [vmem:[#allocation26_spill] sm:$0xff]  ;;  %v6848_v1 = vsel %vm8008_vm10, %v7870_v35, %v8007_v36  ;;  %vm8010_vm7 = vcmp.ge.f32.partialorder %v7873_v19, 0.0 }
 0x3d9   :  { %7991 = vst [vmem:[#allocation13_spill] sm:$0xff] %v6794_v61  ;;  %vm7999_vm6 = vcmp.ge.f32.partialorder %v7998_v15, 0.0  ;;  %v6836_v43 = vsel %vm8004_vm12, %v7866_v17, %v8003_v48  ;;  %v6854_v55 = vsel %vm8010_vm7, %v7873_v19, %v8009_v41  ;;  %v8011_v17 = vld [vmem:[#allocation30_spill] sm:$0xff]  ;;  %vm8012_vm5 = vcmp.ge.f32.partialorder %v7875_v25, 0.0  ;;  %v8016_v19 = vld [vmem:[#allocation40_spill] sm:$0xff] }
 0x3da   :  { %v6818_v61 = vsel %vm7999_vm6, %v7998_v15, %v7997_v18  ;;  %v8005_v18 = vld [vmem:[#allocation27_spill] sm:$0xff]  ;;  %v6860_v48 = vsel %vm8012_vm5, %v7875_v25, %v8011_v17  ;;  %vm8014_vm14 = vcmp.ge.f32.partialorder %v7877_v53, 0.0  ;;  %v8015_v35 = vld [vmem:[#allocation38_spill] sm:$0xff]  ;;  %vm8017_vm8 = vcmp.ge.f32.partialorder %v7882_v21, 0.0  ;;  %v8018_v25 = vld [vmem:[#allocation41_spill] sm:$0xff] }
 0x3db   :  { %v6842_v15 = vsel %vm8006_vm13, %v7868_v34, %v8005_v18  ;;  %v8013_v34 = vld [vmem:[#allocation36_spill] sm:$0xff]  ;;  %v6872_v36 = vsel %vm2381_vm1, %v7880_v51, %v8015_v35  ;;  %v6878_v41 = vsel %vm8017_vm8, %v7882_v21, %v8016_v19  ;;  %vm8019_vm4 = vcmp.ge.f32.partialorder %v7884_v5, 0.0  ;;  %v8022_v51 = vld [vmem:[#allocation43_spill] sm:$0xff]  ;;  %v8024_v21 = vld [vmem:[#allocation49_spill] sm:$0xff] }
 0x3dc   :  { %v6866_v18 = vsel %vm8014_vm14, %v7877_v53, %v8013_v34  ;;  %v6884_v17 = vsel %vm8019_vm4, %v7884_v5, %v8018_v25  ;;  %v8020_v53 = vld [vmem:[#allocation42_spill] sm:$0xff]  ;;  %vm8021_vm6 = vcmp.ge.f32.partialorder %v7888_v6, 0.0  ;;  %v6896_v35 = vsel %vm2385_vm0, %v7890_v40, %v8022_v51  ;;  %v8033_v40 = vld [vmem:[#allocation52_spill] sm:$0xff] }
 0x3dd   :  { %v6890_v34 = vsel %vm8021_vm6, %v7888_v6, %v8020_v53  ;;  %8023 = vst [vmem:[#allocation70_spill] sm:$0xff] %v6896_v35  ;;  %vm8025_vm1 = vcmp.ge.f32.partialorder %v7892_v14, 0.0  ;;  %v8027_v5 = vld [vmem:[#allocation50_spill] sm:$0xff]  ;;  %vm8028_vm9 = vcmp.ge.f32.partialorder %v7895_v3, 0.0  ;;  %v8030_v6 = vld [vmem:[#allocation51_spill] sm:$0xff]  ;;  %vm8031_vm12 = vcmp.ge.f32.partialorder %v7897_v16, 0.0 }
 0x3de   :  { %v6902_v19 = vsel %vm8025_vm1, %v7892_v14, %v8024_v21  ;;  %v6908_v25 = vsel %vm8028_vm9, %v7895_v3, %v8027_v5  ;;  %v6914_v53 = vsel %vm8031_vm12, %v7897_v16, %v8030_v6  ;;  %v6920_v51 = vsel %vm2389_vm2, %v7899_v32, %v8033_v40  ;;  %v8035_v14 = vld [vmem:[#allocation53_spill] sm:$0xff]  ;;  %v8038_v3 = vld [vmem:[#allocation54_spill] sm:$0xff]  ;;  %v8041_v16 = vld [vmem:[#allocation55_spill] sm:$0xff] }
 0x3df   :  { %8026 = vst [vmem:[#allocation71_spill] sm:$0xff] %v6902_v19  ;;  %8029 = vst [vmem:[#allocation72_spill] sm:$0xff] %v6908_v25  ;;  %vm8036_vm0 = vcmp.ge.f32.partialorder %v7902_v42, 0.0  ;;  %vm8039_vm13 = vcmp.ge.f32.partialorder %v7904_v63, 0.0  ;;  %vm8042_vm10 = vcmp.ge.f32.partialorder %v7906_v58, 0.0  ;;  %v6944_v32 = vsel %vm2393_vm3, %v7910_v11, %v6549_v50  ;;  %v8050_v50 = vld [vmem:[#allocation48_spill] sm:$0xff] }
 0x3e0   :  { %8032 = vst [vmem:[#allocation74_spill] sm:$0xff] %v6914_v53  ;;  %8034 = vst [vmem:[#allocation14_spill] sm:$0xff] %v6920_v51  ;;  %v6926_v21 = vsel %vm8036_vm0, %v7902_v42, %v8035_v14  ;;  %v6932_v5 = vsel %vm8039_vm13, %v7904_v63, %v8038_v3  ;;  %v6938_v6 = vsel %vm8042_vm10, %v7906_v58, %v8041_v16  ;;  %v8045_v42 = vld [vmem:[#allocation56_spill] sm:$0xff]  ;;  %v8047_v63 = vld [vmem:[#allocation45_spill] sm:$0xff]  ;;  %vm8049_vm2 = vcmp.ge.f32.partialorder %v7915_v24, 0.0 }
 0x3e1   :  { %8037 = vst [vmem:[#allocation75_spill] sm:$0xff] %v6926_v21  ;;  %8040 = vst [vmem:[#allocation76_spill] sm:$0xff] %v6932_v5  ;;  %v6950_v40 = vsel %vm2394_vm11, %v7911_v33, %v8045_v42  ;;  %v6956_v14 = vsel %vm2395_vm15, %v7913_v7, %v8047_v63  ;;  %v2578_v58 = vsel %vm8049_vm2, %v7915_v24, %v6568_v39  ;;  %v8051_v11 = vld [vmem:[#allocation2_spill] sm:$0xff]  ;;  %v8055_v42 = vld [vmem:[#allocation8_spill] sm:$0xff] }
 0x3e2   :  { %8043 = vst [vmem:[#allocation78_spill] sm:$0xff] %v6938_v6  ;;  %8044 = vst [vmem:[#allocation79_spill] sm:$0xff] %v6944_v32  ;;  %v3331_v3 = vpack.c.bf16 %v2578_v58, %v2578_v58  ;;  %v3335_v16 = vpack.c.bf16 %v8051_v11, %v8050_v50  ;;  %v8052_v32 = vld [vmem:[#allocation3_spill] sm:$0xff]  ;;  %v8053_v6 = vld [vmem:[#allocation4_spill] sm:$0xff] }
 0x3e3   :  { %8046 = vst [vmem:[#allocation15_spill] sm:$0xff] %v6950_v40  ;;  %8048 = vst [vmem:[#allocation16_spill] sm:$0xff] %v6956_v14  ;;  %v3340_v5 = vpack.c.bf16 %v8053_v6, %v8052_v32  ;;  %v8054_v33 = vld [vmem:[#allocation6_spill] sm:$0xff]  ;;  %v8057_v51 = vld [vmem:[#allocation61_spill] sm:$0xff] }
 0x3e4   :  { %v3345_v40 = vpack.c.bf16 %v8055_v42, %v8054_v33  ;;  %v8056_v21 = vld [vmem:[#allocation10_spill] sm:$0xff]  ;;  %v8058_v7 = vld [vmem:[#allocation63_spill] sm:$0xff]  ;;  %v8059_v63 = vld [vmem:[#allocation65_spill] sm:$0xff]  ;;  %3336 = vst [vmem:[%s7194_s4] sm:$0xff] %v3335_v16  }
 0x3e5   :  { %v3350_v53 = vpack.c.bf16 %v8057_v51, %v8056_v21  ;;  %v3355_v14 = vpack.c.bf16 %v8059_v63, %v8058_v7  ;;  %v8060_v25 = vld [vmem:[#allocation69_spill] sm:$0xff]  ;;  %v8063_v24 = vld [vmem:[#allocation80_spill] sm:$0xff]  ;;  %3557 = vst [vmem:[%s7194_s4 + $0x8] sm:$0xff] %v3340_v5   ;;  %v8064_v51 = vld [vmem:[#allocation83_spill] sm:$0xff] }
 0x3e6   :  { %v8061_v19 = vld [vmem:[#allocation73_spill] sm:$0xff]  ;;  %3558 = vst [vmem:[%s7194_s4 + $0x10] sm:$0xff] %v3345_v40   ;;  %v8065_v21 = vld [vmem:[#allocation84_spill] sm:$0xff]  ;;  %v8066_v32 = vld [vmem:[#allocation86_spill] sm:$0xff] }
 0x3e7   :  { %v3360_v35 = vpack.c.bf16 %v8061_v19, %v8060_v25  ;;  %v8062_v39 = vld [vmem:[#allocation77_spill] sm:$0xff]  ;;  %v3370_v6 = vpack.c.bf16 %v8065_v21, %v8064_v51  ;;  %v8067_v19 = vld [vmem:[#allocation88_spill] sm:$0xff]  ;;  %v8068_v50 = vld [vmem:[#allocation91_spill] sm:$0xff]  ;;  %3034 = vst [vmem:[%s7194_s4 + $0x168] sm:$0xf] %v3331_v3  ;;  %v3465_v21 = vpack.c.bf16 %v6740_v54, %v6734_v44 }
 0x3e8   :  { %v3365_v58 = vpack.c.bf16 %v8063_v24, %v8062_v39  ;;  %v3375_v25 = vpack.c.bf16 %v8067_v19, %v8066_v32  ;;  %v8069_v11 = vld [vmem:[#allocation92_spill] sm:$0xff]  ;;  %v8070_v42 = vld [vmem:[#allocation5_spill] sm:$0xff]  ;;  %v8071_v7 = vld [vmem:[#allocation94_spill] sm:$0xff]  ;;  %3559 = vst [vmem:[%s7194_s4 + $0x18] sm:$0xff] %v3350_v53  }
 0x3e9   :  { %v3380_v33 = vpack.c.bf16 %v8069_v11, %v8068_v50  ;;  %v3385_v16 = vpack.c.bf16 %v8071_v7, %v8070_v42  ;;  %3560 = vst [vmem:[%s7194_s4 + $0x20] sm:$0xff] %v3355_v14   ;;  %3561 = vst [vmem:[%s7194_s4 + $0x28] sm:$0xff] %v3360_v35   ;;  %v8072_v5 = vld [vmem:[#allocation95_spill] sm:$0xff]  ;;  %v8074_v3 = vld [vmem:[#allocation96_spill] sm:$0xff]  ;;  %v3405_v14 = vpack.c.bf16 %v6580_v52, %v6574_v56 }
 0x3ea   :  { %3562 = vst [vmem:[%s7194_s4 + $0x30] sm:$0xff] %v3365_v58   ;;  %v8073_v40 = vld [vmem:[#allocation7_spill] sm:$0xff]  ;;  %v8075_v39 = vld [vmem:[#allocation97_spill] sm:$0xff]  ;;  %3563 = vst [vmem:[%s7194_s4 + $0x38] sm:$0xff] %v3370_v6   ;;  %v3415_v56 = vpack.c.bf16 %v6608_v22, %v6602_v12  ;;  %v3425_v58 = vpack.c.bf16 %v6636_v45, %v6630_v23  ;;  %v3435_v12 = vpack.c.bf16 %v6664_v2, %v6658_v30 }
 0x3eb   :  { %v3390_v63 = vpack.c.bf16 %v8073_v40, %v8072_v5  ;;  %v3395_v24 = vpack.c.bf16 %v8075_v39, %v8074_v3  ;;  %v8076_v51 = vld [vmem:[#allocation9_spill] sm:$0xff]  ;;  %3564 = vst [vmem:[%s7194_s4 + $0x40] sm:$0xff] %v3375_v25   ;;  %3565 = vst [vmem:[%s7194_s4 + $0x48] sm:$0xff] %v3380_v33   ;;  %v8077_v52 = vld [vmem:[#allocation46_spill] sm:$0xff]  ;;  %v3455_v2 = vpack.c.bf16 %v6716_v57, %v6710_v62 }
 0x3ec   :  { %v3400_v53 = vpack.c.bf16 %v6561_v31, %v8076_v51  ;;  %3566 = vst [vmem:[%s7194_s4 + $0x50] sm:$0xff] %v3385_v16   ;;  %v3410_v31 = vpack.c.bf16 %v6596_v8, %v6586_v49  ;;  %v3420_v35 = vpack.c.bf16 %v6624_v4, %v8077_v52  ;;  %3570 = vst [vmem:[%s7194_s4 + $0x70] sm:$0xff] %v3405_v14   ;;  %v8078_v49 = vld [vmem:[#allocation47_spill] sm:$0xff]  ;;  %v8080_v23 = vld [vmem:[#allocation62_spill] sm:$0xff] }
 0x3ed   :  { %3567 = vst [vmem:[%s7194_s4 + $0x58] sm:$0xff] %v3390_v63   ;;  %3568 = vst [vmem:[%s7194_s4 + $0x60] sm:$0xff] %v3395_v24   ;;  %v3430_v8 = vpack.c.bf16 %v6652_v29, %v8078_v49  ;;  %v8079_v22 = vld [vmem:[#allocation11_spill] sm:$0xff]  ;;  %v3445_v45 = vpack.c.bf16 %v8080_v23, %v6686_v46  ;;  %v8081_v29 = vld [vmem:[#allocation64_spill] sm:$0xff]  ;;  %v3485_v6 = vpack.c.bf16 %v6788_v28, %v6782_v9 }
 0x3ee   :  { %3569 = vst [vmem:[%s7194_s4 + $0x68] sm:$0xff] %v3400_v53   ;;  %v3440_v4 = vpack.c.bf16 %v6680_v13, %v8079_v22  ;;  %3571 = vst [vmem:[%s7194_s4 + $0x78] sm:$0xff] %v3410_v31   ;;  %v3450_v30 = vpack.c.bf16 %v6704_v38, %v8081_v29  ;;  %v8082_v13 = vld [vmem:[#allocation66_spill] sm:$0xff]  ;;  %v8083_v57 = vld [vmem:[#allocation67_spill] sm:$0xff]  ;;  %v3495_v28 = vpack.c.bf16 %v6812_v27, %v6806_v47 }
 0x3ef   :  { %3572 = vst [vmem:[%s7194_s4 + $0x80] sm:$0xff] %v3415_v56   ;;  %3573 = vst [vmem:[%s7194_s4 + $0x88] sm:$0xff] %v3420_v35   ;;  %v3460_v46 = vpack.c.bf16 %v6728_v59, %v8082_v13  ;;  %v3470_v38 = vpack.c.bf16 %v6752_v20, %v8083_v57  ;;  %v8084_v62 = vld [vmem:[#allocation12_spill] sm:$0xff]  ;;  %v8086_v20 = vld [vmem:[#allocation13_spill] sm:$0xff]  ;;  %v3505_v9 = vpack.c.bf16 %v6836_v43, %v6830_v37 }
 0x3f0   :  { %3574 = vst [vmem:[%s7194_s4 + $0x90] sm:$0xff] %v3425_v58   ;;  %3575 = vst [vmem:[%s7194_s4 + $0x98] sm:$0xff] %v3430_v8   ;;  %v3475_v59 = vpack.c.bf16 %v8084_v62, %v6758_v26  ;;  %v8085_v44 = vld [vmem:[#allocation68_spill] sm:$0xff]  ;;  %v3490_v26 = vpack.c.bf16 %v6800_v60, %v8086_v20  ;;  %v3515_v60 = vpack.c.bf16 %v6860_v48, %v6854_v55  ;;  %v8088_v43 = vld [vmem:[#allocation71_spill] sm:$0xff] }
 0x3f1   :  { %3576 = vst [vmem:[%s7194_s4 + $0xa0] sm:$0xff] %v3435_v12   ;;  %3577 = vst [vmem:[%s7194_s4 + $0xa8] sm:$0xff] %v3440_v4   ;;  %v3480_v54 = vpack.c.bf16 %v6776_v10, %v8085_v44  ;;  %v3500_v10 = vpack.c.bf16 %v6824_v0, %v6818_v61  ;;  %v3510_v61 = vpack.c.bf16 %v6848_v1, %v6842_v15  ;;  %v8087_v0 = vld [vmem:[#allocation70_spill] sm:$0xff]  ;;  %v8089_v15 = vld [vmem:[#allocation72_spill] sm:$0xff] }
 0x3f2   :  { %3578 = vst [vmem:[%s7194_s4 + $0xb0] sm:$0xff] %v3445_v45   ;;  %3579 = vst [vmem:[%s7194_s4 + $0xb8] sm:$0xff] %v3450_v30   ;;  %v3520_v47 = vpack.c.bf16 %v6872_v36, %v6866_v18  ;;  %v3525_v27 = vpack.c.bf16 %v6884_v17, %v6878_v41  ;;  %v3530_v37 = vpack.c.bf16 %v8087_v0, %v6890_v34  ;;  %v8090_v55 = vld [vmem:[#allocation74_spill] sm:$0xff]  ;;  %v8092_v36 = vld [vmem:[#allocation75_spill] sm:$0xff] }
 0x3f3   :  { %3580 = vst [vmem:[%s7194_s4 + $0xc0] sm:$0xff] %v3455_v2   ;;  %3581 = vst [vmem:[%s7194_s4 + $0xc8] sm:$0xff] %v3460_v46   ;;  %v3535_v1 = vpack.c.bf16 %v8089_v15, %v8088_v43  ;;  %v8091_v48 = vld [vmem:[#allocation14_spill] sm:$0xff]  ;;  %v8093_v41 = vld [vmem:[#allocation76_spill] sm:$0xff] }
 0x3f4   :  { %3582 = vst [vmem:[%s7194_s4 + $0xd0] sm:$0xff] %v3465_v21   ;;  %3583 = vst [vmem:[%s7194_s4 + $0xd8] sm:$0xff] %v3470_v38   ;;  %v3540_v18 = vpack.c.bf16 %v8091_v48, %v8090_v55  ;;  %v3545_v17 = vpack.c.bf16 %v8093_v41, %v8092_v36  ;;  %v8094_v34 = vld [vmem:[#allocation78_spill] sm:$0xff]  ;;  %v8095_v32 = vld [vmem:[#allocation79_spill] sm:$0xff] }
 0x3f5   :  { %3584 = vst [vmem:[%s7194_s4 + $0xe0] sm:$0xff] %v3475_v59   ;;  %3585 = vst [vmem:[%s7194_s4 + $0xe8] sm:$0xff] %v3480_v54   ;;  %v3550_v19 = vpack.c.bf16 %v8095_v32, %v8094_v34  ;;  %v8096_v25 = vld [vmem:[#allocation15_spill] sm:$0xff]  ;;  %v8097_v50 = vld [vmem:[#allocation16_spill] sm:$0xff] }
 0x3f6   :  { %3586 = vst [vmem:[%s7194_s4 + $0xf0] sm:$0xff] %v3485_v6   ;;  %3587 = vst [vmem:[%s7194_s4 + $0xf8] sm:$0xff] %v3490_v26   ;;  %v3555_v11 = vpack.c.bf16 %v8097_v50, %v8096_v25 }
 0x3f7   :  { %3588 = vst [vmem:[%s7194_s4 + $0x100] sm:$0xff] %v3495_v28   ;;  %3589 = vst [vmem:[%s7194_s4 + $0x108] sm:$0xff] %v3500_v10  }
 0x3f8   :  { %3590 = vst [vmem:[%s7194_s4 + $0x110] sm:$0xff] %v3505_v9   ;;  %3591 = vst [vmem:[%s7194_s4 + $0x118] sm:$0xff] %v3510_v61  }
 0x3f9   :  { %3592 = vst [vmem:[%s7194_s4 + $0x120] sm:$0xff] %v3515_v60   ;;  %3593 = vst [vmem:[%s7194_s4 + $0x128] sm:$0xff] %v3520_v47  }
 0x3fa   :  { %3594 = vst [vmem:[%s7194_s4 + $0x130] sm:$0xff] %v3525_v27   ;;  %3595 = vst [vmem:[%s7194_s4 + $0x138] sm:$0xff] %v3530_v37  }
 0x3fb   :  { %3596 = vst [vmem:[%s7194_s4 + $0x140] sm:$0xff] %v3535_v1   ;;  %3597 = vst [vmem:[%s7194_s4 + $0x148] sm:$0xff] %v3540_v18  }
 0x3fc   :  { %3598 = vst [vmem:[%s7194_s4 + $0x150] sm:$0xff] %v3545_v17   ;;  %3599 = vst [vmem:[%s7194_s4 + $0x158] sm:$0xff] %v3550_v19  }
 0x3fd   :  { %3600 = vst [vmem:[%s7194_s4 + $0x160] sm:$0xff] %v3555_v11  }

// kernel: g1_forward.13
= control target key start
LH: loop header
LB: loop body
LE: loop exit
PB: predicated region body
PF: predicated region fallthrough
CT: control target
= control target key end

     0   :  { %s4511_s1 = inlined_call_operand.vmem [shape: bf16[1152,256], index: 1, kind: input, shape index: {}]   ;;  %s4512_s0 = inlined_call_operand.vmem [shape: bf16[168,1152], index: 0, kind: input, shape index: {}]   ;;  %s4513_s2 = inlined_call_operand.vmem [shape: f32[1,256], index: 2, kind: input, shape index: {}]   ;;  %s4514_s3 = inlined_call_operand.vmem [shape: bf16[168,256], index: 3, kind: output, shape index: {}]  }
   0x1   :  { %v3002_v0 = vld [vmem:[%s4511_s1 + $0x4] ss:$8 sps:$4 sm:$0xff]   ;;  %v3006_v2 = vld [vmem:[%s4511_s1] ss:$8 sps:$4 sm:$0xff]   ;;  %v3008_v4 = vld [vmem:[%s4511_s1 + $0x14] ss:$8 sps:$4 sm:$0xff]  }
   0x2   :  { %v3004_v1 = vld [vmem:[%s4511_s1 + $0x204] ss:$8 sps:$4 sm:$0xff]   ;;  %1488 = vmatprep.subr.bf16.mxu1 %v3002_v0  ;;  %v3007_v3 = vld [vmem:[%s4511_s1 + $0x200] ss:$8 sps:$4 sm:$0xff]   ;;  %v3010_v5 = vld [vmem:[%s4511_s1 + $0x214] ss:$8 sps:$4 sm:$0xff]  }
   0x3   :  { %1770 = vmatprep.subr.bf16.mxu0 %v3004_v1  ;;  %1489 = vmatpush1.bf16.msra.mxu1 %v3006_v2  ;;  %v3012_v6 = vld [vmem:[%s4511_s1 + $0x10] ss:$8 sps:$4 sm:$0xff]   ;;  %v3014_v8 = vld [vmem:[%s4511_s1 + $0x24] ss:$8 sps:$4 sm:$0xff]   ;;  %v3018_v10 = vld [vmem:[%s4511_s1 + $0x20] ss:$8 sps:$4 sm:$0xff]  }
   0x4   :  { %1771 = vmatpush1.bf16.msra.mxu0 %v3007_v3  ;;  %1490 = vmatprep.subr.bf16.mxu1 %v3008_v4  ;;  %v3013_v7 = vld [vmem:[%s4511_s1 + $0x210] ss:$8 sps:$4 sm:$0xff]   ;;  %v3016_v9 = vld [vmem:[%s4511_s1 + $0x224] ss:$8 sps:$4 sm:$0xff]   ;;  %v3019_v11 = vld [vmem:[%s4511_s1 + $0x220] ss:$8 sps:$4 sm:$0xff]  }
   0x5   :  { %1772 = vmatprep.subr.bf16.mxu0 %v3010_v5  ;;  %v3020_v12 = vld [vmem:[%s4511_s1 + $0x34] ss:$8 sps:$4 sm:$0xff]   ;;  %v3024_v14 = vld [vmem:[%s4511_s1 + $0x30] ss:$8 sps:$4 sm:$0xff]   ;;  %v3026_v16 = vld [vmem:[%s4511_s1 + $0x44] ss:$8 sps:$4 sm:$0xff]  }
   0x6   :  { %v3022_v13 = vld [vmem:[%s4511_s1 + $0x234] ss:$8 sps:$4 sm:$0xff]   ;;  %v3025_v15 = vld [vmem:[%s4511_s1 + $0x230] ss:$8 sps:$4 sm:$0xff]   ;;  %v3028_v17 = vld [vmem:[%s4511_s1 + $0x244] ss:$8 sps:$4 sm:$0xff]  }
   0x7   :  { %1491 = vmatpush1.bf16.msra.mxu1 %v3012_v6  ;;  %v3030_v18 = vld [vmem:[%s4511_s1 + $0x40] ss:$8 sps:$4 sm:$0xff]   ;;  %v3032_v20 = vld [vmem:[%s4511_s1 + $0x54] ss:$8 sps:$4 sm:$0xff]   ;;  %v3036_v22 = vld [vmem:[%s4511_s1 + $0x50] ss:$8 sps:$4 sm:$0xff]  }
   0x8   :  { %1773 = vmatpush1.bf16.msra.mxu0 %v3013_v7  ;;  %1492 = vmatprep.subr.bf16.mxu1 %v3014_v8  ;;  %v3031_v19 = vld [vmem:[%s4511_s1 + $0x240] ss:$8 sps:$4 sm:$0xff]   ;;  %v3034_v21 = vld [vmem:[%s4511_s1 + $0x254] ss:$8 sps:$4 sm:$0xff]   ;;  %v3037_v23 = vld [vmem:[%s4511_s1 + $0x250] ss:$8 sps:$4 sm:$0xff]  }
   0x9   :  { %1774 = vmatprep.subr.bf16.mxu0 %v3016_v9  ;;  %v3038_v24 = vld [vmem:[%s4511_s1 + $0x64] ss:$8 sps:$4 sm:$0xff]   ;;  %v3042_v26 = vld [vmem:[%s4511_s1 + $0x60] ss:$8 sps:$4 sm:$0xff]   ;;  %v3044_v28 = vld [vmem:[%s4511_s1 + $0x74] ss:$8 sps:$4 sm:$0xff]  }
   0xa   :  { %v3040_v25 = vld [vmem:[%s4511_s1 + $0x264] ss:$8 sps:$4 sm:$0xff]   ;;  %v3043_v27 = vld [vmem:[%s4511_s1 + $0x260] ss:$8 sps:$4 sm:$0xff]   ;;  %v3046_v29 = vld [vmem:[%s4511_s1 + $0x274] ss:$8 sps:$4 sm:$0xff]  }
   0xb   :  { %1493 = vmatpush1.bf16.msra.mxu1 %v3018_v10  ;;  %v3048_v30 = vld [vmem:[%s4511_s1 + $0x70] ss:$8 sps:$4 sm:$0xff]   ;;  %v3050_v32 = vld [vmem:[%s4511_s1 + $0x84] ss:$8 sps:$4 sm:$0xff]   ;;  %v3054_v34 = vld [vmem:[%s4511_s1 + $0x80] ss:$8 sps:$4 sm:$0xff]  }
   0xc   :  { %1775 = vmatpush1.bf16.msra.mxu0 %v3019_v11  ;;  %1494 = vmatprep.subr.bf16.mxu1 %v3020_v12  ;;  %v3049_v31 = vld [vmem:[%s4511_s1 + $0x270] ss:$8 sps:$4 sm:$0xff]   ;;  %v3052_v33 = vld [vmem:[%s4511_s1 + $0x284] ss:$8 sps:$4 sm:$0xff]   ;;  %v3055_v35 = vld [vmem:[%s4511_s1 + $0x280] ss:$8 sps:$4 sm:$0xff]  }
   0xd   :  { %1776 = vmatprep.subr.bf16.mxu0 %v3022_v13  ;;  %v3056_v36 = vld [vmem:[%s4511_s1 + $0x94] ss:$8 sps:$4 sm:$0xff]   ;;  %v3060_v38 = vld [vmem:[%s4511_s1 + $0x90] ss:$8 sps:$4 sm:$0xff]   ;;  %v3062_v40 = vld [vmem:[%s4511_s1 + $0xa4] ss:$8 sps:$4 sm:$0xff]  }
   0xe   :  { %v3058_v37 = vld [vmem:[%s4511_s1 + $0x294] ss:$8 sps:$4 sm:$0xff]   ;;  %v3061_v39 = vld [vmem:[%s4511_s1 + $0x290] ss:$8 sps:$4 sm:$0xff]   ;;  %v3064_v41 = vld [vmem:[%s4511_s1 + $0x2a4] ss:$8 sps:$4 sm:$0xff]  }
   0xf   :  { %1495 = vmatpush1.bf16.msra.mxu1 %v3024_v14  ;;  %v3066_v42 = vld [vmem:[%s4511_s1 + $0xa0] ss:$8 sps:$4 sm:$0xff]   ;;  %v3068_v44 = vld [vmem:[%s4511_s1 + $0xb4] ss:$8 sps:$4 sm:$0xff]   ;;  %v3072_v46 = vld [vmem:[%s4511_s1 + $0xb0] ss:$8 sps:$4 sm:$0xff]  }
  0x10   :  { %1777 = vmatpush1.bf16.msra.mxu0 %v3025_v15  ;;  %1496 = vmatprep.subr.bf16.mxu1 %v3026_v16  ;;  %v3067_v43 = vld [vmem:[%s4511_s1 + $0x2a0] ss:$8 sps:$4 sm:$0xff]   ;;  %v3070_v45 = vld [vmem:[%s4511_s1 + $0x2b4] ss:$8 sps:$4 sm:$0xff]   ;;  %v3073_v47 = vld [vmem:[%s4511_s1 + $0x2b0] ss:$8 sps:$4 sm:$0xff]  }
  0x11   :  { %1778 = vmatprep.subr.bf16.mxu0 %v3028_v17  ;;  %v3074_v48 = vld [vmem:[%s4511_s1 + $0xc4] ss:$8 sps:$4 sm:$0xff]   ;;  %v3103_v51 = vld [vmem:[%s4512_s0 + $0x14] ss:$36 sps:$4 sm:$0xff]   ;;  %v3078_v52 = vld [vmem:[%s4511_s1 + $0xc0] ss:$8 sps:$4 sm:$0xff]  }
  0x12   :  { %v3100_v49 = vld [vmem:[%s4512_s0 + $0x4] ss:$36 sps:$4 sm:$0xff]   ;;  %1802 = vmatprep.mubr.bf16.mxu0 %v3103_v51  ;;  %v3080_v54 = vld [vmem:[%s4511_s1 + $0xd4] ss:$8 sps:$4 sm:$0xff]   ;;  %v3084_v56 = vld [vmem:[%s4511_s1 + $0xd0] ss:$8 sps:$4 sm:$0xff]  }
  0x13   :  { %1497 = vmatpush1.bf16.msra.mxu1 %v3030_v18  ;;  %v3076_v50 = vld [vmem:[%s4511_s1 + $0x2c4] ss:$8 sps:$4 sm:$0xff]   ;;  %1520 = vmatprep.mubr.bf16.mxu1 %v3100_v49  ;;  %v3079_v53 = vld [vmem:[%s4511_s1 + $0x2c0] ss:$8 sps:$4 sm:$0xff]   ;;  %v3082_v55 = vld [vmem:[%s4511_s1 + $0x2d4] ss:$8 sps:$4 sm:$0xff]  }
  0x14   :  { %1779 = vmatpush1.bf16.msra.mxu0 %v3031_v19  ;;  %1498 = vmatprep.subr.bf16.mxu1 %v3032_v20  ;;  %v3085_v57 = vld [vmem:[%s4511_s1 + $0x2d0] ss:$8 sps:$4 sm:$0xff]   ;;  %v3086_v58 = vld [vmem:[%s4511_s1 + $0xe4] ss:$8 sps:$4 sm:$0xff]   ;;  %v3090_v60 = vld [vmem:[%s4511_s1 + $0xe0] ss:$8 sps:$4 sm:$0xff]  }
  0x15   :  { %1780 = vmatprep.subr.bf16.mxu0 %v3034_v21  ;;  %v3088_v59 = vld [vmem:[%s4511_s1 + $0x2e4] ss:$8 sps:$4 sm:$0xff]   ;;  %v3091_v61 = vld [vmem:[%s4511_s1 + $0x2e0] ss:$8 sps:$4 sm:$0xff]   ;;  %v3092_v62 = vld [vmem:[%s4511_s1 + $0xf4] ss:$8 sps:$4 sm:$0xff]  }
  0x16   :  { %v3094_v63 = vld [vmem:[%s4511_s1 + $0x2f4] ss:$8 sps:$4 sm:$0xff]   ;;  %v3096_v0 = vld [vmem:[%s4511_s1 + $0xf0] ss:$8 sps:$4 sm:$0xff]   ;;  %v3579_v2 = vld [vmem:[%s4511_s1 + $0x304] ss:$8 sps:$4 sm:$0xff]  }
  0x17   :  { %1499 = vmatpush1.bf16.msra.mxu1 %v3036_v22  ;;  %v3097_v1 = vld [vmem:[%s4511_s1 + $0x2f0] ss:$8 sps:$4 sm:$0xff]   ;;  %v3109_v3 = vld [vmem:[%s4511_s1 + $0x104] ss:$8 sps:$4 sm:$0xff]   ;;  %v3593_v6 = vld [vmem:[%s4511_s1 + $0x300] ss:$8 sps:$4 sm:$0xff]  }
  0x18   :  { %1781 = vmatpush1.bf16.msra.mxu0 %v3037_v23  ;;  %1500 = vmatprep.subr.bf16.mxu1 %v3038_v24  ;;  %v3098_v4 = vld [vmem:[%s4512_s0] ss:$36 sps:$4 sm:$0xff]   ;;  %v3101_v5 = vld [vmem:[%s4512_s0 + $0x10] ss:$36 sps:$4 sm:$0xff]   ;;  %v3117_v14 = vld [vmem:[%s4512_s0 + $0x48] ss:$36 sps:$4 sm:$0xff]  }
  0x19   :  { %1782 = vmatprep.subr.bf16.mxu0 %v3040_v25  ;;  %v3107_v7 = vld [vmem:[%s4511_s1 + $0x100] ss:$8 sps:$4 sm:$0xff]   ;;  %v3113_v8 = vld [vmem:[%s4512_s0 + $0x4c] ss:$36 sps:$4 sm:$0xff]   ;;  %v3605_v9 = vld [vmem:[%s4511_s1 + $0x314] ss:$8 sps:$4 sm:$0xff]  }
  0x1a   :  { %v3115_v10 = vld [vmem:[%s4512_s0 + $0x5c] ss:$36 sps:$4 sm:$0xff]   ;;  %v3616_v12 = vld [vmem:[%s4511_s1 + $0x310] ss:$8 sps:$4 sm:$0xff]   ;;  %v3622_v13 = vld [vmem:[%s4511_s1 + $0x324] ss:$8 sps:$4 sm:$0xff]  }
  0x1b   :  { %1501 = vmatpush1.bf16.msra.mxu1 %v3042_v26  ;;  %v3124_v11 = vld [vmem:[%s4511_s1 + $0x114] ss:$8 sps:$4 sm:$0xff]   ;;  %v3122_v15 = vld [vmem:[%s4511_s1 + $0x110] ss:$8 sps:$4 sm:$0xff]   ;;  %v3133_v17 = vld [vmem:[%s4511_s1 + $0x124] ss:$8 sps:$4 sm:$0xff]  }
  0x1c   :  { %1783 = vmatpush1.bf16.msra.mxu0 %v3043_v27  ;;  %1502 = vmatprep.subr.bf16.mxu1 %v3044_v28  ;;  %v3118_v16 = vld [vmem:[%s4512_s0 + $0x58] ss:$36 sps:$4 sm:$0xff]   ;;  %v3640_v18 = vld [vmem:[%s4511_s1 + $0x320] ss:$8 sps:$4 sm:$0xff]   ;;  %v3129_v25 = vld [vmem:[%s4512_s0 + $0x90] ss:$36 sps:$4 sm:$0xff]  }
  0x1d   :  { %1784 = vmatprep.subr.bf16.mxu0 %v3046_v29  ;;  %v3125_v19 = vld [vmem:[%s4512_s0 + $0x94] ss:$36 sps:$4 sm:$0xff]   ;;  %v3127_v20 = vld [vmem:[%s4512_s0 + $0xa4] ss:$36 sps:$4 sm:$0xff]  }
  0x1e   :  { %v3653_v21 = vld [vmem:[%s4511_s1 + $0x334] ss:$8 sps:$4 sm:$0xff]   ;;  %v3131_v22 = vld [vmem:[%s4511_s1 + $0x120] ss:$8 sps:$4 sm:$0xff]   ;;  %v3665_v24 = vld [vmem:[%s4511_s1 + $0x330] ss:$8 sps:$4 sm:$0xff]  }
  0x1f   :  { %1503 = vmatpush1.bf16.msra.mxu1 %v3048_v30  ;;  %v3144_v23 = vld [vmem:[%s4511_s1 + $0x134] ss:$8 sps:$4 sm:$0xff]   ;;  %v3674_v26 = vld [vmem:[%s4511_s1 + $0x344] ss:$8 sps:$4 sm:$0xff]   ;;  %v3142_v28 = vld [vmem:[%s4511_s1 + $0x130] ss:$8 sps:$4 sm:$0xff]  }
  0x20   :  { %1785 = vmatpush1.bf16.msra.mxu0 %v3049_v31  ;;  %1504 = vmatprep.subr.bf16.mxu1 %v3050_v32  ;;  %v3130_v27 = vld [vmem:[%s4512_s0 + $0xa0] ss:$36 sps:$4 sm:$0xff]   ;;  %v3145_v31 = vld [vmem:[%s4512_s0 + $0xec] ss:$36 sps:$4 sm:$0xff]  }
  0x21   :  { %1786 = vmatprep.subr.bf16.mxu0 %v3052_v33  ;;  %v3685_v29 = vld [vmem:[%s4511_s1 + $0x340] ss:$8 sps:$4 sm:$0xff]   ;;  %v3151_v33 = vld [vmem:[%s4511_s1 + $0x144] ss:$8 sps:$4 sm:$0xff]   ;;  %v3160_v49 = vld [vmem:[%s4512_s0 + $0x130] ss:$36 sps:$4 sm:$0xff]  }
  0x22   :  { %v3140_v30 = vld [vmem:[%s4512_s0 + $0xdc] ss:$36 sps:$4 sm:$0xff]   ;;  %v3773_v51 = vld [vmem:[%s4511_s1 + $0x384] ss:$8 sps:$4 sm:$0xff]  }
  0x23   :  { %1505 = vmatpush1.bf16.msra.mxu1 %v3054_v34  ;;  %v3149_v32 = vld [vmem:[%s4511_s1 + $0x140] ss:$8 sps:$4 sm:$0xff]   ;;  %v3704_v34 = vld [vmem:[%s4511_s1 + $0x354] ss:$8 sps:$4 sm:$0xff]  }
  0x24   :  { %1787 = vmatpush1.bf16.msra.mxu0 %v3055_v35  ;;  %1506 = vmatprep.subr.bf16.mxu1 %v3056_v36  ;;  %v3166_v35 = vld [vmem:[%s4511_s1 + $0x154] ss:$8 sps:$4 sm:$0xff]  }
  0x25   :  { %1788 = vmatprep.subr.bf16.mxu0 %v3058_v37  ;;  %v3147_v36 = vld [vmem:[%s4512_s0 + $0xd8] ss:$36 sps:$4 sm:$0xff]   ;;  %v3148_v37 = vld [vmem:[%s4512_s0 + $0xe8] ss:$36 sps:$4 sm:$0xff]  }
  0x27   :  { %1507 = vmatpush1.bf16.msra.mxu1 %v3060_v38  ;;  %v3719_v38 = vld [vmem:[%s4511_s1 + $0x350] ss:$8 sps:$4 sm:$0xff]  }
  0x28   :  { %1789 = vmatpush1.bf16.msra.mxu0 %v3061_v39  ;;  %1508 = vmatprep.subr.bf16.mxu1 %v3062_v40  ;;  %v3155_v39 = vld [vmem:[%s4512_s0 + $0x124] ss:$36 sps:$4 sm:$0xff]  }
  0x29   :  { %1790 = vmatprep.subr.bf16.mxu0 %v3064_v41  ;;  %v3728_v40 = vld [vmem:[%s4511_s1 + $0x364] ss:$8 sps:$4 sm:$0xff]   ;;  %v3164_v41 = vld [vmem:[%s4511_s1 + $0x150] ss:$8 sps:$4 sm:$0xff]  }
  0x2b   :  { %1509 = vmatpush1.bf16.msra.mxu1 %v3066_v42  ;;  %v3157_v42 = vld [vmem:[%s4512_s0 + $0x134] ss:$36 sps:$4 sm:$0xff]  }
  0x2c   :  { %1791 = vmatpush1.bf16.msra.mxu0 %v3067_v43  ;;  %1510 = vmatprep.subr.bf16.mxu1 %v3068_v44  ;;  %v3739_v43 = vld [vmem:[%s4511_s1 + $0x360] ss:$8 sps:$4 sm:$0xff]  }
  0x2d   :  { %1792 = vmatprep.subr.bf16.mxu0 %v3070_v45  ;;  %v3169_v44 = vld [vmem:[%s4511_s1 + $0x160] ss:$8 sps:$4 sm:$0xff]   ;;  %v3171_v45 = vld [vmem:[%s4511_s1 + $0x164] ss:$8 sps:$4 sm:$0xff]  }
  0x2f   :  { %1511 = vmatpush1.bf16.msra.mxu1 %v3072_v46  ;;  %v3752_v46 = vld [vmem:[%s4511_s1 + $0x374] ss:$8 sps:$4 sm:$0xff]  }
  0x30   :  { %1793 = vmatpush1.bf16.msra.mxu0 %v3073_v47  ;;  %1512 = vmatprep.subr.bf16.mxu1 %v3074_v48  ;;  %v3184_v47 = vld [vmem:[%s4511_s1 + $0x174] ss:$8 sps:$4 sm:$0xff]   ;;  %v3159_v48 = vld [vmem:[%s4512_s0 + $0x120] ss:$36 sps:$4 sm:$0xff]  }
  0x31   :  { %1794 = vmatprep.subr.bf16.mxu0 %v3076_v50  ;;  %v3767_v50 = vld [vmem:[%s4511_s1 + $0x370] ss:$8 sps:$4 sm:$0xff]  }
  0x33   :  { %1513 = vmatpush1.bf16.msra.mxu1 %v3078_v52  ;;  %v3182_v52 = vld [vmem:[%s4511_s1 + $0x170] ss:$8 sps:$4 sm:$0xff]  }
  0x34   :  { %1795 = vmatpush1.bf16.msra.mxu0 %v3079_v53  ;;  %1514 = vmatprep.subr.bf16.mxu1 %v3080_v54  ;;  %v3167_v53 = vld [vmem:[%s4512_s0 + $0x16c] ss:$36 sps:$4 sm:$0xff]   ;;  %v3172_v54 = vld [vmem:[%s4512_s0 + $0x17c] ss:$36 sps:$4 sm:$0xff]  }
  0x35   :  { %1796 = vmatprep.subr.bf16.mxu0 %v3082_v55  ;;  %v3787_v55 = vld [vmem:[%s4511_s1 + $0x380] ss:$8 sps:$4 sm:$0xff]  }
  0x37   :  { %1515 = vmatpush1.bf16.msra.mxu1 %v3084_v56  ;;  %v3193_v56 = vld [vmem:[%s4511_s1 + $0x184] ss:$8 sps:$4 sm:$0xff]  }
  0x38   :  { %1797 = vmatpush1.bf16.msra.mxu0 %v3085_v57  ;;  %1516 = vmatprep.subr.bf16.mxu1 %v3086_v58  ;;  %v3191_v57 = vld [vmem:[%s4511_s1 + $0x180] ss:$8 sps:$4 sm:$0xff]   ;;  %v3800_v58 = vld [vmem:[%s4511_s1 + $0x394] ss:$8 sps:$4 sm:$0xff]  }
  0x39   :  { %1798 = vmatprep.subr.bf16.mxu0 %v3088_v59  ;;  %v3207_v59 = vld [vmem:[%s4511_s1 + $0x194] ss:$8 sps:$4 sm:$0xff]  }
  0x3b   :  { %1517 = vmatpush1.bf16.msra.mxu1 %v3090_v60  ;;  %v3808_v60 = vld [vmem:[%s4511_s1 + $0x390] ss:$8 sps:$4 sm:$0xff]  }
  0x3c   :  { %1799 = vmatpush1.bf16.msra.mxu0 %v3091_v61  ;;  %1518 = vmatprep.subr.bf16.mxu1 %v3092_v62  ;;  %v3177_v61 = vld [vmem:[%s4512_s0 + $0x168] ss:$36 sps:$4 sm:$0xff]  }
  0x3d   :  { %1800 = vmatprep.subr.bf16.mxu0 %v3094_v63  ;;  %v3817_v62 = vld [vmem:[%s4511_s1 + $0x3a4] ss:$8 sps:$4 sm:$0xff]   ;;  %v3205_v63 = vld [vmem:[%s4511_s1 + $0x190] ss:$8 sps:$4 sm:$0xff]  }
  0x3f   :  { %1519 = vmatpush1.bf16.msra.mxu1 %v3096_v0  ;;  %v3178_v0 = vld [vmem:[%s4512_s0 + $0x178] ss:$36 sps:$4 sm:$0xff]  }
  0x40   :  { %1801 = vmatpush1.bf16.msra.mxu0 %v3097_v1  ;;  %1629 = vmatprep.subr.bf16.mxu1 %v3109_v3  ;;  %v3185_v1 = vld [vmem:[%s4512_s0 + $0x1b4] ss:$36 sps:$4 sm:$0xff]   ;;  %v3187_v3 = vld [vmem:[%s4512_s0 + $0x1c4] ss:$36 sps:$4 sm:$0xff]  }
  0x41   :  { %1911 = vmatprep.subr.bf16.mxu0 %v3579_v2 }
  0x42   :  { %1521 = vmatmul.mubr.bf16.vlgmr.msra.gmra.mrb[0].mxu1 %v3098_v4  ;;  %v3835_v4 = vld [vmem:[%s4511_s1 + $0x3a0] ss:$8 sps:$4 sm:$0xff]  }
  0x43   :  { %1803 = vmatmul.mubr.bf16.vlgmr.msra.gmra.mrb[0].mxu0 %v3101_v5  ;;  %1530 = vmatprep.mubr.bf16.mxu1 %v3113_v8  ;;  %v3211_v5 = vld [vmem:[%s4511_s1 + $0x1a4] ss:$8 sps:$4 sm:$0xff]   ;;  %v3848_v8 = vld [vmem:[%s4511_s1 + $0x3b4] ss:$8 sps:$4 sm:$0xff]  }
  0x44   :  { %1912 = vmatpush1.bf16.msra.mxu0 %v3593_v6  ;;  %1630 = vmatpush1.bf16.msra.mxu1 %v3107_v7  ;;  %v3209_v7 = vld [vmem:[%s4511_s1 + $0x1a0] ss:$8 sps:$4 sm:$0xff]  }
  0x45   :  { %1913 = vmatprep.subr.bf16.mxu0 %v3605_v9  ;;  %1812 = vmatprep.mubr.bf16.mxu0 %v3115_v10  ;;  %v3226_v10 = vld [vmem:[%s4511_s1 + $0x1b4] ss:$8 sps:$4 sm:$0xff]  }
  0x46   :  { %1631 = vmatprep.subr.bf16.mxu1 %v3124_v11  ;;  %v3189_v11 = vld [vmem:[%s4512_s0 + $0x1b0] ss:$36 sps:$4 sm:$0xff]  }
  0x48   :  { %1914 = vmatpush1.bf16.msra.mxu0 %v3616_v12  ;;  %1632 = vmatpush1.bf16.msra.mxu1 %v3122_v15  ;;  %v3863_v15 = vld [vmem:[%s4511_s1 + $0x3b0] ss:$8 sps:$4 sm:$0xff]  }
  0x49   :  { %1915 = vmatprep.subr.bf16.mxu0 %v3622_v13  ;;  %1633 = vmatprep.subr.bf16.mxu1 %v3133_v17  ;;  %v3224_v17 = vld [vmem:[%s4511_s1 + $0x1b0] ss:$8 sps:$4 sm:$0xff]  }
  0x4a   :  { %1531 = vmatmul.mubr.bf16.gmra.mrb[4].mxu1 %v3117_v14  ;;  %v3190_v14 = vld [vmem:[%s4512_s0 + $0x1c0] ss:$36 sps:$4 sm:$0xff]  }
  0x4b   :  { %1813 = vmatmul.mubr.bf16.gmra.mrb[4].mxu0 %v3118_v16  ;;  %1540 = vmatprep.mubr.bf16.mxu1 %v3125_v19  ;;  %v3868_v16 = vld [vmem:[%s4511_s1 + $0x3c4] ss:$8 sps:$4 sm:$0xff]   ;;  %v3197_v19 = vld [vmem:[%s4512_s0 + $0x1fc] ss:$36 sps:$4 sm:$0xff]  }
  0x4c   :  { %1916 = vmatpush1.bf16.msra.mxu0 %v3640_v18  ;;  %1822 = vmatprep.mubr.bf16.mxu0 %v3127_v20  ;;  %v3199_v20 = vld [vmem:[%s4512_s0 + $0x20c] ss:$36 sps:$4 sm:$0xff]  }
  0x4d   :  { %1917 = vmatprep.subr.bf16.mxu0 %v3653_v21  ;;  %1634 = vmatpush1.bf16.msra.mxu1 %v3131_v22  ;;  %v3883_v22 = vld [vmem:[%s4511_s1 + $0x3c0] ss:$8 sps:$4 sm:$0xff]  }
  0x4e   :  { %1635 = vmatprep.subr.bf16.mxu1 %v3144_v23  ;;  %v3232_v23 = vld [vmem:[%s4511_s1 + $0x1c0] ss:$8 sps:$4 sm:$0xff]  }
  0x50   :  { %1918 = vmatpush1.bf16.msra.mxu0 %v3665_v24 }
  0x51   :  { %1919 = vmatprep.subr.bf16.mxu0 %v3674_v26  ;;  %1636 = vmatpush1.bf16.msra.mxu1 %v3142_v28  ;;  %v3241_v28 = vld [vmem:[%s4511_s1 + $0x1d4] ss:$8 sps:$4 sm:$0xff]  }
  0x52   :  { %1541 = vmatmul.mubr.bf16.gmra.mrb[8].mxu1 %v3129_v25  ;;  %1637 = vmatprep.subr.bf16.mxu1 %v3151_v33  ;;  %v3234_v25 = vld [vmem:[%s4511_s1 + $0x1c4] ss:$8 sps:$4 sm:$0xff]   ;;  %v3239_v33 = vld [vmem:[%s4511_s1 + $0x1d0] ss:$8 sps:$4 sm:$0xff]  }
  0x53   :  { %1823 = vmatmul.mubr.bf16.gmra.mrb[8].mxu0 %v3130_v27  ;;  %1550 = vmatprep.mubr.bf16.mxu1 %v3140_v30  ;;  %v3896_v27 = vld [vmem:[%s4511_s1 + $0x3d4] ss:$8 sps:$4 sm:$0xff]  }
  0x54   :  { %1832 = vmatprep.mubr.bf16.mxu0 %v3145_v31  ;;  %1920 = vmatpush1.bf16.msra.mxu0 %v3685_v29  ;;  %v3204_v30 = vld [vmem:[%s4512_s0 + $0x1f8] ss:$36 sps:$4 sm:$0xff]   ;;  %v3208_v31 = vld [vmem:[%s4512_s0 + $0x208] ss:$36 sps:$4 sm:$0xff]  }
  0x55   :  { %1921 = vmatprep.subr.bf16.mxu0 %v3704_v34  ;;  %1638 = vmatpush1.bf16.msra.mxu1 %v3149_v32  ;;  %v3911_v32 = vld [vmem:[%s4511_s1 + $0x3d0] ss:$8 sps:$4 sm:$0xff]  }
  0x56   :  { %1639 = vmatprep.subr.bf16.mxu1 %v3166_v35  ;;  %v3920_v35 = vld [vmem:[%s4511_s1 + $0x3e4] ss:$8 sps:$4 sm:$0xff]  }
  0x58   :  { %1922 = vmatpush1.bf16.msra.mxu0 %v3719_v38 }
  0x59   :  { %1923 = vmatprep.subr.bf16.mxu0 %v3728_v40  ;;  %1640 = vmatpush1.bf16.msra.mxu1 %v3164_v41  ;;  %v3248_v41 = vld [vmem:[%s4511_s1 + $0x1e0] ss:$8 sps:$4 sm:$0xff]  }
  0x5a   :  { %1551 = vmatmul.mubr.bf16.gmra.mrb[12].mxu1 %v3147_v36  ;;  %1641 = vmatprep.subr.bf16.mxu1 %v3171_v45  ;;  %v3215_v36 = vld [vmem:[%s4512_s0 + $0x244] ss:$36 sps:$4 sm:$0xff]   ;;  %v3257_v45 = vld [vmem:[%s4511_s1 + $0x1f4] ss:$8 sps:$4 sm:$0xff]  }
  0x5b   :  { %1833 = vmatmul.mubr.bf16.gmra.mrb[12].mxu0 %v3148_v37  ;;  %1560 = vmatprep.mubr.bf16.mxu1 %v3155_v39  ;;  %v3217_v37 = vld [vmem:[%s4512_s0 + $0x254] ss:$36 sps:$4 sm:$0xff]   ;;  %v3931_v39 = vld [vmem:[%s4511_s1 + $0x3e0] ss:$8 sps:$4 sm:$0xff]  }
  0x5c   :  { %1842 = vmatprep.mubr.bf16.mxu0 %v3157_v42  ;;  %1924 = vmatpush1.bf16.msra.mxu0 %v3739_v43  ;;  %v3250_v42 = vld [vmem:[%s4511_s1 + $0x1e4] ss:$8 sps:$4 sm:$0xff]  }
  0x5d   :  { %1925 = vmatprep.subr.bf16.mxu0 %v3752_v46  ;;  %1642 = vmatpush1.bf16.msra.mxu1 %v3169_v44  ;;  %v3944_v44 = vld [vmem:[%s4511_s1 + $0x3f4] ss:$8 sps:$4 sm:$0xff]  }
  0x5e   :  { %1643 = vmatprep.subr.bf16.mxu1 %v3184_v47  ;;  %v3219_v47 = vld [vmem:[%s4512_s0 + $0x240] ss:$36 sps:$4 sm:$0xff]  }
  0x60   :  { %1926 = vmatpush1.bf16.msra.mxu0 %v3767_v50 }
  0x61   :  { %1927 = vmatprep.subr.bf16.mxu0 %v3773_v51  ;;  %1644 = vmatpush1.bf16.msra.mxu1 %v3182_v52  ;;  %v3266_v52 = vld [vmem:[%s4511_s1 + $0x404] ss:$8 sps:$4 sm:$0xff]  }
  0x62   :  { %1561 = vmatmul.mubr.bf16.gmra.mrb[16].mxu1 %v3159_v48  ;;  %1645 = vmatprep.subr.bf16.mxu1 %v3193_v56  ;;  %v3956_v48 = vld [vmem:[%s4511_s1 + $0x3f0] ss:$8 sps:$4 sm:$0xff]   ;;  %v3229_v56 = vld [vmem:[%s4512_s0 + $0x29c] ss:$36 sps:$4 sm:$0xff]  }
  0x63   :  { %1843 = vmatmul.mubr.bf16.gmra.mrb[16].mxu0 %v3160_v49  ;;  %1570 = vmatprep.mubr.bf16.mxu1 %v3167_v53  ;;  %v3255_v49 = vld [vmem:[%s4511_s1 + $0x1f0] ss:$8 sps:$4 sm:$0xff]  }
  0x64   :  { %1852 = vmatprep.mubr.bf16.mxu0 %v3172_v54  ;;  %1928 = vmatpush1.bf16.msra.mxu0 %v3787_v55  ;;  %v3220_v53 = vld [vmem:[%s4512_s0 + $0x250] ss:$36 sps:$4 sm:$0xff]  }
  0x65   :  { %1929 = vmatprep.subr.bf16.mxu0 %v3800_v58  ;;  %1646 = vmatpush1.bf16.msra.mxu1 %v3191_v57  ;;  %v3227_v54 = vld [vmem:[%s4512_s0 + $0x28c] ss:$36 sps:$4 sm:$0xff]  }
  0x66   :  { %1647 = vmatprep.subr.bf16.mxu1 %v3207_v59  ;;  %v115_v57 = vld [vmem:[%s4512_s0 + $0x2d0] sm:$0xff]  ;;  %v117_v59 = vld [vmem:[%s4512_s0 + $0x2e0] sm:$0xff] }
  0x68   :  { %1930 = vmatpush1.bf16.msra.mxu0 %v3808_v60 }
  0x69   :  { %1931 = vmatprep.subr.bf16.mxu0 %v3817_v62  ;;  %1648 = vmatpush1.bf16.msra.mxu1 %v3205_v63  ;;  %v3235_v63 = vld [vmem:[%s4512_s0 + $0x298] ss:$36 sps:$4 sm:$0xff]  }
  0x6a   :  { %1571 = vmatmul.mubr.bf16.gmra.mrb[20].mxu1 %v3177_v61  ;;  %1649 = vmatprep.subr.bf16.mxu1 %v3211_v5  ;;  %v3231_v61 = vld [vmem:[%s4512_s0 + $0x288] ss:$36 sps:$4 sm:$0xff]   ;;  %v2566_v5 = vcombine.low %v117_v59, %v117_v59 }
  0x6b   :  { %1853 = vmatmul.mubr.bf16.gmra.mrb[20].mxu0 %v3178_v0  ;;  %1580 = vmatprep.mubr.bf16.mxu1 %v3185_v1  ;;  %v2563_v0 = vcombine.high %v115_v57, %v115_v57  ;;  %v2567_v1 = vcombine.high %v117_v59, %v117_v59  ;;  %v3337_v59 = vld [vmem:[%s4512_s0 + $0x1c8] ss:$36 sps:$4 sm:$0xff]  }
  0x6c   :  { %1862 = vmatprep.mubr.bf16.mxu0 %v3187_v3  ;;  %1932 = vmatpush1.bf16.msra.mxu0 %v3835_v4  ;;  %v2562_v3 = vcombine.low %v115_v57, %v115_v57  ;;  %v3339_v57 = vld [vmem:[%s4512_s0 + $0x1cc] ss:$36 sps:$4 sm:$0xff]  }
  0x6d   :  { %1933 = vmatprep.subr.bf16.mxu0 %v3848_v8  ;;  %1650 = vmatpush1.bf16.msra.mxu1 %v3209_v7  ;;  %v3263_v7 = vld [vmem:[%s4512_s0 + $0x1c] ss:$36 sps:$4 sm:$0xff]  }
  0x6e   :  { %1651 = vmatprep.subr.bf16.mxu1 %v3226_v10  ;;  %v3258_v10 = vld [vmem:[%s4512_s0 + $0x8] ss:$36 sps:$4 sm:$0xff]  }
  0x70   :  { %1934 = vmatpush1.bf16.msra.mxu0 %v3863_v15 }
  0x71   :  { %1935 = vmatprep.subr.bf16.mxu0 %v3868_v16  ;;  %1652 = vmatpush1.bf16.msra.mxu1 %v3224_v17  ;;  %v3270_v17 = vld [vmem:[%s4512_s0 + $0x54] ss:$36 sps:$4 sm:$0xff]  }
  0x72   :  { %1581 = vmatmul.mubr.bf16.gmra.mrb[24].mxu1 %v3189_v11  ;;  %1653 = vmatprep.subr.bf16.mxu1 %v3234_v25  ;;  %v3261_v11 = vld [vmem:[%s4512_s0 + $0x18] ss:$36 sps:$4 sm:$0xff]   ;;  %v3278_v25 = vld [vmem:[%s4511_s1 + $0x424] ss:$8 sps:$4 sm:$0xff]  }
  0x73   :  { %1863 = vmatmul.mubr.bf16.gmra.mrb[24].mxu0 %v3190_v14  ;;  %1590 = vmatprep.mubr.bf16.mxu1 %v3197_v19  ;;  %v3264_v14 = vld [vmem:[%s4511_s1 + $0x400] ss:$8 sps:$4 sm:$0xff]   ;;  %v3269_v19 = vld [vmem:[%s4511_s1 + $0x414] ss:$8 sps:$4 sm:$0xff]  }
  0x74   :  { %1872 = vmatprep.mubr.bf16.mxu0 %v3199_v20  ;;  %1936 = vmatpush1.bf16.msra.mxu0 %v3883_v22  ;;  %v3272_v20 = vld [vmem:[%s4512_s0 + $0x64] ss:$36 sps:$4 sm:$0xff]  }
  0x75   :  { %1937 = vmatprep.subr.bf16.mxu0 %v3896_v27  ;;  %1654 = vmatpush1.bf16.msra.mxu1 %v3232_v23  ;;  %v3267_v23 = vld [vmem:[%s4511_s1 + $0x410] ss:$8 sps:$4 sm:$0xff]  }
  0x76   :  { %1655 = vmatprep.subr.bf16.mxu1 %v3241_v28  ;;  %v3274_v28 = vld [vmem:[%s4512_s0 + $0x50] ss:$36 sps:$4 sm:$0xff]  }
  0x78   :  { %1938 = vmatpush1.bf16.msra.mxu0 %v3911_v32 }
  0x79   :  { %1656 = vmatpush1.bf16.msra.mxu1 %v3239_v33  ;;  %1939 = vmatprep.subr.bf16.mxu0 %v3920_v35  ;;  %v3287_v33 = vld [vmem:[%s4511_s1 + $0x434] ss:$8 sps:$4 sm:$0xff]  }
  0x7a   :  { %1591 = vmatmul.mubr.bf16.gmra.mrb[28].mxu1 %v3204_v30  ;;  %1657 = vmatprep.subr.bf16.mxu1 %v3250_v42  ;;  %v3275_v30 = vld [vmem:[%s4512_s0 + $0x60] ss:$36 sps:$4 sm:$0xff]   ;;  %v3299_v42 = vld [vmem:[%s4511_s1 + $0x454] ss:$8 sps:$4 sm:$0xff]  }
  0x7b   :  { %1873 = vmatmul.mubr.bf16.gmra.mrb[28].mxu0 %v3208_v31  ;;  %1600 = vmatprep.mubr.bf16.mxu1 %v3215_v36  ;;  %v3276_v31 = vld [vmem:[%s4511_s1 + $0x420] ss:$8 sps:$4 sm:$0xff]   ;;  %v3285_v36 = vld [vmem:[%s4511_s1 + $0x430] ss:$8 sps:$4 sm:$0xff]  }
  0x7c   :  { %1882 = vmatprep.mubr.bf16.mxu0 %v3217_v37  ;;  %1940 = vmatpush1.bf16.msra.mxu0 %v3931_v39  ;;  %v3284_v37 = vld [vmem:[%s4512_s0 + $0xa8] ss:$36 sps:$4 sm:$0xff]  }
  0x7d   :  { %1658 = vmatpush1.bf16.msra.mxu1 %v3248_v41  ;;  %1941 = vmatprep.subr.bf16.mxu0 %v3944_v44  ;;  %v3290_v41 = vld [vmem:[%s4512_s0 + $0xf4] ss:$36 sps:$4 sm:$0xff]  }
  0x7e   :  { %1659 = vmatprep.subr.bf16.mxu1 %v3257_v45  ;;  %v3292_v45 = vld [vmem:[%s4512_s0 + $0xe0] ss:$36 sps:$4 sm:$0xff]  }
  0x80   :  { %1942 = vmatpush1.bf16.msra.mxu0 %v3956_v48 }
  0x81   :  { %1660 = vmatpush1.bf16.msra.mxu1 %v3255_v49  ;;  %2052 = vmatprep.subr.bf16.mxu0 %v3266_v52  ;;  %v3306_v49 = vld [vmem:[%s4511_s1 + $0x460] ss:$8 sps:$4 sm:$0xff]   ;;  %v3317_v52 = vld [vmem:[%s4511_s1 + $0x474] ss:$8 sps:$4 sm:$0xff]  }
  0x82   :  { %1601 = vmatmul.mubr.bf16.gmra.mrb[32].mxu1 %v3219_v47  ;;  %2757 = vmatprep.subr.bf16.mxu1 %v3579_v2  ;;  %v3260_v2 = vld [vmem:[%s4512_s0 + $0xc] ss:$36 sps:$4 sm:$0xff]  }
  0x83   :  { %1883 = vmatmul.mubr.bf16.gmra.mrb[32].mxu0 %v3220_v53  ;;  %1610 = vmatprep.mubr.bf16.mxu1 %v3227_v54  ;;  %v3293_v47 = vld [vmem:[%s4512_s0 + $0xf0] ss:$36 sps:$4 sm:$0xff]   ;;  %v3305_v53 = vld [vmem:[%s4512_s0 + $0x138] ss:$36 sps:$4 sm:$0xff]  }
  0x84   :  { %1892 = vmatprep.mubr.bf16.mxu0 %v3229_v56  ;;  %v3309_v54 = vld [vmem:[%s4512_s0 + $0x174] ss:$36 sps:$4 sm:$0xff]   ;;  %v3314_v56 = vld [vmem:[%s4512_s0 + $0x180] ss:$36 sps:$4 sm:$0xff]  }
  0x8a   :  { %1611 = vmatmul.mubr.bf16.gmra.mrb[36].mxu1 %v3231_v61  ;;  %v3340_v61 = vld [vmem:[%s4512_s0 + $0x188] ss:$36 sps:$4 sm:$0xff]  }
  0x8b   :  { %1893 = vmatmul.mubr.bf16.gmra.mrb[36].mxu0 %v3235_v63  ;;  %1620 = vmatprep.mubr.bf16.mxu1 %v2563_v0  ;;  %v3341_v63 = vld [vmem:[%s4512_s0 + $0x214] ss:$36 sps:$4 sm:$0xff]  }
  0x8c   :  { %1902 = vmatprep.mubr.bf16.mxu0 %v2567_v1  ;;  %v3343_v0 = vld [vmem:[%s4512_s0 + $0x210] ss:$36 sps:$4 sm:$0xff]  }
  0x8d   :  { %v3344_v1 = vld [vmem:[%s4512_s0 + $0x1d0] ss:$36 sps:$4 sm:$0xff]  }
  0x92   :  { %1621 = vmatmul.mubr.bf16.gmra.mrb[40].mxu1 %v2562_v3  ;;  %v3345_v3 = vld [vmem:[%s4512_s0 + $0x25c] ss:$36 sps:$4 sm:$0xff]  }
  0x93   :  { %1903 = vmatmul.mubr.bf16.gmra.mrb[40].mxu0 %v2566_v5  ;;  %1661 = vmatprep.mubr.bf16.mxu1 %v3260_v2  ;;  %v3347_v5 = vld [vmem:[%s4512_s0 + $0x258] ss:$36 sps:$4 sm:$0xff]  }
  0x94   :  { %1943 = vmatprep.mubr.bf16.mxu0 %v3263_v7  ;;  %v3348_v2 = vld [vmem:[%s4512_s0 + $0x218] ss:$36 sps:$4 sm:$0xff]   ;;  %v3349_v7 = vld [vmem:[%s4512_s0 + $0x2a4] ss:$36 sps:$4 sm:$0xff]  }
  0x9a   :  { %1662 = vmatmul.mubr.bf16.vlgmr.msra.gmra.mrb[0].mxu1 %v3258_v10  ;;  %v118_v10 = vld [vmem:[%s4512_s0 + $0x2e8] sm:$0xff] }
  0x9b   :  { %1944 = vmatmul.mubr.bf16.vlgmr.msra.gmra.mrb[0].mxu0 %v3261_v11  ;;  %1671 = vmatprep.mubr.bf16.mxu1 %v3270_v17  ;;  %v3351_v11 = vld [vmem:[%s4512_s0 + $0x2a0] ss:$36 sps:$4 sm:$0xff]   ;;  %v2569_v17 = vcombine.high %v118_v10, %v118_v10 }
  0x9c   :  { %2053 = vmatpush1.bf16.msra.mxu0 %v3264_v14  ;;  %2773 = vmatpush1.bf16.msra.mxu1 %v3593_v6  ;;  %v3279_v6 = vld [vmem:[%s4512_s0 + $0x9c] ss:$36 sps:$4 sm:$0xff]  }
  0x9d   :  { %2054 = vmatprep.subr.bf16.mxu0 %v3269_v19  ;;  %1953 = vmatprep.mubr.bf16.mxu0 %v3272_v20  ;;  %v3352_v14 = vld [vmem:[%s4512_s0 + $0x260] ss:$36 sps:$4 sm:$0xff]   ;;  %v2568_v19 = vcombine.low %v118_v10, %v118_v10  ;;  %v3355_v20 = vld [vmem:[%s4512_s0 + $0x2a8] ss:$36 sps:$4 sm:$0xff]  }
  0x9e   :  { %2758 = vmatprep.subr.bf16.mxu1 %v3605_v9  ;;  %v3281_v9 = vld [vmem:[%s4512_s0 + $0xac] ss:$36 sps:$4 sm:$0xff]  }
  0xa0   :  { %2055 = vmatpush1.bf16.msra.mxu0 %v3267_v23  ;;  %2774 = vmatpush1.bf16.msra.mxu1 %v3616_v12  ;;  %v3296_v12 = vld [vmem:[%s4511_s1 + $0x444] ss:$8 sps:$4 sm:$0xff]   ;;  %v3356_v23 = vld [vmem:[%s4512_s0 + $0x2f0] ss:$0 sps:$4 sm:$0xff]  }
  0xa1   :  { %2056 = vmatprep.subr.bf16.mxu0 %v3278_v25  ;;  %2759 = vmatprep.subr.bf16.mxu1 %v3622_v13  ;;  %v3283_v13 = vld [vmem:[%s4512_s0 + $0x98] ss:$36 sps:$4 sm:$0xff]  }
  0xa2   :  { %1672 = vmatmul.mubr.bf16.gmra.mrb[4].mxu1 %v3274_v28 }
  0xa3   :  { %1954 = vmatmul.mubr.bf16.gmra.mrb[4].mxu0 %v3275_v30  ;;  %1681 = vmatprep.mubr.bf16.mxu1 %v3279_v6 }
  0xa4   :  { %2057 = vmatpush1.bf16.msra.mxu0 %v3276_v31  ;;  %1963 = vmatprep.mubr.bf16.mxu0 %v3281_v9 }
  0xa5   :  { %2775 = vmatpush1.bf16.msra.mxu1 %v3640_v18  ;;  %2058 = vmatprep.subr.bf16.mxu0 %v3287_v33  ;;  %v3288_v18 = vld [vmem:[%s4512_s0 + $0xe4] ss:$36 sps:$4 sm:$0xff]  }
  0xa6   :  { %2760 = vmatprep.subr.bf16.mxu1 %v3653_v21  ;;  %v3294_v21 = vld [vmem:[%s4511_s1 + $0x440] ss:$8 sps:$4 sm:$0xff]  }
  0xa8   :  { %2059 = vmatpush1.bf16.msra.mxu0 %v3285_v36 }
  0xa9   :  { %2776 = vmatpush1.bf16.msra.mxu1 %v3665_v24  ;;  %2060 = vmatprep.subr.bf16.mxu0 %v3296_v12  ;;  %v3297_v24 = vld [vmem:[%s4511_s1 + $0x450] ss:$8 sps:$4 sm:$0xff]  }
  0xaa   :  { %2761 = vmatprep.subr.bf16.mxu1 %v3674_v26  ;;  %1682 = vmatmul.mubr.bf16.gmra.mrb[8].mxu1 %v3283_v13  ;;  %v3308_v26 = vld [vmem:[%s4511_s1 + $0x464] ss:$8 sps:$4 sm:$0xff]  }
  0xab   :  { %1964 = vmatmul.mubr.bf16.gmra.mrb[8].mxu0 %v3284_v37  ;;  %1691 = vmatprep.mubr.bf16.mxu1 %v3288_v18 }
  0xac   :  { %1973 = vmatprep.mubr.bf16.mxu0 %v3290_v41  ;;  %2061 = vmatpush1.bf16.msra.mxu0 %v3294_v21 }
  0xad   :  { %2777 = vmatpush1.bf16.msra.mxu1 %v3685_v29  ;;  %2062 = vmatprep.subr.bf16.mxu0 %v3299_v42  ;;  %v3300_v29 = vld [vmem:[%s4512_s0 + $0x12c] ss:$36 sps:$4 sm:$0xff]  }
  0xae   :  { %2762 = vmatprep.subr.bf16.mxu1 %v3704_v34  ;;  %v3302_v34 = vld [vmem:[%s4512_s0 + $0x13c] ss:$36 sps:$4 sm:$0xff]  }
  0xb0   :  { %2063 = vmatpush1.bf16.msra.mxu0 %v3297_v24 }
  0xb1   :  { %2778 = vmatpush1.bf16.msra.mxu1 %v3719_v38  ;;  %2064 = vmatprep.subr.bf16.mxu0 %v3308_v26  ;;  %v3315_v38 = vld [vmem:[%s4511_s1 + $0x470] ss:$8 sps:$4 sm:$0xff]  }
  0xb2   :  { %2763 = vmatprep.subr.bf16.mxu1 %v3728_v40  ;;  %1692 = vmatmul.mubr.bf16.gmra.mrb[12].mxu1 %v3292_v45  ;;  %v3304_v40 = vld [vmem:[%s4512_s0 + $0x128] ss:$36 sps:$4 sm:$0xff]  }
  0xb3   :  { %1974 = vmatmul.mubr.bf16.gmra.mrb[12].mxu0 %v3293_v47  ;;  %1701 = vmatprep.mubr.bf16.mxu1 %v3300_v29 }
  0xb4   :  { %1983 = vmatprep.mubr.bf16.mxu0 %v3302_v34  ;;  %2065 = vmatpush1.bf16.msra.mxu0 %v3306_v49 }
  0xb5   :  { %2779 = vmatpush1.bf16.msra.mxu1 %v3739_v43  ;;  %2066 = vmatprep.subr.bf16.mxu0 %v3317_v52  ;;  %v3311_v43 = vld [vmem:[%s4512_s0 + $0x184] ss:$36 sps:$4 sm:$0xff]  }
  0xb6   :  { %2764 = vmatprep.subr.bf16.mxu1 %v3752_v46  ;;  %v3313_v46 = vld [vmem:[%s4512_s0 + $0x170] ss:$36 sps:$4 sm:$0xff]  }
  0xb8   :  { %2067 = vmatpush1.bf16.msra.mxu0 %v3315_v38 }
  0xb9   :  { %2780 = vmatpush1.bf16.msra.mxu1 %v3767_v50  ;;  %v3318_v50 = vld [vmem:[%s4512_s0 + $0x1bc] ss:$36 sps:$4 sm:$0xff]  }
  0xba   :  { %2765 = vmatprep.subr.bf16.mxu1 %v3773_v51  ;;  %1702 = vmatmul.mubr.bf16.gmra.mrb[16].mxu1 %v3304_v40  ;;  %v3357_v51 = vmov 0  }
  0xbb   :  { %1984 = vmatmul.mubr.bf16.gmra.mrb[16].mxu0 %v3305_v53  ;;  %1711 = vmatprep.mubr.bf16.mxu1 %v3309_v54 }
  0xbc   :  { %1993 = vmatprep.mubr.bf16.mxu0 %v3311_v43 }
  0xbd   :  { %2781 = vmatpush1.bf16.msra.mxu1 %v3787_v55  ;;  %v3320_v55 = vld [vmem:[%s4512_s0 + $0x1b8] ss:$36 sps:$4 sm:$0xff]  }
  0xbe   :  { %2766 = vmatprep.subr.bf16.mxu1 %v3800_v58  ;;  %v3321_v58 = vld [vmem:[%s4512_s0 + $0x20] ss:$36 sps:$4 sm:$0xff]  }
  0xc1   :  { %2782 = vmatpush1.bf16.msra.mxu1 %v3808_v60  ;;  %v3322_v60 = vld [vmem:[%s4512_s0 + $0x204] ss:$36 sps:$4 sm:$0xff]  }
  0xc2   :  { %2767 = vmatprep.subr.bf16.mxu1 %v3817_v62  ;;  %1712 = vmatmul.mubr.bf16.gmra.mrb[20].mxu1 %v3313_v46  ;;  %v3324_v62 = vld [vmem:[%s4512_s0 + $0x200] ss:$36 sps:$4 sm:$0xff]  }
  0xc3   :  { %1994 = vmatmul.mubr.bf16.gmra.mrb[20].mxu0 %v3314_v56  ;;  %1721 = vmatprep.mubr.bf16.mxu1 %v3318_v50 }
  0xc4   :  { %2084 = vmatprep.mubr.bf16.mxu0 %v3357_v51 }
  0xc5   :  { %2783 = vmatpush1.bf16.msra.mxu1 %v3835_v4  ;;  %v3325_v4 = vld [vmem:[%s4512_s0 + $0x68] ss:$36 sps:$4 sm:$0xff]  }
  0xc6   :  { %2768 = vmatprep.subr.bf16.mxu1 %v3848_v8  ;;  %v3326_v8 = vld [vmem:[%s4512_s0 + $0x24c] ss:$36 sps:$4 sm:$0xff]  }
  0xc9   :  { %2784 = vmatpush1.bf16.msra.mxu1 %v3863_v15  ;;  %v3328_v15 = vld [vmem:[%s4512_s0 + $0x248] ss:$36 sps:$4 sm:$0xff]  }
  0xca   :  { %2769 = vmatprep.subr.bf16.mxu1 %v3868_v16  ;;  %1722 = vmatmul.mubr.bf16.gmra.mrb[24].mxu1 %v3320_v55  ;;  %v3329_v16 = vld [vmem:[%s4512_s0 + $0xb0] ss:$36 sps:$4 sm:$0xff]  }
  0xcb   :  { %2085 = vmatmul.mubr.bf16.vlgmr.msra.gmra.mrb[0].mxu0 %v3321_v58  ;;  %1731 = vmatprep.mubr.bf16.mxu1 %v3322_v60 }
  0xcc   :  { %2094 = vmatprep.mubr.bf16.mxu0 %v3357_v51 }
  0xcd   :  { %2785 = vmatpush1.bf16.msra.mxu1 %v3883_v22  ;;  %v3330_v22 = vld [vmem:[%s4512_s0 + $0x294] ss:$36 sps:$4 sm:$0xff]  }
  0xce   :  { %2770 = vmatprep.subr.bf16.mxu1 %v3896_v27  ;;  %v116_v27 = vld [vmem:[%s4512_s0 + $0x2d8] sm:$0xff] }
  0xd1   :  { %2786 = vmatpush1.bf16.msra.mxu1 %v3911_v32  ;;  %v3332_v32 = vld [vmem:[%s4512_s0 + $0x290] ss:$36 sps:$4 sm:$0xff]  }
  0xd2   :  { %2771 = vmatprep.subr.bf16.mxu1 %v3920_v35  ;;  %1732 = vmatmul.mubr.bf16.gmra.mrb[28].mxu1 %v3324_v62  ;;  %v3333_v35 = vld [vmem:[%s4512_s0 + $0xf8] ss:$36 sps:$4 sm:$0xff]  }
  0xd3   :  { %2095 = vmatmul.mubr.bf16.gmra.mrb[4].mxu0 %v3325_v4  ;;  %1741 = vmatprep.mubr.bf16.mxu1 %v3326_v8  ;;  %v266_v4 = vlaneseq }
  0xd4   :  { %2104 = vmatprep.mubr.bf16.mxu0 %v3357_v51 }
  0xd5   :  { %2787 = vmatpush1.bf16.msra.mxu1 %v3931_v39  ;;  %v2565_v39 = vcombine.high %v116_v27, %v116_v27 }
  0xd6   :  { %2772 = vmatprep.subr.bf16.mxu1 %v3944_v44  ;;  %v2564_v44 = vcombine.low %v116_v27, %v116_v27 }
  0xd9   :  { %2788 = vmatpush1.bf16.msra.mxu1 %v3956_v48  ;;  %v3336_v48 = vld [vmem:[%s4512_s0 + $0x140] ss:$36 sps:$4 sm:$0xff]  }
  0xda   :  { %1742 = vmatmul.mubr.bf16.gmra.mrb[32].mxu1 %v3328_v15 }
  0xdb   :  { %2105 = vmatmul.mubr.bf16.gmra.mrb[8].mxu0 %v3329_v16  ;;  %1751 = vmatprep.mubr.bf16.mxu1 %v3330_v22  ;;  %v267_v22 = vshrl.u32 %v266_v4, 7 }
  0xdc   :  { %2114 = vmatprep.mubr.bf16.mxu0 %v3357_v51 }
  0xe2   :  { %1752 = vmatmul.mubr.bf16.gmra.mrb[36].mxu1 %v3332_v32  ;;  %v268_v32 = vsub.s32 0, %v267_v22 }
  0xe3   :  { %2115 = vmatmul.mubr.bf16.gmra.mrb[12].mxu0 %v3333_v35  ;;  %1761 = vmatprep.mubr.bf16.mxu1 %v2565_v39  ;;  %v264_v35 = vld [vmem:[%s4513_s2] sm:$0x3]  ;;  %v272_v39 = vsub.s32 1, %v267_v22 }
  0xe4   :  { %2124 = vmatprep.mubr.bf16.mxu0 %v3357_v51 }
  0xea   :  { %1762 = vmatmul.mubr.bf16.gmra.mrb[40].mxu1 %v2564_v44 }
  0xeb   :  { %2125 = vmatmul.mubr.bf16.gmra.mrb[16].mxu0 %v3336_v48  ;;  %2003 = vmatprep.mubr.bf16.mxu1 %v3339_v57 }
  0xec   :  { %2134 = vmatprep.mubr.bf16.mxu0 %v3357_v51 }
  0xf2   :  { %2004 = vmatmul.mubr.bf16.vlgmr.msra.gmra.mrb[44].mxu1 %v3337_v59  ;;  %v4309_v59 = vrot.slane %v264_v35, %v268_v32 }
  0xf3   :  { %2135 = vmatmul.mubr.bf16.gmra.mrb[20].mxu0 %v3340_v61  ;;  %2013 = vmatprep.mubr.bf16.mxu1 %v3341_v63  ;;  %v4313_v63 = vrot.slane %v264_v35, %v272_v39 }
  0xf4   :  { %2144 = vmatprep.mubr.bf16.mxu0 %v3357_v51 }
  0xfa   :  { %2014 = vmatmul.mubr.bf16.gmra.mrb[48].mxu1 %v3343_v0 }
  0xfb   :  { %2145 = vmatmul.mubr.bf16.gmra.mrb[44].mxu0 %v3344_v1  ;;  %2023 = vmatprep.mubr.bf16.mxu1 %v3345_v3 }
  0xfc   :  { %2154 = vmatprep.mubr.bf16.mxu0 %v3357_v51 }
 0x102   :  { %2024 = vmatmul.mubr.bf16.gmra.mrb[52].mxu1 %v3347_v5 }
 0x103   :  { %2155 = vmatmul.mubr.bf16.gmra.mrb[48].mxu0 %v3348_v2  ;;  %2033 = vmatprep.mubr.bf16.mxu1 %v3349_v7 }
 0x104   :  { %2164 = vmatprep.mubr.bf16.mxu0 %v3357_v51 }
 0x10a   :  { %2034 = vmatmul.mubr.bf16.gmra.mrb[56].mxu1 %v3351_v11 }
 0x10b   :  { %2165 = vmatmul.mubr.bf16.gmra.mrb[52].mxu0 %v3352_v14  ;;  %2043 = vmatprep.mubr.bf16.mxu1 %v2569_v17 }
 0x10c   :  { %2174 = vmatprep.mubr.bf16.mxu0 %v3357_v51 }
 0x112   :  { %2044 = vmatmul.mubr.bf16.gmra.mrb[60].mxu1 %v2568_v19 }
 0x113   :  { %2175 = vmatmul.mubr.bf16.gmra.mrb[56].mxu0 %v3355_v20 }
 0x114   :  { %2184 = vmatprep.mubr.bf16.mxu0 %v3357_v51 }
 0x11b   :  { %2185 = vmatmul.mubr.bf16.gmra.mrb[60].mxu0 %v3356_v23 }
 0x146   :  { %v4234_v25 = vpop.f32.mrb[24].mxu0 }
 0x147   :  { %v4236_v28 = vpop.f32.mrb[25].mxu0 }
 0x148   :  { %v4238_v30 = vpop.f32.mrb[26].mxu0 }
 0x149   :  { %v4240_v31 = vpop.f32.mrb[27].mxu0 }
 0x14e   :  { %v4242_v6 = vpop.f32.mrb[28].mxu0 }
 0x14f   :  { %v4244_v9 = vpop.f32.mrb[29].mxu0 }
 0x150   :  { %v4246_v33 = vpop.f32.mrb[30].mxu0 }
 0x151   :  { %v4248_v36 = vpop.f32.mrb[31].mxu0 }
 0x156   :  { %v4250_v12 = vpop.f32.mrb[32].mxu0 }
 0x157   :  { %v4252_v13 = vpop.f32.mrb[33].mxu0 }
 0x158   :  { %v4254_v37 = vpop.f32.mrb[34].mxu0 }
 0x159   :  { %v4256_v18 = vpop.f32.mrb[35].mxu0 }
 0x15e   :  { %v4258_v41 = vpop.f32.mrb[36].mxu0 }
 0x15f   :  { %v4260_v21 = vpop.f32.mrb[37].mxu0 }
 0x160   :  { %v4262_v42 = vpop.f32.mrb[38].mxu0 }
 0x161   :  { %v4264_v24 = vpop.f32.mrb[39].mxu0 }
 0x166   :  { %v4266_v26 = vpop.f32.mrb[40].mxu0 }
 0x167   :  { %v4268_v45 = vpop.f32.mrb[41].mxu0 }
 0x168   :  { %v1908_v47 = vpop.f32.mrb[42].mxu0 }
 0x169   :  { %v1909_v29 = vpop.f32.mrb[43].mxu0 }
 0x16d   :  { %v1663_v34 = vpop.f32.mrb[0].mxu1 }
 0x16e   :  { %v1665_v49 = vpop.f32.mrb[1].mxu1  ;;  %v2789_v0 = vadd.f32 %v1663_v34, %v4309_v59 }
 0x16f   :  { %v1667_v52 = vpop.f32.mrb[2].mxu1  ;;  %v2791_v1 = vadd.f32 %v1665_v49, %v4313_v63 }
 0x170   :  { %v1669_v38 = vpop.f32.mrb[3].mxu1  ;;  %v2793_v2 = vadd.f32 %v1667_v52, %v4309_v59 }
 0x171   :  { %v2795_v17 = vadd.f32 %v1669_v38, %v4313_v63 }
 0x175   :  { %v1673_v40 = vpop.f32.mrb[4].mxu1 }
 0x176   :  { %v4270_v53 = vpop.f32.mrb[5].mxu1  ;;  %v2797_v19 = vadd.f32 %v1673_v40, %v4309_v59 }
 0x177   :  { %v4272_v54 = vpop.f32.mrb[6].mxu1 }
 0x178   :  { %v4274_v43 = vpop.f32.mrb[7].mxu1 }
 0x17d   :  { %v4276_v46 = vpop.f32.mrb[8].mxu1 }
 0x17e   :  { %v4278_v56 = vpop.f32.mrb[9].mxu1 }
 0x17f   :  { %v4280_v50 = vpop.f32.mrb[10].mxu1 }
 0x180   :  { %v4282_v51 = vpop.f32.mrb[11].mxu1 }
 0x185   :  { %v4284_v55 = vpop.f32.mrb[12].mxu1 }
 0x186   :  { %v4286_v58 = vpop.f32.mrb[13].mxu1 }
 0x187   :  { %v4288_v60 = vpop.f32.mrb[14].mxu1 }
 0x188   :  { %v4290_v62 = vpop.f32.mrb[15].mxu1 }
 0x18d   :  { %v4292_v8 = vpop.f32.mrb[16].mxu1 }
 0x18e   :  { %v4294_v15 = vpop.f32.mrb[17].mxu1 }
 0x18f   :  { %v4296_v16 = vpop.f32.mrb[18].mxu1 }
 0x190   :  { %v4298_v27 = vpop.f32.mrb[19].mxu1 }
 0x195   :  { %v4303_v44 = vpop.f32.mrb[20].mxu1 }
 0x196   :  { %v4305_v48 = vpop.f32.mrb[21].mxu1 }
 0x197   :  { %v4307_v57 = vpop.f32.mrb[22].mxu1 }
 0x198   :  { %v4311_v61 = vpop.f32.mrb[23].mxu1 }
 0x19d   :  { %v1723_v3 = vpop.f32.mrb[24].mxu1 }
 0x19e   :  { %v2086_v5 = vpop.f32.mrb[0].mxu0  ;;  %v2837_v7 = vadd.f32 %v1723_v3, %v4309_v59  ;;  %v1725_v11 = vpop.f32.mrb[25].mxu1 }
 0x19f   :  { %v2790_v10 = vadd.f32 %v2789_v0, %v2086_v5  ;;  %v2088_v14 = vpop.f32.mrb[1].mxu0  ;;  %v2841_v20 = vadd.f32 %v1725_v11, %v4313_v63  ;;  %v1727_v47 = vpop.f32.mrb[26].mxu1 }
 0x1a0   :  { %v2792_v23 = vadd.f32 %v2791_v1, %v2088_v14  ;;  %v2090_v29 = vpop.f32.mrb[2].mxu0  ;;  %v2845_v49 = vadd.f32 %v1727_v47, %v4309_v59  ;;  %v1729_v52 = vpop.f32.mrb[27].mxu1  ;;  %v4325_v0 = vadd.f32 %v2837_v7, %v4234_v25 }
 0x1a1   :  { %vm2193_vm0 = vcmp.ge.f32.partialorder %v2790_v10, 0.0  ;;  %v2235_v34 = vmul.f32 0.01, %v2790_v10  ;;  %v2794_v4 = vadd.f32 %v2793_v2, %v2090_v29  ;;  %v2092_v22 = vpop.f32.mrb[3].mxu0  ;;  %v2849_v35 = vadd.f32 %v1729_v52, %v4313_v63 }
 0x1a2   :  { %vm2194_vm1 = vcmp.ge.f32.partialorder %v2792_v23, 0.0  ;;  %v2236_v32 = vmul.f32 0.01, %v2792_v23  ;;  %v2796_v39 = vadd.f32 %v2795_v17, %v2092_v22  ;;  %v4328_v5 = vadd.f32 %v2841_v20, %v4236_v28 }
 0x1a3   :  { %v2277_v38 = vsel %vm2193_vm0, %v2790_v10, %v2235_v34  ;;  %vm2195_vm2 = vcmp.ge.f32.partialorder %v2794_v4, 0.0  ;;  %v2237_v40 = vmul.f32 0.01, %v2794_v4  ;;  %v4331_v14 = vadd.f32 %v2845_v49, %v4238_v30 }
 0x1a4   :  { %v2278_v1 = vsel %vm2194_vm1, %v2792_v23, %v2236_v32  ;;  %vm2196_vm3 = vcmp.ge.f32.partialorder %v2796_v39, 0.0  ;;  %v2238_v3 = vmul.f32 0.01, %v2796_v39  ;;  %v4334_v47 = vadd.f32 %v2849_v35, %v4240_v31 }
 0x1a5   :  { %v2736_v2 = vpack.c.bf16 %v2278_v1, %v2277_v38  ;;  %v2279_v11 = vsel %vm2195_vm2, %v2794_v4, %v2237_v40  ;;  %v2799_v10 = vadd.f32 %v4270_v53, %v4313_v63  ;;  %v1733_v25 = vpop.f32.mrb[28].mxu1  ;;  %v2801_v23 = vadd.f32 %v4272_v54, %v4309_v59 }
 0x1a6   :  { %v2280_v17 = vsel %vm2196_vm3, %v2796_v39, %v2238_v3  ;;  %v2096_v7 = vpop.f32.mrb[4].mxu0  ;;  %v2853_v30 = vadd.f32 %v1733_v25, %v4309_v59  ;;  %v1735_v29 = vpop.f32.mrb[29].mxu1  ;;  %v2803_v34 = vadd.f32 %v4274_v43, %v4313_v63  ;;  %v2805_v53 = vadd.f32 %v4276_v46, %v4309_v59 }
 0x1a7   :  { %2447 = vst [vmem:[%s4514_s3] sm:$0xff] %v2736_v2  ;;  %v2737_v28 = vpack.c.bf16 %v2280_v17, %v2279_v11  ;;  %v2798_v20 = vadd.f32 %v2797_v19, %v2096_v7  ;;  %v2098_v31 = vpop.f32.mrb[5].mxu0  ;;  %v2857_v49 = vadd.f32 %v1735_v29, %v4313_v63  ;;  %v1737_v54 = vpop.f32.mrb[30].mxu1  ;;  %v2809_v29 = vadd.f32 %v4280_v50, %v4309_v59 }
 0x1a8   :  { %v2800_v4 = vadd.f32 %v2799_v10, %v2098_v31  ;;  %v2100_v52 = vpop.f32.mrb[6].mxu0  ;;  %v2861_v19 = vadd.f32 %v1737_v54, %v4309_v59  ;;  %v1739_v35 = vpop.f32.mrb[31].mxu1  ;;  %v4355_v3 = vadd.f32 %v2853_v30, %v4242_v6 }
 0x1a9   :  { %2448 = vst [vmem:[%s4514_s3 + $0x8] sm:$0xff] %v2737_v28  ;;  %vm2197_vm4 = vcmp.ge.f32.partialorder %v2798_v20, 0.0  ;;  %v2239_v22 = vmul.f32 0.01, %v2798_v20  ;;  %v2802_v32 = vadd.f32 %v2801_v23, %v2100_v52  ;;  %v2102_v39 = vpop.f32.mrb[7].mxu0  ;;  %v2865_v46 = vadd.f32 %v1739_v35, %v4313_v63 }
 0x1aa   :  { %vm2198_vm5 = vcmp.ge.f32.partialorder %v2800_v4, 0.0  ;;  %v2240_v43 = vmul.f32 0.01, %v2800_v4  ;;  %v2804_v38 = vadd.f32 %v2803_v34, %v2102_v39  ;;  %v4358_v10 = vadd.f32 %v2857_v49, %v4244_v9 }
 0x1ab   :  { %v2281_v40 = vsel %vm2197_vm4, %v2798_v20, %v2239_v22  ;;  %vm2199_vm6 = vcmp.ge.f32.partialorder %v2802_v32, 0.0  ;;  %v2241_v1 = vmul.f32 0.01, %v2802_v32  ;;  %v4361_v7 = vadd.f32 %v2861_v19, %v4246_v33 }
 0x1ac   :  { %v2282_v2 = vsel %vm2198_vm5, %v2800_v4, %v2240_v43  ;;  %vm2200_vm7 = vcmp.ge.f32.partialorder %v2804_v38, 0.0  ;;  %v2242_v11 = vmul.f32 0.01, %v2804_v38  ;;  %v4364_v23 = vadd.f32 %v2865_v46, %v4248_v36 }
 0x1ad   :  { %v2738_v17 = vpack.c.bf16 %v2282_v2, %v2281_v40  ;;  %v2283_v25 = vsel %vm2199_vm6, %v2802_v32, %v2241_v1  ;;  %v2807_v28 = vadd.f32 %v4278_v56, %v4313_v63  ;;  %v1743_v6 = vpop.f32.mrb[32].mxu1  ;;  %v2811_v49 = vadd.f32 %v4282_v51, %v4313_v63 }
 0x1ae   :  { %v2284_v20 = vsel %vm2200_vm7, %v2804_v38, %v2242_v11  ;;  %v2106_v30 = vpop.f32.mrb[8].mxu0  ;;  %v2869_v33 = vadd.f32 %v1743_v6, %v4309_v59  ;;  %v1745_v34 = vpop.f32.mrb[33].mxu1  ;;  %v2813_v56 = vadd.f32 %v4284_v55, %v4309_v59 }
 0x1af   :  { %2449 = vst [vmem:[%s4514_s3 + $0x10] sm:$0xff] %v2738_v17  ;;  %v2739_v9 = vpack.c.bf16 %v2284_v20, %v2283_v25  ;;  %v2806_v31 = vadd.f32 %v2805_v53, %v2106_v30  ;;  %v2108_v36 = vpop.f32.mrb[9].mxu0  ;;  %v2873_v4 = vadd.f32 %v1745_v34, %v4313_v63  ;;  %v1747_v50 = vpop.f32.mrb[34].mxu1  ;;  %v2815_v20 = vadd.f32 %v4286_v58, %v4313_v63 }
 0x1b0   :  { %v2808_v54 = vadd.f32 %v2807_v28, %v2108_v36  ;;  %v2110_v52 = vpop.f32.mrb[10].mxu0  ;;  %v2877_v53 = vadd.f32 %v1747_v50, %v4309_v59  ;;  %v1749_v32 = vpop.f32.mrb[35].mxu1  ;;  %v4385_v38 = vadd.f32 %v2869_v33, %v4250_v12  ;;  %v2821_v58 = vadd.f32 %v4292_v8, %v4309_v59 }
 0x1b1   :  { %2450 = vst [vmem:[%s4514_s3 + $0x18] sm:$0xff] %v2739_v9  ;;  %vm2201_vm8 = vcmp.ge.f32.partialorder %v2806_v31, 0.0  ;;  %v2243_v22 = vmul.f32 0.01, %v2806_v31  ;;  %v2810_v19 = vadd.f32 %v2809_v29, %v2110_v52  ;;  %v2112_v35 = vpop.f32.mrb[11].mxu0  ;;  %v2881_v55 = vadd.f32 %v1749_v32, %v4313_v63 }
 0x1b2   :  { %vm2202_vm9 = vcmp.ge.f32.partialorder %v2808_v54, 0.0  ;;  %v2244_v51 = vmul.f32 0.01, %v2808_v54  ;;  %v2812_v39 = vadd.f32 %v2811_v49, %v2112_v35  ;;  %v4388_v2 = vadd.f32 %v2873_v4, %v4252_v13 }
 0x1b3   :  { %v2285_v43 = vsel %vm2201_vm8, %v2806_v31, %v2243_v22  ;;  %vm2203_vm10 = vcmp.ge.f32.partialorder %v2810_v19, 0.0  ;;  %v2245_v46 = vmul.f32 0.01, %v2810_v19  ;;  %v4391_v25 = vadd.f32 %v2877_v53, %v4254_v37 }
 0x1b4   :  { %v2286_v40 = vsel %vm2202_vm9, %v2808_v54, %v2244_v51  ;;  %vm2204_vm11 = vcmp.ge.f32.partialorder %v2812_v39, 0.0  ;;  %v2246_v1 = vmul.f32 0.01, %v2812_v39  ;;  %v4394_v28 = vadd.f32 %v2881_v55, %v4256_v18 }
 0x1b5   :  { %v2740_v11 = vpack.c.bf16 %v2286_v40, %v2285_v43  ;;  %v2287_v17 = vsel %vm2203_vm10, %v2810_v19, %v2245_v46  ;;  %v1753_v12 = vpop.f32.mrb[36].mxu1  ;;  %v2817_v29 = vadd.f32 %v4288_v60, %v4309_v59  ;;  %v2819_v31 = vadd.f32 %v4290_v62, %v4313_v63 }
 0x1b6   :  { %v2288_v6 = vsel %vm2204_vm11, %v2812_v39, %v2246_v1  ;;  %v2116_v30 = vpop.f32.mrb[12].mxu0  ;;  %v2885_v37 = vadd.f32 %v1753_v12, %v4309_v59  ;;  %v1755_v33 = vpop.f32.mrb[37].mxu1  ;;  %v2823_v1 = vadd.f32 %v4294_v15, %v4313_v63 }
 0x1b7   :  { %2451 = vst [vmem:[%s4514_s3 + $0x20] sm:$0xff] %v2740_v11  ;;  %v2741_v13 = vpack.c.bf16 %v2288_v6, %v2287_v17  ;;  %v2814_v9 = vadd.f32 %v2813_v56, %v2116_v30  ;;  %v2118_v18 = vpop.f32.mrb[13].mxu0  ;;  %v2889_v34 = vadd.f32 %v1755_v33, %v4313_v63  ;;  %v1757_v60 = vpop.f32.mrb[38].mxu1  ;;  %v2827_v30 = vadd.f32 %v4298_v27, %v4313_v63 }
 0x1b8   :  { %v2816_v36 = vadd.f32 %v2815_v20, %v2118_v18  ;;  %v2120_v49 = vpop.f32.mrb[14].mxu0  ;;  %v2893_v56 = vadd.f32 %v1757_v60, %v4309_v59  ;;  %v1759_v50 = vpop.f32.mrb[39].mxu1  ;;  %v4415_v32 = vadd.f32 %v2885_v37, %v4258_v41  ;;  %v2825_v20 = vadd.f32 %v4296_v16, %v4309_v59 }
 0x1b9   :  { %2452 = vst [vmem:[%s4514_s3 + $0x28] sm:$0xff] %v2741_v13  ;;  %vm2205_vm12 = vcmp.ge.f32.partialorder %v2814_v9, 0.0  ;;  %v2247_v4 = vmul.f32 0.01, %v2814_v9  ;;  %v2818_v54 = vadd.f32 %v2817_v29, %v2120_v49  ;;  %v2122_v52 = vpop.f32.mrb[15].mxu0  ;;  %v2897_v8 = vadd.f32 %v1759_v50, %v4313_v63 }
 0x1ba   :  { %vm2206_vm13 = vcmp.ge.f32.partialorder %v2816_v36, 0.0  ;;  %v2248_v62 = vmul.f32 0.01, %v2816_v36  ;;  %v2820_v22 = vadd.f32 %v2819_v31, %v2122_v52  ;;  %v4418_v55 = vadd.f32 %v2889_v34, %v4260_v21 }
 0x1bb   :  { %v2289_v53 = vsel %vm2205_vm12, %v2814_v9, %v2247_v4  ;;  %vm2207_vm14 = vcmp.ge.f32.partialorder %v2818_v54, 0.0  ;;  %v2249_v19 = vmul.f32 0.01, %v2818_v54  ;;  %v4421_v46 = vadd.f32 %v2893_v56, %v4262_v42 }
 0x1bc   :  { %v2290_v35 = vsel %vm2206_vm13, %v2816_v36, %v2248_v62  ;;  %vm2208_vm15 = vcmp.ge.f32.partialorder %v2820_v22, 0.0  ;;  %v2250_v51 = vmul.f32 0.01, %v2820_v22  ;;  %v4424_v40 = vadd.f32 %v2897_v8, %v4264_v24 }
 0x1bd   :  { %v2742_v39 = vpack.c.bf16 %v2290_v35, %v2289_v53  ;;  %v2291_v43 = vsel %vm2207_vm14, %v2818_v54, %v2249_v19  ;;  %v1763_v41 = vpop.f32.mrb[40].mxu1  ;;  %v2829_v56 = vadd.f32 %v4303_v44, %v4309_v59 }
 0x1be   :  { %v2292_v11 = vsel %vm2208_vm15, %v2820_v22, %v2250_v51  ;;  %v2126_v17 = vpop.f32.mrb[16].mxu0  ;;  %v2901_v42 = vadd.f32 %v1763_v41, %v4309_v59  ;;  %v1765_v12 = vpop.f32.mrb[41].mxu1  ;;  %v2835_v51 = vadd.f32 %v4311_v61, %v4313_v63 }
 0x1bf   :  { %2453 = vst [vmem:[%s4514_s3 + $0x30] sm:$0xff] %v2742_v39  ;;  %v2743_v21 = vpack.c.bf16 %v2292_v11, %v2291_v43  ;;  %v2822_v6 = vadd.f32 %v2821_v58, %v2126_v17  ;;  %v2128_v24 = vpop.f32.mrb[17].mxu0  ;;  %v2905_v15 = vadd.f32 %v1765_v12, %v4313_v63  ;;  %v1767_v13 = vpop.f32.mrb[42].mxu1 }
 0x1c0   :  { %v2824_v29 = vadd.f32 %v2823_v1, %v2128_v24  ;;  %v2130_v37 = vpop.f32.mrb[18].mxu0  ;;  %v1768_v33 = vpop.f32.mrb[43].mxu1  ;;  %v4441_v31 = vadd.f32 %v2901_v42, %v4266_v26  ;;  %v2831_v26 = vadd.f32 %v4305_v48, %v4313_v63 }
 0x1c1   :  { %2454 = vst [vmem:[%s4514_s3 + $0x38] sm:$0xff] %v2743_v21  ;;  %vm2209_vm0 = vcmp.ge.f32.partialorder %v2822_v6, 0.0  ;;  %v2251_v16 = vmul.f32 0.01, %v2822_v6  ;;  %v2826_v9 = vadd.f32 %v2825_v20, %v2130_v37  ;;  %v2132_v18 = vpop.f32.mrb[19].mxu0  ;;  %v4444_v34 = vadd.f32 %v2905_v15, %v4268_v45 }
 0x1c2   :  { %vm2210_vm1 = vcmp.ge.f32.partialorder %v2824_v29, 0.0  ;;  %v2252_v58 = vmul.f32 0.01, %v2824_v29  ;;  %v2828_v27 = vadd.f32 %v2827_v30, %v2132_v18  ;;  %v2833_v45 = vadd.f32 %v4307_v57, %v4309_v59 }
 0x1c3   :  { %v2293_v36 = vsel %vm2209_vm0, %v2822_v6, %v2251_v16  ;;  %vm2211_vm2 = vcmp.ge.f32.partialorder %v2826_v9, 0.0  ;;  %v2253_v60 = vmul.f32 0.01, %v2826_v9 }
 0x1c4   :  { %v2294_v49 = vsel %vm2210_vm1, %v2824_v29, %v2252_v58  ;;  %vm2212_vm3 = vcmp.ge.f32.partialorder %v2828_v27, 0.0  ;;  %v2254_v4 = vmul.f32 0.01, %v2828_v27 }
 0x1c5   :  { %v2744_v54 = vpack.c.bf16 %v2294_v49, %v2293_v36  ;;  %v2295_v50 = vsel %vm2211_vm2, %v2826_v9, %v2253_v60  ;;  %v2005_v62 = vpop.f32.mrb[44].mxu1 }
 0x1c6   :  { %v2296_v52 = vsel %vm2212_vm3, %v2828_v27, %v2254_v4  ;;  %v2136_v8 = vpop.f32.mrb[20].mxu0  ;;  %v2839_v53 = vadd.f32 %v4325_v0, %v2005_v62  ;;  %v2007_v44 = vpop.f32.mrb[45].mxu1 }
 0x1c7   :  { %2455 = vst [vmem:[%s4514_s3 + $0x40] sm:$0xff] %v2744_v54  ;;  %v2745_v22 = vpack.c.bf16 %v2296_v52, %v2295_v50  ;;  %v2830_v19 = vadd.f32 %v2829_v56, %v2136_v8  ;;  %v2138_v35 = vpop.f32.mrb[21].mxu0  ;;  %v2843_v48 = vadd.f32 %v4328_v5, %v2007_v44  ;;  %v2009_v43 = vpop.f32.mrb[46].mxu1 }
 0x1c8   :  { %v2832_v39 = vadd.f32 %v2831_v26, %v2138_v35  ;;  %v2140_v1 = vpop.f32.mrb[22].mxu0  ;;  %v2847_v59 = vadd.f32 %v4331_v14, %v2009_v43  ;;  %v2011_v11 = vpop.f32.mrb[47].mxu1 }
 0x1c9   :  { %2456 = vst [vmem:[%s4514_s3 + $0x48] sm:$0xff] %v2745_v22  ;;  %vm2213_vm4 = vcmp.ge.f32.partialorder %v2830_v19, 0.0  ;;  %v2255_v57 = vmul.f32 0.01, %v2830_v19  ;;  %v2834_v0 = vadd.f32 %v2833_v45, %v2140_v1  ;;  %v2142_v41 = vpop.f32.mrb[23].mxu0  ;;  %v2851_v61 = vadd.f32 %v4334_v47, %v2011_v11 }
 0x1ca   :  { %vm2214_vm5 = vcmp.ge.f32.partialorder %v2832_v39, 0.0  ;;  %v2256_v17 = vmul.f32 0.01, %v2832_v39  ;;  %v2836_v63 = vadd.f32 %v2835_v51, %v2142_v41 }
 0x1cb   :  { %v2297_v5 = vsel %vm2213_vm4, %v2830_v19, %v2255_v57  ;;  %vm2215_vm6 = vcmp.ge.f32.partialorder %v2834_v0, 0.0  ;;  %v2257_v20 = vmul.f32 0.01, %v2834_v0 }
 0x1cc   :  { %v2298_v21 = vsel %vm2214_vm5, %v2832_v39, %v2256_v17  ;;  %vm2216_vm7 = vcmp.ge.f32.partialorder %v2836_v63, 0.0  ;;  %v2258_v42 = vmul.f32 0.01, %v2836_v63 }
 0x1cd   :  { %v2746_v6 = vpack.c.bf16 %v2298_v21, %v2297_v5  ;;  %v2299_v12 = vsel %vm2215_vm6, %v2834_v0, %v2257_v20  ;;  %v2015_v30 = vpop.f32.mrb[48].mxu1 }
 0x1ce   :  { %v2300_v24 = vsel %vm2216_vm7, %v2836_v63, %v2258_v42  ;;  %v2146_v15 = vpop.f32.mrb[44].mxu0  ;;  %v2855_v29 = vadd.f32 %v4355_v3, %v2015_v30  ;;  %v2017_v13 = vpop.f32.mrb[49].mxu1 }
 0x1cf   :  { %2457 = vst [vmem:[%s4514_s3 + $0x50] sm:$0xff] %v2746_v6  ;;  %v2747_v14 = vpack.c.bf16 %v2300_v24, %v2299_v12  ;;  %v2840_v47 = vadd.f32 %v2839_v53, %v2146_v15  ;;  %v2148_v37 = vpop.f32.mrb[45].mxu0  ;;  %v2859_v16 = vadd.f32 %v4358_v10, %v2017_v13  ;;  %v2019_v33 = vpop.f32.mrb[50].mxu1 }
 0x1d0   :  { %v2844_v9 = vadd.f32 %v2843_v48, %v2148_v37  ;;  %v2150_v18 = vpop.f32.mrb[46].mxu0  ;;  %v2863_v27 = vadd.f32 %v4361_v7, %v2019_v33  ;;  %v2021_v60 = vpop.f32.mrb[51].mxu1 }
 0x1d1   :  { %2458 = vst [vmem:[%s4514_s3 + $0x58] sm:$0xff] %v2747_v14  ;;  %vm2217_vm8 = vcmp.ge.f32.partialorder %v2840_v47, 0.0  ;;  %v2259_v58 = vmul.f32 0.01, %v2840_v47  ;;  %v2848_v36 = vadd.f32 %v2847_v59, %v2150_v18  ;;  %v2152_v49 = vpop.f32.mrb[47].mxu0  ;;  %v2867_v4 = vadd.f32 %v4364_v23, %v2021_v60 }
 0x1d2   :  { %vm2218_vm9 = vcmp.ge.f32.partialorder %v2844_v9, 0.0  ;;  %v2260_v3 = vmul.f32 0.01, %v2844_v9  ;;  %v2852_v56 = vadd.f32 %v2851_v61, %v2152_v49 }
 0x1d3   :  { %v2301_v10 = vsel %vm2217_vm8, %v2840_v47, %v2259_v58  ;;  %vm2219_vm10 = vcmp.ge.f32.partialorder %v2848_v36, 0.0  ;;  %v2261_v54 = vmul.f32 0.01, %v2848_v36 }
 0x1d4   :  { %v2302_v50 = vsel %vm2218_vm9, %v2844_v9, %v2260_v3  ;;  %vm2220_vm11 = vcmp.ge.f32.partialorder %v2852_v56, 0.0  ;;  %v2262_v26 = vmul.f32 0.01, %v2852_v56 }
 0x1d5   :  { %v2748_v52 = vpack.c.bf16 %v2302_v50, %v2301_v10  ;;  %v2303_v62 = vsel %vm2219_vm10, %v2848_v36, %v2261_v54  ;;  %v2025_v45 = vpop.f32.mrb[52].mxu1 }
 0x1d6   :  { %v2304_v8 = vsel %vm2220_vm11, %v2852_v56, %v2262_v26  ;;  %v2156_v22 = vpop.f32.mrb[48].mxu0  ;;  %v2871_v53 = vadd.f32 %v4385_v38, %v2025_v45  ;;  %v2027_v19 = vpop.f32.mrb[53].mxu1 }
 0x1d7   :  { %2459 = vst [vmem:[%s4514_s3 + $0x60] sm:$0xff] %v2748_v52  ;;  %v2749_v7 = vpack.c.bf16 %v2304_v8, %v2303_v62  ;;  %v2856_v23 = vadd.f32 %v2855_v29, %v2156_v22  ;;  %v2158_v44 = vpop.f32.mrb[49].mxu0  ;;  %v2875_v35 = vadd.f32 %v4388_v2, %v2027_v19  ;;  %v2029_v48 = vpop.f32.mrb[54].mxu1 }
 0x1d8   :  { %v2860_v51 = vadd.f32 %v2859_v16, %v2158_v44  ;;  %v2160_v39 = vpop.f32.mrb[50].mxu0  ;;  %v2879_v1 = vadd.f32 %v4391_v25, %v2029_v48  ;;  %v2031_v59 = vpop.f32.mrb[55].mxu1 }
 0x1d9   :  { %2460 = vst [vmem:[%s4514_s3 + $0x68] sm:$0xff] %v2749_v7  ;;  %vm2221_vm12 = vcmp.ge.f32.partialorder %v2856_v23, 0.0  ;;  %v2263_v43 = vmul.f32 0.01, %v2856_v23  ;;  %v2864_v57 = vadd.f32 %v2863_v27, %v2160_v39  ;;  %v2162_v0 = vpop.f32.mrb[51].mxu0  ;;  %v2883_v11 = vadd.f32 %v4394_v28, %v2031_v59 }
 0x1da   :  { %vm2222_vm13 = vcmp.ge.f32.partialorder %v2860_v51, 0.0  ;;  %v2264_v38 = vmul.f32 0.01, %v2860_v51  ;;  %v2868_v41 = vadd.f32 %v2867_v4, %v2162_v0 }
 0x1db   :  { %v2305_v2 = vsel %vm2221_vm12, %v2856_v23, %v2263_v43  ;;  %vm2223_vm14 = vcmp.ge.f32.partialorder %v2864_v57, 0.0  ;;  %v2265_v17 = vmul.f32 0.01, %v2864_v57 }
 0x1dc   :  { %v2306_v61 = vsel %vm2222_vm13, %v2860_v51, %v2264_v38  ;;  %vm2224_vm15 = vcmp.ge.f32.partialorder %v2868_v41, 0.0  ;;  %v2266_v63 = vmul.f32 0.01, %v2868_v41 }
 0x1dd   :  { %v2750_v5 = vpack.c.bf16 %v2306_v61, %v2305_v2  ;;  %v2307_v20 = vsel %vm2223_vm14, %v2864_v57, %v2265_v17  ;;  %v2035_v42 = vpop.f32.mrb[56].mxu1 }
 0x1de   :  { %v2308_v21 = vsel %vm2224_vm15, %v2868_v41, %v2266_v63  ;;  %v2166_v6 = vpop.f32.mrb[52].mxu0  ;;  %v2887_v12 = vadd.f32 %v4415_v32, %v2035_v42  ;;  %v2037_v24 = vpop.f32.mrb[57].mxu1 }
 0x1df   :  { %2461 = vst [vmem:[%s4514_s3 + $0x70] sm:$0xff] %v2750_v5  ;;  %v2751_v25 = vpack.c.bf16 %v2308_v21, %v2307_v20  ;;  %v2872_v28 = vadd.f32 %v2871_v53, %v2166_v6  ;;  %v2168_v30 = vpop.f32.mrb[53].mxu0  ;;  %v2891_v15 = vadd.f32 %v4418_v55, %v2037_v24  ;;  %v2039_v29 = vpop.f32.mrb[58].mxu1 }
 0x1e0   :  { %v2876_v14 = vadd.f32 %v2875_v35, %v2168_v30  ;;  %v2170_v47 = vpop.f32.mrb[54].mxu0  ;;  %v2895_v37 = vadd.f32 %v4421_v46, %v2039_v29  ;;  %v2041_v9 = vpop.f32.mrb[59].mxu1 }
 0x1e1   :  { %2462 = vst [vmem:[%s4514_s3 + $0x78] sm:$0xff] %v2751_v25  ;;  %vm2225_vm0 = vcmp.ge.f32.partialorder %v2872_v28, 0.0  ;;  %v2267_v13 = vmul.f32 0.01, %v2872_v28  ;;  %v2880_v16 = vadd.f32 %v2879_v1, %v2170_v47  ;;  %v2172_v33 = vpop.f32.mrb[55].mxu0  ;;  %v2899_v18 = vadd.f32 %v4424_v40, %v2041_v9 }
 0x1e2   :  { %vm2226_vm1 = vcmp.ge.f32.partialorder %v2876_v14, 0.0  ;;  %v2268_v32 = vmul.f32 0.01, %v2876_v14  ;;  %v2884_v58 = vadd.f32 %v2883_v11, %v2172_v33 }
 0x1e3   :  { %v2309_v55 = vsel %vm2225_vm0, %v2872_v28, %v2267_v13  ;;  %vm2227_vm2 = vcmp.ge.f32.partialorder %v2880_v16, 0.0  ;;  %v2269_v27 = vmul.f32 0.01, %v2880_v16 }
 0x1e4   :  { %v2310_v36 = vsel %vm2226_vm1, %v2876_v14, %v2268_v32  ;;  %vm2228_vm3 = vcmp.ge.f32.partialorder %v2884_v58, 0.0  ;;  %v2270_v60 = vmul.f32 0.01, %v2884_v58 }
 0x1e5   :  { %v2752_v49 = vpack.c.bf16 %v2310_v36, %v2309_v55  ;;  %v2311_v3 = vsel %vm2227_vm2, %v2880_v16, %v2269_v27  ;;  %v2045_v56 = vpop.f32.mrb[60].mxu1 }
 0x1e6   :  { %v2312_v4 = vsel %vm2228_vm3, %v2884_v58, %v2270_v60  ;;  %v2176_v10 = vpop.f32.mrb[56].mxu0  ;;  %v2903_v54 = vadd.f32 %v4441_v31, %v2045_v56  ;;  %v2047_v50 = vpop.f32.mrb[61].mxu1 }
 0x1e7   :  { %2463 = vst [vmem:[%s4514_s3 + $0x80] sm:$0xff] %v2752_v49  ;;  %v2753_v46 = vpack.c.bf16 %v2312_v4, %v2311_v3  ;;  %v2888_v40 = vadd.f32 %v2887_v12, %v2176_v10  ;;  %v2178_v26 = vpop.f32.mrb[57].mxu0  ;;  %v2907_v52 = vadd.f32 %v4444_v34, %v2047_v50  ;;  %v2049_v45 = vpop.f32.mrb[62].mxu1 }
 0x1e8   :  { %v2892_v62 = vadd.f32 %v2891_v15, %v2178_v26  ;;  %v2180_v8 = vpop.f32.mrb[58].mxu0  ;;  %v2050_v23 = vpop.f32.mrb[63].mxu1 }
 0x1e9   :  { %2464 = vst [vmem:[%s4514_s3 + $0x88] sm:$0xff] %v2753_v46  ;;  %vm2229_vm4 = vcmp.ge.f32.partialorder %v2888_v40, 0.0  ;;  %v2271_v22 = vmul.f32 0.01, %v2888_v40  ;;  %v2896_v7 = vadd.f32 %v2895_v37, %v2180_v8  ;;  %v2182_v53 = vpop.f32.mrb[59].mxu0 }
 0x1ea   :  { %vm2230_vm5 = vcmp.ge.f32.partialorder %v2892_v62, 0.0  ;;  %v2272_v19 = vmul.f32 0.01, %v2892_v62  ;;  %v2900_v31 = vadd.f32 %v2899_v18, %v2182_v53 }
 0x1eb   :  { %v2313_v44 = vsel %vm2229_vm4, %v2888_v40, %v2271_v22  ;;  %vm2231_vm6 = vcmp.ge.f32.partialorder %v2896_v7, 0.0  ;;  %v2273_v35 = vmul.f32 0.01, %v2896_v7 }
 0x1ec   :  { %v2314_v51 = vsel %vm2230_vm5, %v2892_v62, %v2272_v19  ;;  %vm2232_vm7 = vcmp.ge.f32.partialorder %v2900_v31, 0.0  ;;  %v2274_v34 = vmul.f32 0.01, %v2900_v31 }
 0x1ed   :  { %v2754_v48 = vpack.c.bf16 %v2314_v51, %v2313_v44  ;;  %v2315_v39 = vsel %vm2231_vm6, %v2896_v7, %v2273_v35 }
 0x1ee   :  { %v2316_v43 = vsel %vm2232_vm7, %v2900_v31, %v2274_v34  ;;  %v2186_v1 = vpop.f32.mrb[60].mxu0 }
 0x1ef   :  { %2465 = vst [vmem:[%s4514_s3 + $0x90] sm:$0xff] %v2754_v48  ;;  %v2755_v57 = vpack.c.bf16 %v2316_v43, %v2315_v39  ;;  %v2904_v59 = vadd.f32 %v2903_v54, %v2186_v1  ;;  %v2188_v0 = vpop.f32.mrb[61].mxu0 }
 0x1f0   :  { %v2908_v38 = vadd.f32 %v2907_v52, %v2188_v0  ;;  %v2190_v11 = vpop.f32.mrb[62].mxu0 }
 0x1f1   :  { %2466 = vst [vmem:[%s4514_s3 + $0x98] sm:$0xff] %v2755_v57  ;;  %vm2233_vm8 = vcmp.ge.f32.partialorder %v2904_v59, 0.0  ;;  %v2275_v41 = vmul.f32 0.01, %v2904_v59  ;;  %v2191_v2 = vpop.f32.mrb[63].mxu0 }
 0x1f2   :  { %vm2234_vm9 = vcmp.ge.f32.partialorder %v2908_v38, 0.0  ;;  %v2276_v17 = vmul.f32 0.01, %v2908_v38 }
 0x1f3   :  { %v2317_v61 = vsel %vm2233_vm8, %v2904_v59, %v2275_v41 }
 0x1f4   :  { %v2318_v63 = vsel %vm2234_vm9, %v2908_v38, %v2276_v17 }
 0x1f5   :  { %v2756_v5 = vpack.c.bf16 %v2318_v63, %v2317_v61 }
 0x1f7   :  { %2467 = vst [vmem:[%s4514_s3 + $0xa0] sm:$0xff] %v2756_v5 }

</bundles_post_ra>
